<compile_context>
chip_gen: v5e
topology: v5e:2x2
jax: 0.10.0
libtpu: 0.0.40
codegen_flags: <defaults>
</compile_context>

<pallas_src>
import functools

import jax
import jax.numpy as jnp
from jax.experimental import pallas as pl
from jax.experimental.pallas import tpu as pltpu

LANES = 128


def _round_up(n, m):
    return ((n + m - 1) // m) * m


def inr_kernel(x_ref, w1_ref, wstack_ref, bias_ref, o_ref):
    """One batch tile of the INR MLP (eval mode).

    h1 = relu(x @ W1 + b1)
    h2 = relu(h1 @ W2' + b2')     # BN1 affine folded into (W2', b2')
    h3 = relu(h2 @ W3' + b3')     # BN2 affine folded into (W3', b3')
    y  = sigmoid(h3 @ W4' + b4')  # BN3 affine folded into (W4', b4')
    """
    x = x_ref[...]
    in_dim = w1_ref.shape[0]

    # ----- layer 1: Linear -> ReLU -------------------------------------
    # K == input_dim is tiny (2): VPU outer-product FMAs instead of an MXU
    # matmul with a 2-deep contraction.
    if in_dim <= 8:
        h = x[:, 0:1] * w1_ref[0:1, :]
        for d in range(1, in_dim):
            h = h + x[:, d:d + 1] * w1_ref[d:d + 1, :]
    else:
        h = jnp.dot(x, w1_ref[...], preferred_element_type=jnp.float32)
    h = jnp.maximum(h + bias_ref[0:1, :], 0.0)

    # ----- layers 2 & 3: Linear (BN folded in) -> ReLU ------------------
    h = jnp.maximum(
        jnp.dot(h, wstack_ref[0], preferred_element_type=jnp.float32)
        + bias_ref[1:2, :], 0.0)
    h = jnp.maximum(
        jnp.dot(h, wstack_ref[1], preferred_element_type=jnp.float32)
        + bias_ref[2:3, :], 0.0)

    # ----- output layer: Linear -> Sigmoid ------------------------------
    y = (jnp.dot(h, wstack_ref[2], preferred_element_type=jnp.float32)
         + bias_ref[3:4, :])
    # Lane-dense store: full 128-lane-wide block; wrapper slices [:, :out_dim].
    o_ref[...] = jax.nn.sigmoid(y)


def fold_and_pack_params(p):
    """Fold eval-mode BN affine into the following Linear and pad to 128 lanes.

    BN(scale s, shift t) applied after ReLU of layer k folds into layer k+1:
        W' = diag(s) @ W ,   b' = t @ W + b
    """
    H = p["w2"].shape[0]
    out_dim = p["w4"].shape[1]
    Hp = _round_up(max(H, LANES), LANES)
    hi = jax.lax.Precision.HIGHEST

    w2 = p["s1"].T * p["w2"]
    b2 = jnp.dot(p["t1"], p["w2"], precision=hi) + p["b2"]
    w3 = p["s2"].T * p["w3"]
    b3 = jnp.dot(p["t2"], p["w3"], precision=hi) + p["b3"]
    w4 = p["s3"].T * p["w4"]
    b4 = jnp.dot(p["t3"], p["w4"], precision=hi) + p["b4"]

    def pad2(a, rows, cols):
        return jnp.pad(a, ((0, rows - a.shape[0]), (0, cols - a.shape[1])))

    w1p = pad2(p["w1"], p["w1"].shape[0], Hp)            # (in_dim, Hp)
    wstack = jnp.stack([pad2(w2, Hp, Hp),
                        pad2(w3, Hp, Hp),
                        pad2(w4, Hp, Hp)])               # (3, Hp, Hp)
    bias = jnp.concatenate([pad2(p["b1"], 1, Hp), pad2(b2, 1, Hp),
                            pad2(b3, 1, Hp), pad2(b4, 1, Hp)], axis=0)  # (4, Hp)
    return w1p, wstack, bias, Hp, out_dim


@functools.partial(jax.jit, static_argnames=("tile_n",))
def inr_forward(x, params, *, tile_n=512):
    """x: (N, input_dim) f32. Returns (N, output_dim) f32."""
    N, in_dim = x.shape
    w1p, wstack, bias, Hp, out_dim = fold_and_pack_params(params)

    # Large batch tiles (per-grid-step overhead ~0.35us dominates tiny tiles).
    tn = min(tile_n, _round_up(N, 8))
    n_pad = _round_up(N, tn)
    if n_pad != N:
        x = jnp.pad(x, ((0, n_pad - N), (0, 0)))
    grid = (n_pad // tn,)

    out = pl.pallas_call(
        inr_kernel,
        out_shape=jax.ShapeDtypeStruct((n_pad, Hp), jnp.float32),
        grid_spec=pltpu.PrefetchScalarGridSpec(
            num_scalar_prefetch=0,
            grid=grid,
            in_specs=[
                pl.BlockSpec((tn, in_dim), lambda i: (i, 0)),
                pl.BlockSpec(w1p.shape, lambda i: (0, 0)),
                pl.BlockSpec(wstack.shape, lambda i: (0, 0, 0)),
                pl.BlockSpec(bias.shape, lambda i: (0, 0)),
            ],
            out_specs=pl.BlockSpec((tn, Hp), lambda i: (i, 0)),
        ),
        compiler_params=pltpu.CompilerParams(
            dimension_semantics=("parallel",)),
    )(x, w1p, wstack, bias)

    return out[:N, :out_dim]


def init_params(key, input_dim=2, output_dim=3, hidden_dim=32, eps=1e-5):
    """Deterministic synthetic init (uniform, PyTorch-Linear-like fan-in scale).
    BatchNorm running stats / gamma / beta are folded into (scale, shift)."""
    ks = jax.random.split(key, 20)
    p = {}

    def lin(kw, kb, fan_in, fan_out):
        bound = 1.0 / jnp.sqrt(fan_in)
        w = jax.random.uniform(kw, (fan_in, fan_out), jnp.float32, -bound, bound)
        b = jax.random.uniform(kb, (1, fan_out), jnp.float32, -bound, bound)
        return w, b

    p["w1"], p["b1"] = lin(ks[0], ks[1], input_dim, hidden_dim)
    p["w2"], p["b2"] = lin(ks[2], ks[3], hidden_dim, hidden_dim)
    p["w3"], p["b3"] = lin(ks[4], ks[5], hidden_dim, hidden_dim)
    p["w4"], p["b4"] = lin(ks[6], ks[7], hidden_dim, output_dim)

    for idx in range(1, 4):
        kg, kb, km, kv = ks[8 + 4 * (idx - 1): 8 + 4 * idx]
        gamma = 1.0 + 0.1 * jax.random.normal(kg, (1, hidden_dim), jnp.float32)
        beta = 0.1 * jax.random.normal(kb, (1, hidden_dim), jnp.float32)
        rmean = 0.05 * jax.random.normal(km, (1, hidden_dim), jnp.float32)
        rvar = 1.0 + 0.1 * jax.random.uniform(kv, (1, hidden_dim), jnp.float32)
        scale = gamma / jnp.sqrt(rvar + eps)
        shift = beta - rmean * scale
        p[f"s{idx}"] = scale
        p[f"t{idx}"] = shift
    return p


def reference_forward(x, p):
    hi = jax.lax.Precision.HIGHEST
    h = jnp.maximum(jnp.dot(x, p["w1"], precision=hi) + p["b1"], 0.0) * p["s1"] + p["t1"]
    h = jnp.maximum(jnp.dot(h, p["w2"], precision=hi) + p["b2"], 0.0) * p["s2"] + p["t2"]
    h = jnp.maximum(jnp.dot(h, p["w3"], precision=hi) + p["b3"], 0.0) * p["s3"] + p["t3"]
    return jax.nn.sigmoid(jnp.dot(h, p["w4"], precision=hi) + p["b4"])


if __name__ == "__main__":
    key = jax.random.PRNGKey(0)
    k_x, k_p = jax.random.split(key)

    # INR coordinate batch: (N, 2) pixel coords -> (N, 3) RGB.
    N, input_dim, output_dim, hidden_dim = 2048, 2, 3, 32
    x = jax.random.uniform(k_x, (N, input_dim), jnp.float32, -1.0, 1.0)
    params = init_params(k_p, input_dim, output_dim, hidden_dim)

    out = inr_forward(x, params, tile_n=512)   # grid of 4 "parallel" steps
    out = jax.block_until_ready(out)

    ref = reference_forward(x, params)
    assert out.shape == (N, output_dim)
    err = float(jnp.max(jnp.abs(out - ref)))
    assert jnp.allclose(out, ref, atol=5e-5, rtol=5e-5), err
    print("KERNEL_OK")
</pallas_src>

<mosaic_0001>
module attributes {stable_mosaic.version = 11 : i64} {
  func.func @inr_kernel(%arg0: i32, %arg1: memref<512x2xf32, #tpu.memory_space<vmem>>, %arg2: memref<2x128xf32, #tpu.memory_space<vmem>>, %arg3: memref<3x128x128xf32, #tpu.memory_space<vmem>>, %arg4: memref<4x128xf32, #tpu.memory_space<vmem>>, %arg5: memref<512x128xf32, #tpu.memory_space<vmem>>) attributes {dimension_semantics = [#tpu.dimension_semantics<parallel>], iteration_bounds = array<i64: 4>, scalar_prefetch = 0 : i64, scratch_operands = 0 : i64, tpu.core_type = #tpu.core_type<tc>, window_params = [{transform_indices = @transform_0, window_bounds = array<i64: 512, 2>}, {pipeline_mode = #tpu.pipeline_mode<synchronous>, transform_indices = @transform_1, window_bounds = array<i64: 2, 128>}, {pipeline_mode = #tpu.pipeline_mode<synchronous>, transform_indices = @transform_2, window_bounds = array<i64: 3, 128, 128>}, {pipeline_mode = #tpu.pipeline_mode<synchronous>, transform_indices = @transform_3, window_bounds = array<i64: 4, 128>}, {transform_indices = @transform_4, window_bounds = array<i64: 512, 128>}]} {
    %c0 = arith.constant 0 : index
    %c0_0 = arith.constant 0 : index
    %0 = vector.load %arg1[%c0, %c0_0] : memref<512x2xf32, #tpu.memory_space<vmem>>, vector<512x2xf32>
    %1 = vector.extract_strided_slice %0 {offsets = [0, 0], sizes = [512, 1], strides = [1, 1]} : vector<512x2xf32> to vector<512x1xf32>
    %c0_1 = arith.constant 0 : index
    %c0_2 = arith.constant 0 : index
    %2 = vector.load %arg2[%c0_1, %c0_2] : memref<2x128xf32, #tpu.memory_space<vmem>>, vector<1x128xf32>
    %3 = vector.broadcast %1 : vector<512x1xf32> to vector<512x128xf32>
    %4 = vector.broadcast %2 : vector<1x128xf32> to vector<512x128xf32>
    %5 = arith.mulf %3, %4 : vector<512x128xf32>
    %6 = vector.extract_strided_slice %0 {offsets = [0, 1], sizes = [512, 1], strides = [1, 1]} : vector<512x2xf32> to vector<512x1xf32>
    %c1 = arith.constant 1 : index
    %c0_3 = arith.constant 0 : index
    %7 = vector.load %arg2[%c1, %c0_3] : memref<2x128xf32, #tpu.memory_space<vmem>>, vector<1x128xf32>
    %8 = vector.broadcast %6 : vector<512x1xf32> to vector<512x128xf32>
    %9 = vector.broadcast %7 : vector<1x128xf32> to vector<512x128xf32>
    %10 = arith.mulf %8, %9 : vector<512x128xf32>
    %11 = arith.addf %5, %10 : vector<512x128xf32>
    %c0_4 = arith.constant 0 : index
    %c0_5 = arith.constant 0 : index
    %12 = vector.load %arg4[%c0_4, %c0_5] : memref<4x128xf32, #tpu.memory_space<vmem>>, vector<1x128xf32>
    %13 = vector.broadcast %12 : vector<1x128xf32> to vector<512x128xf32>
    %14 = arith.addf %11, %13 : vector<512x128xf32>
    %cst = arith.constant 0.000000e+00 : f32
    %15 = vector.broadcast %cst : f32 to vector<512x128xf32>
    %16 = arith.maximumf %14, %15 : vector<512x128xf32>
    %c0_6 = arith.constant 0 : index
    %c0_7 = arith.constant 0 : index
    %c0_8 = arith.constant 0 : index
    %17 = vector.load %arg3[%c0_6, %c0_7, %c0_8] : memref<3x128x128xf32, #tpu.memory_space<vmem>>, vector<1x128x128xf32>
    %18 = vector.shape_cast %17 : vector<1x128x128xf32> to vector<128x128xf32>
    %cst_9 = arith.constant dense<0.000000e+00> : vector<512x128xf32>
    %19 = tpu.matmul %16, %18, %cst_9 {dimension_numbers = #tpu.dot_dimension_numbers<[1], [0], [0], [1], [0, 0, 1, 1], [], []>} : vector<512x128xf32>, vector<128x128xf32>, vector<512x128xf32> -> vector<512x128xf32>
    %c1_10 = arith.constant 1 : index
    %c0_11 = arith.constant 0 : index
    %20 = vector.load %arg4[%c1_10, %c0_11] : memref<4x128xf32, #tpu.memory_space<vmem>>, vector<1x128xf32>
    %21 = vector.broadcast %20 : vector<1x128xf32> to vector<512x128xf32>
    %22 = arith.addf %19, %21 : vector<512x128xf32>
    %cst_12 = arith.constant 0.000000e+00 : f32
    %23 = vector.broadcast %cst_12 : f32 to vector<512x128xf32>
    %24 = arith.maximumf %22, %23 : vector<512x128xf32>
    %c1_13 = arith.constant 1 : index
    %c0_14 = arith.constant 0 : index
    %c0_15 = arith.constant 0 : index
    %25 = vector.load %arg3[%c1_13, %c0_14, %c0_15] : memref<3x128x128xf32, #tpu.memory_space<vmem>>, vector<1x128x128xf32>
    %26 = vector.shape_cast %25 : vector<1x128x128xf32> to vector<128x128xf32>
    %cst_16 = arith.constant dense<0.000000e+00> : vector<512x128xf32>
    %27 = tpu.matmul %24, %26, %cst_16 {dimension_numbers = #tpu.dot_dimension_numbers<[1], [0], [0], [1], [0, 0, 1, 1], [], []>} : vector<512x128xf32>, vector<128x128xf32>, vector<512x128xf32> -> vector<512x128xf32>
    %c2 = arith.constant 2 : index
    %c0_17 = arith.constant 0 : index
    %28 = vector.load %arg4[%c2, %c0_17] : memref<4x128xf32, #tpu.memory_space<vmem>>, vector<1x128xf32>
    %29 = vector.broadcast %28 : vector<1x128xf32> to vector<512x128xf32>
    %30 = arith.addf %27, %29 : vector<512x128xf32>
    %cst_18 = arith.constant 0.000000e+00 : f32
    %31 = vector.broadcast %cst_18 : f32 to vector<512x128xf32>
    %32 = arith.maximumf %30, %31 : vector<512x128xf32>
    %c2_19 = arith.constant 2 : index
    %c0_20 = arith.constant 0 : index
    %c0_21 = arith.constant 0 : index
    %33 = vector.load %arg3[%c2_19, %c0_20, %c0_21] : memref<3x128x128xf32, #tpu.memory_space<vmem>>, vector<1x128x128xf32>
    %34 = vector.shape_cast %33 : vector<1x128x128xf32> to vector<128x128xf32>
    %cst_22 = arith.constant dense<0.000000e+00> : vector<512x128xf32>
    %35 = tpu.matmul %32, %34, %cst_22 {dimension_numbers = #tpu.dot_dimension_numbers<[1], [0], [0], [1], [0, 0, 1, 1], [], []>} : vector<512x128xf32>, vector<128x128xf32>, vector<512x128xf32> -> vector<512x128xf32>
    %c3 = arith.constant 3 : index
    %c0_23 = arith.constant 0 : index
    %36 = vector.load %arg4[%c3, %c0_23] : memref<4x128xf32, #tpu.memory_space<vmem>>, vector<1x128xf32>
    %37 = vector.broadcast %36 : vector<1x128xf32> to vector<512x128xf32>
    %38 = arith.addf %35, %37 : vector<512x128xf32>
    %39 = arith.negf %38 : vector<512x128xf32>
    %40 = math.exp %39 : vector<512x128xf32>
    %cst_24 = arith.constant 1.000000e+00 : f32
    %41 = vector.broadcast %cst_24 : f32 to vector<512x128xf32>
    %42 = arith.addf %41, %40 : vector<512x128xf32>
    %43 = arith.divf %41, %42 : vector<512x128xf32>
    %c0_25 = arith.constant 0 : index
    %c0_26 = arith.constant 0 : index
    %44 = vector.load %arg5[%c0_25, %c0_26] : memref<512x128xf32, #tpu.memory_space<vmem>>, vector<512x128xf32>
    tpu.vector_store %arg5[%c0_25, %c0_26], %43 {strides = array<i32>} : memref<512x128xf32, #tpu.memory_space<vmem>>, vector<512x128xf32>,
    return
  }
  func.func @transform_0(%arg0: i32) -> (i32, i32) {
    %c0_i32 = arith.constant 0 : i32
    %c0_i32_0 = arith.constant 0 : i32
    return %arg0, %c0_i32 : i32, i32
  }
  func.func @transform_1(%arg0: i32) -> (i32, i32) {
    %c0_i32 = arith.constant 0 : i32
    %c0_i32_0 = arith.constant 0 : i32
    %c0_i32_1 = arith.constant 0 : i32
    return %c0_i32, %c0_i32_0 : i32, i32
  }
  func.func @transform_2(%arg0: i32) -> (i32, i32, i32) {
    %c0_i32 = arith.constant 0 : i32
    %c0_i32_0 = arith.constant 0 : i32
    %c0_i32_1 = arith.constant 0 : i32
    %c0_i32_2 = arith.constant 0 : i32
    return %c0_i32, %c0_i32_0, %c0_i32_1 : i32, i32, i32
  }
  func.func @transform_3(%arg0: i32) -> (i32, i32) {
    %c0_i32 = arith.constant 0 : i32
    %c0_i32_0 = arith.constant 0 : i32
    %c0_i32_1 = arith.constant 0 : i32
    return %c0_i32, %c0_i32_0 : i32, i32
  }
  func.func @transform_4(%arg0: i32) -> (i32, i32) {
    %c0_i32 = arith.constant 0 : i32
    %c0_i32_0 = arith.constant 0 : i32
    return %arg0, %c0_i32 : i32, i32
  }
}

</mosaic_0001>

<bundles_post_ra>
// kernel: inr_forward.1
= control target key start
LH: loop header
LB: loop body
LE: loop exit
PB: predicated region body
PF: predicated region fallthrough
CT: control target
= control target key end

     0   :  { %s3857_s15 = smov 0   ;;  %s5244_s0 = inlined_call_operand.vmem [shape: f32[2048,2], index: 0, kind: input, shape index: {}]   ;;  %s5245_s1 = inlined_call_operand.vmem [shape: f32[2,128], index: 1, kind: input, shape index: {}]   ;;  %s5246_s2 = inlined_call_operand.vmem [shape: f32[3,128,128], index: 2, kind: input, shape index: {}]   ;;  %s5247_s3 = inlined_call_operand.vmem [shape: f32[4,128], index: 3, kind: input, shape index: {}]   ;;  %s5248_s4 = inlined_call_operand.vmem [shape: f32[2048,128], index: 4, kind: output, shape index: {}]  }
   0x1 LB: > { %s3314_s16 = sadd.s32 4294967295, %s3828_s15   ;;  %p3318_p0 = scmp.ge.s32.totalorder %s3828_s15, 1  ;;  %s3828_s15 = sphi %s3857_s15, %s14_s15  }
   0x2   : > { %p163_p1 = scmp.lt.s32.totalorder %s3828_s15, 5 }
   0x4   : > { %p164_p2 = pnand %p3318_p0, %p163_p1 }
   0x5   : > { %s3319_s17 = sshll.u32 (!%p164_p2), %s3314_s16, 6 }
   0x6   : > { %167 = sbr.rel (%p164_p2) target bundleno = 989 (0x3dd), region = 36  ;;  %p190_p3 = scmp.lt.s32.totalorder (!%p164_p2), %s3319_s17, 255 }
   0xb   : > { %v3830_v0 = vmov 0   ;;  %s5262_s17 = smov (!%p190_p3, %s3319_s17), 255  ;;  %v3831_v4 = vmov 1   ;;  %v1182_v16 = vld [vmem:[%s5246_s2 + $0x78] sm:$0xff]  ;;  %v1181_v17 = vld [vmem:[%s5246_s2 + $0x70] sm:$0xff]  ;;  %v1180_v18 = vld [vmem:[%s5246_s2 + $0x68] sm:$0xff] }
   0xc   : > { %3481 = vset.pattern.permute.xlu1 %v3830_v0  ;;  %3479 = vset.pattern.permute.xlu0 %v3830_v0  ;;  %s3320_s18 = sshll.u32 %s5262_s17, 3  ;;  %v1179_v19 = vld [vmem:[%s5246_s2 + $0x60] sm:$0xff]  ;;  %v1178_v20 = vld [vmem:[%s5246_s2 + $0x58] sm:$0xff]  ;;  %v1177_v22 = vld [vmem:[%s5246_s2 + $0x50] sm:$0xff] }
   0xd   : > { %3483 = vset.pattern.permute.xlu2 %v3830_v0  ;;  %s3876_s21 = scalar_lea.vmem %s5244_s0, %s3320_s18  ;;  %1185 = vmatpush.msra.mxu0 %v1182_v16  ;;  %v1176_v23 = vld [vmem:[%s5246_s2 + $0x48] sm:$0xff]  ;;  %v1175_v24 = vld [vmem:[%s5246_s2 + $0x40] sm:$0xff]  ;;  %v1174_v26 = vld [vmem:[%s5246_s2 + $0x38] sm:$0xff]  ;;  %s4688_s29 = scalar_lea.vmem %s5248_s4, %s3320_s18 }
   0xe   : > { %v202_v1 = vld [vmem:[%s3876_s21 + $0x8] sm:$0xff]  ;;  %v201_v2 = vld [vmem:[%s3876_s21] sm:$0xff]  ;;  %v203_v3 = vld [vmem:[%s3876_s21 + $0x10] sm:$0xff]  ;;  %3421 = vmatpush.msra.mxu3 %v1182_v16 }
   0xf   : > { %273 = vperm.xlu1 %3481, %v202_v1   ;;  %268 = vperm.xlu0 %3479, %v201_v2   ;;  %v204_v5 = vld [vmem:[%s3876_s21 + $0x18] sm:$0xff]  ;;  %v205_v6 = vld [vmem:[%s3876_s21 + $0x20] sm:$0xff]  ;;  %v207_v7 = vld [vmem:[%s3876_s21 + $0x30] sm:$0xff] }
  0x10   : > { %278 = vperm.xlu2 %3483, %v203_v3   ;;  %v206_v8 = vld [vmem:[%s3876_s21 + $0x28] sm:$0xff]  ;;  %v208_v10 = vld [vmem:[%s3876_s21 + $0x38] sm:$0xff]  ;;  %v209_v12 = vld [vmem:[%s3876_s21 + $0x40] sm:$0xff]  ;;  %1186 = vmatpush.msra.mxu0 %v1181_v17 }
  0x11   : > { %v210_v9 = vld [vmem:[%s3876_s21 + $0x48] sm:$0xff]  ;;  %v212_v11 = vld [vmem:[%s3876_s21 + $0x58] sm:$0xff]  ;;  %v3903_v13 = vld [vmem:[%s3876_s21 + $0x70] sm:$0xff]  ;;  %3422 = vmatpush.msra.mxu3 %v1181_v17 }
  0x12   : > { %v211_v14 = vld [vmem:[%s3876_s21 + $0x50] sm:$0xff]  ;;  %v3911_v15 = vld [vmem:[%s3876_s21 + $0x80] sm:$0xff]  ;;  %1187 = vmatpush.msra.mxu0 %v1180_v18  ;;  %v214_v25 = vld [vmem:[%s3876_s21 + $0x68] sm:$0xff] }
  0x13   : > { %3423 = vmatpush.msra.mxu3 %v1180_v18  ;;  %v213_v21 = vld [vmem:[%s3876_s21 + $0x60] sm:$0xff]  ;;  %v1173_v27 = vld [vmem:[%s5246_s2 + $0x30] sm:$0xff]  ;;  %v220_v28 = vld [vmem:[%s3876_s21 + $0x98] sm:$0xff] }
  0x14   : > { %1188 = vmatpush.msra.mxu0 %v1179_v19  ;;  %v1172_v29 = vld [vmem:[%s5246_s2 + $0x28] sm:$0xff]  ;;  %v1171_v30 = vld [vmem:[%s5246_s2 + $0x20] sm:$0xff]  ;;  %v1170_v32 = vld [vmem:[%s5246_s2 + $0x18] sm:$0xff] }
  0x15   : > { %3424 = vmatpush.msra.mxu3 %v1179_v19  ;;  %v1169_v33 = vld [vmem:[%s5246_s2 + $0x10] sm:$0xff]  ;;  %v216_v34 = vld [vmem:[%s3876_s21 + $0x78] sm:$0xff]  ;;  %v1168_v35 = vld [vmem:[%s5246_s2 + $0x8] sm:$0xff] }
  0x16   : > { %1189 = vmatpush.msra.mxu0 %v1178_v20  ;;  %v222_v36 = vld [vmem:[%s3876_s21 + $0xa8] sm:$0xff]  ;;  %v1167_v37 = vld [vmem:[%s5246_s2] sm:$0xff]  ;;  %v219_v43 = vld [vmem:[%s3876_s21 + $0x90] sm:$0xff] }
  0x17   : > { %3482 = vset.pattern.permute.xlu1 %v3831_v4  ;;  %3480 = vset.pattern.permute.xlu0 %v3831_v4  ;;  %v218_v39 = vld [vmem:[%s3876_s21 + $0x88] sm:$0xff]  ;;  %v3987_v45 = vld [vmem:[%s5245_s1] ss:$0 sm:$0xff]  ;;  %v3995_v47 = vld [vmem:[%s5245_s1 + $0x1] ss:$0 sm:$0xff] }
  0x18   : > { %657 = vperm.xlu1 %3482, %v202_v1   ;;  %653 = vperm.xlu0 %3480, %v201_v2   ;;  %v3990_v46 = vld [vmem:[%s3876_s21 + $0xc0] sm:$0xff]  ;;  %v4015_v61 = vld [vmem:[%s3876_s21 + $0xd0] sm:$0xff] }
  0x19   : > { %3484 = vset.pattern.permute.xlu2 %v3831_v4  ;;  %3425 = vmatpush.msra.mxu3 %v1178_v20  ;;  %v4004_v54 = vld [vmem:[%s5247_s3] ss:$0 sm:$0xff]  ;;  %v224_v20 = vld [vmem:[%s3876_s21 + $0xb8] sm:$0xff] }
  0x1a   : > { %661 = vperm.xlu2 %3484, %v203_v3   ;;  %1190 = vmatpush.msra.mxu0 %v1177_v22  ;;  %v221_v60 = vld [vmem:[%s3876_s21 + $0xa0] sm:$0xff] }
  0x1b   : > { %3426 = vmatpush.msra.mxu3 %v1177_v22 }
  0x1c   : > { %1191 = vmatpush.msra.mxu0 %v1176_v23 }
  0x1d   : > { %3427 = vmatpush.msra.mxu3 %v1176_v23 }
  0x1e   : > { %1192 = vmatpush.msra.mxu0 %v1175_v24 }
  0x1f   : > { %3428 = vmatpush.msra.mxu3 %v1175_v24  ;;  %v4037_v24 = vld [vmem:[%s3876_s21 + $0x180] sm:$0xff] }
  0x20   : > { %3485 = vset.pattern.permute.xlu1 %v3830_v0  ;;  %3486 = vset.pattern.permute.xlu0 %v3830_v0 }
  0x21   : > { %283 = vperm.xlu1 %3485, %v204_v5   ;;  %288 = vperm.xlu0 %3486, %v205_v6  }
  0x22   : > { %665 = vperm.xlu2 %3484, %v204_v5   ;;  %1193 = vmatpush.msra.mxu0 %v1174_v26 }
  0x23   : > { %3429 = vmatpush.msra.mxu3 %v1174_v26 }
  0x24   : > { %1194 = vmatpush.msra.mxu0 %v1173_v27 }
  0x25   : > { %3430 = vmatpush.msra.mxu3 %v1173_v27 }
  0x26   : > { %1195 = vmatpush.msra.mxu0 %v1172_v29 }
  0x27   : > { %3431 = vmatpush.msra.mxu3 %v1172_v29 }
  0x28   : > { %1196 = vmatpush.msra.mxu0 %v1171_v30 }
  0x29   : > { %3487 = vset.pattern.permute.xlu1 %v3831_v4  ;;  %3489 = vset.pattern.permute.xlu0 %v3831_v4 }
  0x2a   : > { %669 = vperm.xlu1 %3487, %v205_v6   ;;  %677 = vperm.xlu0 %3489, %v207_v7  }
  0x2b   : > { %3488 = vset.pattern.permute.xlu2 %v3830_v0  ;;  %3432 = vmatpush.msra.mxu3 %v1171_v30 }
  0x2c   : > { %293 = vperm.xlu2 %3488, %v206_v8   ;;  %1197 = vmatpush.msra.mxu0 %v1170_v32 }
  0x2d   : > { %3433 = vmatpush.msra.mxu3 %v1170_v32 }
  0x2e   : > { %1198 = vmatpush.msra.mxu0 %v1169_v33 }
  0x2f   : > { %3434 = vmatpush.msra.mxu3 %v1169_v33  ;;  %v226_v33 = vld [vmem:[%s3876_s21 + $0xc8] sm:$0xff] }
  0x30   : > { %1199 = vmatpush.msra.mxu0 %v1168_v35 }
  0x31   : > { %3435 = vmatpush.msra.mxu3 %v1168_v35 }
  0x32   : > { %673 = vperm.xlu1 %3487, %v206_v8   ;;  %3492 = vset.pattern.permute.xlu0 %v3830_v0 }
  0x33   : > { %313 = vperm.xlu0 %3492, %v210_v9   ;;  %1200 = vmatpush.msra.mxu0 %v1167_v37 }
  0x34   : > { %298 = vperm.xlu2 %3488, %v207_v7   ;;  %3436 = vmatpush.msra.mxu3 %v1167_v37 }
  0x3a   : > { %3490 = vset.pattern.permute.xlu1 %v3830_v0 }
  0x3b   : > { %303 = vperm.xlu1 %3490, %v208_v10   ;;  %3495 = vset.pattern.permute.xlu0 %v3831_v4 }
  0x3c   : > { %3491 = vset.pattern.permute.xlu2 %v3831_v4  ;;  %697 = vperm.xlu0 %3495, %v212_v11  }
  0x3d   : > { %681 = vperm.xlu2 %3491, %v208_v10   ;;  %v223_v10 = vld [vmem:[%s3876_s21 + $0xb0] sm:$0xff] }
  0x43   : > { %308 = vperm.xlu1 %3490, %v209_v12  }
  0x44   : > { %3498 = vset.pattern.permute.xlu0 %v3830_v0 }
  0x45   : > { %685 = vperm.xlu2 %3491, %v209_v12   ;;  %338 = vperm.xlu0 %3498, %v3903_v13  }
  0x4b   : > { %3493 = vset.pattern.permute.xlu1 %v3831_v4 }
  0x4c   : > { %689 = vperm.xlu1 %3493, %v210_v9  }
  0x4d   : > { %3494 = vset.pattern.permute.xlu2 %v3830_v0  ;;  %3501 = vset.pattern.permute.xlu0 %v3831_v4 }
  0x4e   : > { %318 = vperm.xlu2 %3494, %v211_v14   ;;  %717 = vperm.xlu0 %3501, %v3911_v15  }
  0x54   : > { %693 = vperm.xlu1 %3493, %v211_v14  }
  0x56   : > { %323 = vperm.xlu2 %3494, %v212_v11   ;;  %3504 = vset.pattern.permute.xlu0 %v3830_v0 }
  0x57   : > { %363 = vperm.xlu0 %3504, %v220_v28  }
  0x5c   : > { %3496 = vset.pattern.permute.xlu1 %v3830_v0 }
  0x5d   : > { %328 = vperm.xlu1 %3496, %v213_v21  }
  0x5e   : > { %3497 = vset.pattern.permute.xlu2 %v3831_v4 }
  0x5f   : > { %701 = vperm.xlu2 %3497, %v213_v21   ;;  %3507 = vset.pattern.permute.xlu0 %v3831_v4 }
  0x60   : > { %737 = vperm.xlu0 %3507, %v222_v36  }
  0x65   : > { %333 = vperm.xlu1 %3496, %v214_v25  }
  0x67   : > { %705 = vperm.xlu2 %3497, %v214_v25  }
  0x68   : > { %3510 = vset.pattern.permute.xlu0 %v3830_v0 }
  0x69   : > { %388 = vperm.xlu0 %3510, %v3990_v46  }
  0x6a   : > { %v3956_v31 = vpop.permute.xlu2 %278 }
  0x6b   : > { %v589_v63 = vmul.f32 %v3987_v45, %v3956_v31 }
  0x6d   : > { %3499 = vset.pattern.permute.xlu1 %v3831_v4 }
  0x6e   : > { %709 = vperm.xlu1 %3499, %v3903_v13  }
  0x6f   : > { %3500 = vset.pattern.permute.xlu2 %v3830_v0 }
  0x70   : > { %343 = vperm.xlu2 %3500, %v216_v34  }
  0x71   : > { %3513 = vset.pattern.permute.xlu0 %v3831_v4 }
  0x72   : > { %757 = vperm.xlu0 %3513, %v4015_v61  }
  0x74   : > { %v662_v38 = vpop.permute.xlu2 %661 }
  0x75   : > { %v911_v1 = vmul.f32 %v3995_v47, %v662_v38 }
  0x76   : > { %713 = vperm.xlu1 %3499, %v216_v34   ;;  %v230_v34 = vld [vmem:[%s3876_s21 + $0xe8] sm:$0xff] }
  0x77   : > { %v975_v5 = vadd.f32 %v911_v1, %v589_v63  ;;  %v4079_v63 = vld [vmem:[%s3876_s21 + $0x1a0] sm:$0xff] }
  0x78   : > { %348 = vperm.xlu2 %3500, %v3911_v15  }
  0x79   : > { %v1041_v9 = vadd.f32 %v4004_v54, %v975_v5 }
  0x7a   : > { %845 = vperm.xlu0 %3513, %v4037_v24  }
  0x7b   : > { %v1105_v14 = vmax.f32 %v1041_v9, 0.0 }
  0x7c   : > { %v666_v40 = vpop.permute.xlu2 %665 }
  0x7d   : > { %v912_v11 = vmul.f32 %v3995_v47, %v666_v40 }
  0x7e   : > { %3502 = vset.pattern.permute.xlu1 %v3830_v0 }
  0x7f   : > { %353 = vperm.xlu1 %3502, %v218_v39  }
  0x80   : > { %3503 = vset.pattern.permute.xlu2 %v3831_v4 }
  0x81   : > { %v274_v41 = vpop.permute.xlu1 %273  ;;  %v269_v42 = vpop.permute.xlu0 %268  ;;  %721 = vperm.xlu2 %3503, %v218_v39  }
  0x82   : > { %v587_v48 = vmul.f32 %v3987_v45, %v269_v42  ;;  %v588_v56 = vmul.f32 %v3987_v45, %v274_v41  ;;  %3518 = vset.pattern.permute.xlu0 %v3830_v0 }
  0x83   : > { %413 = vperm.xlu0 %3518, %v230_v34  }
  0x86   : > { %v3982_v44 = vpop.permute.xlu2 %293 }
  0x87   : > { %358 = vperm.xlu1 %3502, %v219_v43  }
  0x89   : > { %725 = vperm.xlu2 %3503, %v219_v43  }
  0x8a   : > { %v658_v49 = vpop.permute.xlu1 %657  ;;  %v654_v50 = vpop.permute.xlu0 %653 }
  0x8b   : > { %v909_v51 = vmul.f32 %v3995_v47, %v654_v50  ;;  %v910_v52 = vmul.f32 %v3995_v47, %v658_v49 }
  0x8d   : > { %v973_v53 = vadd.f32 %v909_v51, %v587_v48  ;;  %v974_v58 = vadd.f32 %v910_v52, %v588_v56  ;;  %v228_v48 = vld [vmem:[%s3876_s21 + $0xd8] sm:$0xff]  ;;  %v4068_v52 = vld [vmem:[%s3876_s21 + $0x100] sm:$0xff] }
  0x8e   : > { %v4006_v55 = vpop.permute.xlu2 %298  ;;  %428 = vperm.xlu0 %3518, %v4068_v52  }
  0x8f   : > { %3505 = vset.pattern.permute.xlu1 %v3831_v4  ;;  %v1039_v57 = vadd.f32 %v4004_v54, %v973_v53  ;;  %v1040_v2 = vadd.f32 %v4004_v54, %v974_v58  ;;  %v593_v35 = vmul.f32 %v3987_v45, %v4006_v55  ;;  %v229_v58 = vld [vmem:[%s3876_s21 + $0xe0] sm:$0xff] }
  0x90   : > { %729 = vperm.xlu1 %3505, %v220_v28   ;;  %v592_v28 = vmul.f32 %v3987_v45, %v3982_v44 }
  0x91   : > { %v1103_v59 = vmax.f32 %v1039_v57, 0.0  ;;  %3506 = vset.pattern.permute.xlu2 %v3830_v0  ;;  %v1104_v6 = vmax.f32 %v1040_v2, 0.0 }
  0x92   : > { %368 = vperm.xlu2 %3506, %v221_v60  }
  0x93   : > { %v284_v62 = vpop.permute.xlu1 %283  ;;  %1201 = vmatmul.f32.vlgmr.msra.gmra.mxu0 %v1103_v59  ;;  %v289_v15 = vpop.permute.xlu0 %288 }
  0x94   : > { %v590_v8 = vmul.f32 %v3987_v45, %v284_v62  ;;  %v591_v17 = vmul.f32 %v3987_v45, %v289_v15 }
  0x96   : > { %v976_v13 = vadd.f32 %v912_v11, %v590_v8  ;;  %528 = vperm.xlu0 %3518, %v4079_v63   ;;  %v231_v11 = vld [vmem:[%s3876_s21 + $0xf0] sm:$0xff] }
  0x97   : > { %v682_v3 = vpop.permute.xlu2 %681 }
  0x98   : > { %733 = vperm.xlu1 %3505, %v221_v60   ;;  %v1042_v19 = vadd.f32 %v4004_v54, %v976_v13  ;;  %v916_v42 = vmul.f32 %v3995_v47, %v682_v3  ;;  %v4097_v13 = vld [vmem:[%s3876_s21 + $0x108] sm:$0xff] }
  0x9a   : > { %373 = vperm.xlu2 %3506, %v222_v36   ;;  %v1106_v23 = vmax.f32 %v1042_v19, 0.0  ;;  %v3336_v19 = vld [vmem:[%s5246_s2 + $0xe8] sm:$0xff] }
  0x9b   : > { %1204 = vmatmul.f32.gmra.mxu0 %v1104_v6 }
  0x9c   : > { %v670_v7 = vpop.permute.xlu1 %669  ;;  %v678_v32 = vpop.permute.xlu0 %677 }
  0x9d   : > { %v913_v18 = vmul.f32 %v3995_v47, %v670_v7  ;;  %v915_v36 = vmul.f32 %v3995_v47, %v678_v32 }
  0x9e   : > { %3525 = vset.pattern.permute.xlu0 %v3831_v4 }
  0x9f   : > { %v4026_v12 = vpop.permute.xlu2 %685  ;;  %v977_v22 = vadd.f32 %v913_v18, %v591_v17  ;;  %v979_v39 = vadd.f32 %v915_v36, %v593_v35  ;;  %785 = vperm.xlu0 %3525, %v4097_v13  }
  0xa0   : > { %3508 = vset.pattern.permute.xlu1 %v3830_v0  ;;  %v917_v57 = vmul.f32 %v3995_v47, %v4026_v12  ;;  %v3338_v12 = vld [vmem:[%s5246_s2 + $0xf8] sm:$0xff] }
  0xa1   : > { %378 = vperm.xlu1 %3508, %v223_v10   ;;  %v1043_v27 = vadd.f32 %v4004_v54, %v977_v22  ;;  %v1045_v44 = vadd.f32 %v4004_v54, %v979_v39  ;;  %1477 = vmatpush.msra.mxu1 %v3338_v12  ;;  %v3329_v39 = vld [vmem:[%s5246_s2 + $0xb0] sm:$0xff] }
  0xa2   : > { %3509 = vset.pattern.permute.xlu2 %v3831_v4  ;;  %3437 = vmatpush.msrb.mxu3 %v3338_v12 }
  0xa3   : > { %1207 = vmatmul.f32.gmra.mxu0 %v1105_v14  ;;  %741 = vperm.xlu2 %3509, %v223_v10   ;;  %v1107_v31 = vmax.f32 %v1043_v27, 0.0  ;;  %v1109_v50 = vmax.f32 %v1045_v44, 0.0  ;;  %v3337_v14 = vld [vmem:[%s5246_s2 + $0xf0] sm:$0xff]  ;;  %v250_v44 = vld [vmem:[%s3876_s21 + $0x188] sm:$0xff] }
  0xa4   : > { %v674_v16 = vpop.permute.xlu1 %673  ;;  %1478 = vmatpush.msra.mxu1 %v3337_v14  ;;  %3438 = vmatpush.msrb.mxu3 %v3337_v14 }
  0xa5   : > { %v914_v25 = vmul.f32 %v3995_v47, %v674_v16  ;;  %v314_v62 = vpop.permute.xlu0 %313 }
  0xa6   : > { %v596_v1 = vmul.f32 %v3987_v45, %v314_v62  ;;  %1479 = vmatpush.msra.mxu1 %v3336_v19  ;;  %3439 = vmatpush.msrb.mxu3 %v3336_v19 }
  0xa7   : > { %v978_v30 = vadd.f32 %v914_v25, %v592_v28  ;;  %v3333_v28 = vld [vmem:[%s5246_s2 + $0xd0] sm:$0xff] }
  0xa8   : > { %v4034_v21 = vpop.permute.xlu2 %318 }
  0xa9   : > { %383 = vperm.xlu1 %3508, %v224_v20   ;;  %v1044_v38 = vadd.f32 %v4004_v54, %v978_v30  ;;  %v597_v15 = vmul.f32 %v3987_v45, %v4034_v21  ;;  %v3335_v21 = vld [vmem:[%s5246_s2 + $0xe0] sm:$0xff]  ;;  %v3332_v30 = vld [vmem:[%s5246_s2 + $0xc8] sm:$0xff] }
  0xaa   : > { %1480 = vmatpush.msra.mxu1 %v3335_v21  ;;  %3440 = vmatpush.msrb.mxu3 %v3335_v21 }
  0xab   : > { %1210 = vmatmul.f32.gmra.mxu0 %v1106_v23  ;;  %745 = vperm.xlu2 %3509, %v224_v20   ;;  %v1108_v40 = vmax.f32 %v1044_v38, 0.0  ;;  %v3334_v23 = vld [vmem:[%s5246_s2 + $0xd8] sm:$0xff] }
  0xac   : > { %1481 = vmatpush.msra.mxu1 %v3334_v23  ;;  %3441 = vmatpush.msrb.mxu3 %v3334_v23  ;;  %v3330_v38 = vld [vmem:[%s5246_s2 + $0xb8] sm:$0xff] }
  0xad   : > { %v304_v26 = vpop.permute.xlu1 %303 }
  0xae   : > { %v594_v43 = vmul.f32 %v3987_v45, %v304_v26  ;;  %v698_v20 = vpop.permute.xlu0 %697  ;;  %1482 = vmatpush.msra.mxu1 %v3333_v28  ;;  %3442 = vmatpush.msrb.mxu3 %v3333_v28  ;;  %v235_v28 = vld [vmem:[%s3876_s21 + $0x110] sm:$0xff] }
  0xaf   : > { %v920_v26 = vmul.f32 %v3995_v47, %v698_v20  ;;  %v252_v20 = vld [vmem:[%s3876_s21 + $0x198] sm:$0xff] }
  0xb0   : > { %v4044_v29 = vpop.permute.xlu2 %323  ;;  %v980_v49 = vadd.f32 %v916_v42, %v594_v43  ;;  %1483 = vmatpush.msra.mxu1 %v3332_v30  ;;  %3443 = vmatpush.msrb.mxu3 %v3332_v30 }
  0xb1   : > { %3511 = vset.pattern.permute.xlu1 %v3831_v4  ;;  %v598_v25 = vmul.f32 %v3987_v45, %v4044_v29 }
  0xb2   : > { %749 = vperm.xlu1 %3511, %v3990_v46   ;;  %v1046_v55 = vadd.f32 %v4004_v54, %v980_v49 }
  0xb3   : > { %1213 = vmatmul.f32.gmra.mxu0 %v1107_v31  ;;  %3512 = vset.pattern.permute.xlu2 %v3830_v0  ;;  %v984_v29 = vadd.f32 %v920_v26, %v598_v25 }
  0xb4   : > { %393 = vperm.xlu2 %3512, %v226_v33   ;;  %v1110_v60 = vmax.f32 %v1046_v55, 0.0 }
  0xb5   : > { %v309_v37 = vpop.permute.xlu1 %308 }
  0xb6   : > { %v595_v53 = vmul.f32 %v3987_v45, %v309_v37  ;;  %v1050_v37 = vadd.f32 %v4004_v54, %v984_v29 }
  0xb7   : > { %v339_v62 = vpop.permute.xlu0 %338 }
  0xb8   : > { %v981_v59 = vadd.f32 %v917_v57, %v595_v53  ;;  %v1114_v43 = vmax.f32 %v1050_v37, 0.0  ;;  %v3326_v53 = vld [vmem:[%s5246_s2 + $0x98] sm:$0xff] }
  0xb9   : > { %v4056_v41 = vpop.permute.xlu2 %701 }
  0xba   : > { %753 = vperm.xlu1 %3511, %v226_v33   ;;  %v1047_v3 = vadd.f32 %v4004_v54, %v981_v59  ;;  %v232_v33 = vld [vmem:[%s3876_s21 + $0xf8] sm:$0xff]  ;;  %v921_v35 = vmul.f32 %v3995_v47, %v4056_v41 }
  0xbb   : > { %1216 = vmatmul.f32.gmra.mxu0 %v1108_v40  ;;  %v3328_v40 = vld [vmem:[%s5246_s2 + $0xa8] sm:$0xff] }
  0xbc   : > { %398 = vperm.xlu2 %3512, %v4015_v61   ;;  %v1111_v7 = vmax.f32 %v1047_v3, 0.0 }
  0xbe   : > { %v690_v46 = vpop.permute.xlu1 %689 }
  0xbf   : > { %v918_v2 = vmul.f32 %v3995_v47, %v690_v46  ;;  %v3327_v46 = vld [vmem:[%s5246_s2 + $0xa0] sm:$0xff] }
  0xc1   : > { %v4063_v51 = vpop.permute.xlu2 %705  ;;  %v982_v6 = vadd.f32 %v918_v2, %v596_v1  ;;  %v601_v2 = vmul.f32 %v3987_v45, %v339_v62 }
  0xc2   : > { %3514 = vset.pattern.permute.xlu1 %v3830_v0  ;;  %v922_v55 = vmul.f32 %v3995_v47, %v4063_v51  ;;  %v3323_v51 = vld [vmem:[%s5246_s2 + $0x80] sm:$0xff] }
  0xc3   : > { %403 = vperm.xlu1 %3514, %v228_v48   ;;  %1219 = vmatmul.f32.gmra.mxu0 %v1109_v50  ;;  %v1048_v10 = vadd.f32 %v4004_v54, %v982_v6  ;;  %v251_v6 = vld [vmem:[%s3876_s21 + $0x190] sm:$0xff] }
  0xc4   : > { %3515 = vset.pattern.permute.xlu2 %v3831_v4 }
  0xc5   : > { %761 = vperm.xlu2 %3515, %v228_v48   ;;  %v1112_v18 = vmax.f32 %v1048_v10, 0.0 }
  0xc6   : > { %v694_v56 = vpop.permute.xlu1 %693 }
  0xc7   : > { %v919_v9 = vmul.f32 %v3995_v47, %v694_v56  ;;  %v3325_v56 = vld [vmem:[%s5246_s2 + $0x90] sm:$0xff] }
  0xc9   : > { %v983_v17 = vadd.f32 %v919_v9, %v597_v15 }
  0xca   : > { %v4076_v61 = vpop.permute.xlu2 %343 }
  0xcb   : > { %408 = vperm.xlu1 %3514, %v229_v58   ;;  %1222 = vmatmul.f32.gmra.mxu0 %v1110_v60  ;;  %v1049_v27 = vadd.f32 %v4004_v54, %v983_v17  ;;  %v3324_v60 = vld [vmem:[%s5246_s2 + $0x88] sm:$0xff] }
  0xcd   : > { %765 = vperm.xlu2 %3515, %v229_v58   ;;  %v1113_v32 = vmax.f32 %v1049_v27, 0.0 }
  0xcf   : > { %v329_v5 = vpop.permute.xlu1 %328 }
  0xd0   : > { %v599_v36 = vmul.f32 %v3987_v45, %v329_v5 }
  0xd2   : > { %v4085_v8 = vpop.permute.xlu2 %348  ;;  %v985_v42 = vadd.f32 %v921_v35, %v599_v36 }
  0xd3   : > { %3516 = vset.pattern.permute.xlu1 %v3831_v4  ;;  %1225 = vmatmul.f32.gmra.mxu0 %v1111_v7  ;;  %v4183_v7 = vld [vmem:[%s3876_s21 + $0x1a8] sm:$0xff]  ;;  %v603_v21 = vmul.f32 %v3987_v45, %v4085_v8 }
  0xd4   : > { %769 = vperm.xlu1 %3516, %v230_v34   ;;  %v1051_v50 = vadd.f32 %v4004_v54, %v985_v42  ;;  %865 = vperm.xlu0 %3525, %v4183_v7  }
  0xd5   : > { %3517 = vset.pattern.permute.xlu2 %v3830_v0 }
  0xd6   : > { %418 = vperm.xlu2 %3517, %v231_v11   ;;  %v1115_v59 = vmax.f32 %v1051_v50, 0.0 }
  0xd7   : > { %v4104_v16 = vpop.permute.xlu1 %333 }
  0xd8   : > { %v600_v49 = vmul.f32 %v3987_v45, %v4104_v16 }
  0xda   : > { %v986_v57 = vadd.f32 %v922_v55, %v600_v49  ;;  %v4234_v55 = vld [vmem:[%s3876_s21 + $0x128] sm:$0xff] }
  0xdb   : > { %1228 = vmatmul.f32.gmra.mxu0 %v1112_v18  ;;  %v4110_v22 = vpop.permute.xlu2 %721  ;;  %v718_v18 = vpop.permute.xlu0 %717 }
  0xdc   : > { %773 = vperm.xlu1 %3516, %v231_v11   ;;  %v1052_v5 = vadd.f32 %v4004_v54, %v986_v57  ;;  %v925_v23 = vmul.f32 %v3995_v47, %v718_v18  ;;  %v926_v8 = vmul.f32 %v3995_v47, %v4110_v22 }
  0xde   : > { %508 = vperm.xlu2 %3517, %v4037_v24   ;;  %v3331_v24 = vld [vmem:[%s5246_s2 + $0xc0] sm:$0xff]  ;;  %v1116_v11 = vmax.f32 %v1052_v5, 0.0 }
  0xdf   : > { %1484 = vmatpush.msra.mxu1 %v3331_v24  ;;  %3444 = vmatpush.msrb.mxu3 %v3331_v24  ;;  %v4215_v24 = vld [vmem:[%s3876_s21 + $0x130] sm:$0xff] }
  0xe0   : > { %v710_v31 = vpop.permute.xlu1 %709  ;;  %805 = vperm.xlu0 %3525, %v4215_v24  }
  0xe1   : > { %1485 = vmatpush.msra.mxu1 %v3330_v38  ;;  %3445 = vmatpush.msrb.mxu3 %v3330_v38  ;;  %v923_v3 = vmul.f32 %v3995_v47, %v710_v31  ;;  %v4209_v31 = vld [vmem:[%s5247_s3 + $0x1] ss:$0 sm:$0xff] }
  0xe3   : > { %1231 = vmatmul.f32.gmra.mxu0 %v1113_v32  ;;  %v4130_v34 = vpop.permute.xlu2 %725  ;;  %1486 = vmatpush.msra.mxu1 %v3329_v39  ;;  %v987_v9 = vadd.f32 %v923_v3, %v601_v2  ;;  %v364_v22 = vpop.permute.xlu0 %363 }
  0xe4   : > { %3519 = vset.pattern.permute.xlu1 %v3830_v0  ;;  %3446 = vmatpush.msrb.mxu3 %v3329_v39  ;;  %v606_v57 = vmul.f32 %v3987_v45, %v364_v22 }
  0xe5   : > { %423 = vperm.xlu1 %3519, %v232_v33   ;;  %1487 = vmatpush.msra.mxu1 %v3328_v40  ;;  %v1053_v14 = vadd.f32 %v4004_v54, %v987_v9 }
  0xe6   : > { %3520 = vset.pattern.permute.xlu2 %v3831_v4  ;;  %3447 = vmatpush.msrb.mxu3 %v3328_v40 }
  0xe7   : > { %777 = vperm.xlu2 %3520, %v232_v33   ;;  %1488 = vmatpush.msra.mxu1 %v3327_v46  ;;  %v1117_v17 = vmax.f32 %v1053_v14, 0.0 }
  0xe8   : > { %v714_v41 = vpop.permute.xlu1 %713  ;;  %3448 = vmatpush.msrb.mxu3 %v3327_v46  ;;  %3532 = vset.pattern.permute.xlu0 %v3830_v0 }
  0xe9   : > { %1489 = vmatpush.msra.mxu1 %v3326_v53  ;;  %v924_v12 = vmul.f32 %v3995_v47, %v714_v41  ;;  %453 = vperm.xlu0 %3532, %v4234_v55  }
  0xea   : > { %3449 = vmatpush.msrb.mxu3 %v3326_v53  ;;  %v236_v53 = vld [vmem:[%s3876_s21 + $0x118] sm:$0xff] }
  0xeb   : > { %1234 = vmatmul.f32.gmra.mxu0 %v1114_v43  ;;  %1490 = vmatpush.msra.mxu1 %v3325_v56  ;;  %v927_v43 = vmul.f32 %v3995_v47, %v4130_v34 }
  0xec   : > { %v4154_v48 = vpop.permute.xlu2 %368  ;;  %3450 = vmatpush.msrb.mxu3 %v3325_v56 }
  0xed   : > { %513 = vperm.xlu1 %3519, %v250_v44   ;;  %1491 = vmatpush.msra.mxu1 %v3324_v60  ;;  %v607_v14 = vmul.f32 %v3987_v45, %v4154_v48 }
  0xee   : > { %3451 = vmatpush.msrb.mxu3 %v3324_v60 }
  0xef   : > { %849 = vperm.xlu2 %3520, %v250_v44   ;;  %1492 = vmatpush.msra.mxu1 %v3323_v51 }
  0xf0   : > { %3452 = vmatpush.msrb.mxu3 %v3323_v51 }
  0xf1   : > { %v354_v58 = vpop.permute.xlu1 %353 }
  0xf2   : > { %v604_v30 = vmul.f32 %v3987_v45, %v354_v58 }
  0xf3   : > { %1237 = vmatmul.f32.gmra.mxu0 %v1115_v59 }
  0xf4   : > { %v4173_v1 = vpop.permute.xlu2 %373  ;;  %v990_v35 = vadd.f32 %v926_v8, %v604_v30 }
  0xf5   : > { %3521 = vset.pattern.permute.xlu1 %v3831_v4 }
  0xf6   : > { %781 = vperm.xlu1 %3521, %v4068_v52   ;;  %v602_v52 = vmul.f32 %v3987_v45, %v4076_v61  ;;  %v989_v61 = vadd.f32 %v925_v23, %v603_v21  ;;  %v1056_v41 = vadd.f32 %v4004_v54, %v990_v35  ;;  %v608_v21 = vmul.f32 %v3987_v45, %v4173_v1 }
  0xf7   : > { %3522 = vset.pattern.permute.xlu2 %v3830_v0 }
  0xf8   : > { %518 = vperm.xlu2 %3522, %v251_v6   ;;  %v988_v16 = vadd.f32 %v924_v12, %v602_v52  ;;  %v1055_v29 = vadd.f32 %v4004_v54, %v989_v61  ;;  %v1120_v50 = vmax.f32 %v1056_v41, 0.0  ;;  %v237_v12 = vld [vmem:[%s3876_s21 + $0x120] sm:$0xff] }
  0xf9   : > { %v359_v10 = vpop.permute.xlu1 %358 }
  0xfa   : > { %v1054_v25 = vadd.f32 %v4004_v54, %v988_v16  ;;  %v1119_v37 = vmax.f32 %v1055_v29, 0.0  ;;  %v605_v40 = vmul.f32 %v3987_v45, %v359_v10 }
  0xfb   : > { %1240 = vmatmul.f32.gmra.mxu0 %v1116_v11 }
  0xfc   : > { %v991_v46 = vadd.f32 %v927_v43, %v605_v40 }
  0xfd   : > { %v4188_v15 = vpop.permute.xlu2 %741 }
  0xfe   : > { %853 = vperm.xlu1 %3521, %v251_v6   ;;  %v1057_v59 = vadd.f32 %v4004_v54, %v991_v46  ;;  %v931_v35 = vmul.f32 %v3995_v47, %v4188_v15 }
 0x100   : > { %433 = vperm.xlu2 %3522, %v4097_v13   ;;  %v1118_v13 = vmax.f32 %v1054_v25, 0.0  ;;  %v1121_v3 = vmax.f32 %v1057_v59, 0.0 }
 0x102   : > { %v730_v19 = vpop.permute.xlu1 %729 }
 0x103   : > { %1243 = vmatmul.f32.gmra.mxu0 %v1117_v17  ;;  %v928_v58 = vmul.f32 %v3995_v47, %v730_v19  ;;  %v4261_v19 = vld [vmem:[%s3876_s21 + $0x1c8] sm:$0xff] }
 0x104   : > { %553 = vperm.xlu0 %3532, %v4261_v19  }
 0x105   : > { %v4198_v26 = vpop.permute.xlu2 %745  ;;  %v992_v62 = vadd.f32 %v928_v58, %v606_v57 }
 0x106   : > { %3523 = vset.pattern.permute.xlu1 %v3830_v0  ;;  %v932_v59 = vmul.f32 %v3995_v47, %v4198_v26 }
 0x107   : > { %523 = vperm.xlu1 %3523, %v252_v20   ;;  %v1058_v11 = vadd.f32 %v4004_v54, %v992_v62 }
 0x108   : > { %3524 = vset.pattern.permute.xlu2 %v3831_v4 }
 0x109   : > { %857 = vperm.xlu2 %3524, %v252_v20   ;;  %v1122_v18 = vmax.f32 %v1058_v11, 0.0 }
 0x10a   : > { %v734_v27 = vpop.permute.xlu1 %733 }
 0x10b   : > { %1246 = vmatmul.f32.gmra.mxu0 %v1118_v13  ;;  %v929_v10 = vmul.f32 %v3995_v47, %v734_v27  ;;  %v255_v13 = vld [vmem:[%s3876_s21 + $0x1b0] sm:$0xff] }
 0x10d   : > { %v993_v16 = vadd.f32 %v929_v10, %v607_v14 }
 0x10e   : > { %v4212_v32 = vpop.permute.xlu2 %393 }
 0x10f   : > { %438 = vperm.xlu1 %3523, %v235_v28   ;;  %v1059_v25 = vadd.f32 %v4004_v54, %v993_v16  ;;  %v257_v16 = vld [vmem:[%s3876_s21 + $0x1c0] sm:$0xff] }
 0x110   : > { %v1202_v33 = vpop.f32.mrf.mxu0 }
 0x111   : > { %v1203_v36 = vadd.f32 %v4209_v31, %v1202_v33  ;;  %789 = vperm.xlu2 %3524, %v235_v28   ;;  %v1123_v29 = vmax.f32 %v1059_v25, 0.0  ;;  %v4277_v33 = vld [vmem:[%s3876_s21 + $0x150] sm:$0xff]  ;;  %v612_v25 = vmul.f32 %v3987_v45, %v4212_v32 }
 0x112   : > { %478 = vperm.xlu0 %3532, %v4277_v33  }
 0x113   : > { %v4219_v38 = vpop.permute.xlu1 %378  ;;  %1249 = vmatmul.f32.gmra.mxu0 %v1119_v37  ;;  %v1394_v39 = vmax.f32 %v1203_v36, 0.0 }
 0x114   : > { %v609_v36 = vmul.f32 %v3987_v45, %v4219_v38 }
 0x115   : > { %1493 = vmatmul.f32.vlgmr.msra.gmra.mxu1 %v1394_v39 }
 0x116   : > { %v4223_v42 = vpop.permute.xlu2 %398 }
 0x117   : > { %3526 = vset.pattern.permute.xlu1 %v3831_v4 }
 0x118   : > { %861 = vperm.xlu1 %3526, %v4079_v63   ;;  %v1205_v44 = vpop.f32.mrf.mxu0  ;;  %v738_v63 = vpop.permute.xlu0 %737 }
 0x119   : > { %v1206_v49 = vadd.f32 %v4209_v31, %v1205_v44  ;;  %3527 = vset.pattern.permute.xlu2 %v3830_v0  ;;  %v930_v23 = vmul.f32 %v3995_v47, %v738_v63  ;;  %v995_v44 = vadd.f32 %v931_v35, %v609_v36  ;;  %v613_v35 = vmul.f32 %v3987_v45, %v4223_v42 }
 0x11a   : > { %443 = vperm.xlu2 %3527, %v236_v53   ;;  %3539 = vset.pattern.permute.xlu0 %v3831_v4 }
 0x11b   : > { %v4237_v34 = vpop.permute.xlu1 %383  ;;  %1252 = vmatmul.f32.gmra.mxu0 %v1120_v50  ;;  %v1395_v56 = vmax.f32 %v1206_v49, 0.0  ;;  %v994_v8 = vadd.f32 %v930_v23, %v608_v21  ;;  %v256_v50 = vld [vmem:[%s3876_s21 + $0x1b8] sm:$0xff]  ;;  %v1061_v58 = vadd.f32 %v4004_v54, %v995_v44 }
 0x11c   : > { %v610_v63 = vmul.f32 %v3987_v45, %v4237_v34 }
 0x11d   : > { %1496 = vmatmul.f32.gmra.mxu1 %v1395_v56  ;;  %v1060_v22 = vadd.f32 %v4004_v54, %v994_v8  ;;  %v4295_v56 = vld [vmem:[%s3876_s21 + $0x1d0] sm:$0xff] }
 0x11e   : > { %885 = vperm.xlu0 %3539, %v4295_v56  }
 0x11f   : > { %v4242_v60 = vpop.permute.xlu2 %761  ;;  %v1124_v15 = vmax.f32 %v1060_v22, 0.0 }
 0x120   : > { %793 = vperm.xlu1 %3526, %v236_v53   ;;  %v1208_v51 = vpop.f32.mrf.mxu0  ;;  %v4246_v6 = vpop.permute.xlu0 %388 }
 0x121   : > { %v1209_v2 = vadd.f32 %v4209_v31, %v1208_v51  ;;  %v611_v11 = vmul.f32 %v3987_v45, %v4246_v6 }
 0x122   : > { %533 = vperm.xlu2 %3527, %v4183_v7  }
 0x123   : > { %1255 = vmatmul.f32.gmra.mxu0 %v1121_v3  ;;  %v1396_v5 = vmax.f32 %v1209_v2, 0.0  ;;  %v996_v2 = vadd.f32 %v932_v59, %v610_v63  ;;  %v3351_v63 = vld [vmem:[%s5246_s2 + $0x160] sm:$0xff] }
 0x124   : > { %v4248_v9 = vpop.permute.xlu1 %749 }
 0x125   : > { %1499 = vmatmul.f32.gmra.mxu1 %v1396_v5  ;;  %v1125_v5 = vmax.f32 %v1061_v58, 0.0  ;;  %v933_v26 = vmul.f32 %v3995_v47, %v4248_v9  ;;  %v4365_v58 = vld [vmem:[%s3876_s21 + $0x158] sm:$0xff] }
 0x126   : > { %825 = vperm.xlu0 %3539, %v4365_v58  }
 0x127   : > { %v4255_v52 = vpop.permute.xlu2 %765 }
 0x128   : > { %3528 = vset.pattern.permute.xlu1 %v3830_v0  ;;  %v1211_v7 = vpop.f32.mrf.mxu0  ;;  %v4270_v61 = vpop.permute.xlu0 %757 }
 0x129   : > { %v1212_v17 = vadd.f32 %v4209_v31, %v1211_v7  ;;  %448 = vperm.xlu1 %3528, %v237_v12   ;;  %v935_v36 = vmul.f32 %v3995_v47, %v4270_v61  ;;  %v3353_v61 = vld [vmem:[%s5246_s2 + $0x170] sm:$0xff] }
 0x12a   : > { %3529 = vset.pattern.permute.xlu2 %v3831_v4 }
 0x12b   : > { %1258 = vmatmul.f32.gmra.mxu0 %v1122_v18  ;;  %v1397_v20 = vmax.f32 %v1212_v17, 0.0  ;;  %797 = vperm.xlu2 %3529, %v237_v12   ;;  %v1062_v12 = vadd.f32 %v4004_v54, %v996_v2  ;;  %v997_v17 = vadd.f32 %v933_v26, %v611_v11  ;;  %v3348_v26 = vld [vmem:[%s5246_s2 + $0x148] sm:$0xff] }
 0x12c   : > { %v4263_v48 = vpop.permute.xlu1 %753 }
 0x12d   : > { %1502 = vmatmul.f32.gmra.mxu1 %v1397_v20  ;;  %v1126_v20 = vmax.f32 %v1062_v12, 0.0  ;;  %v934_v6 = vmul.f32 %v3995_v47, %v4263_v48  ;;  %v1063_v9 = vadd.f32 %v4004_v54, %v997_v17  ;;  %v3347_v17 = vld [vmem:[%s5246_s2 + $0x140] sm:$0xff] }
 0x12e   : > { %3544 = vset.pattern.permute.xlu0 %v3830_v0 }
 0x12f   : > { %v998_v8 = vadd.f32 %v934_v6, %v612_v25 }
 0x130   : > { %v1214_v27 = vpop.f32.mrf.mxu0  ;;  %v4273_v28 = vpop.permute.xlu2 %418 }
 0x131   : > { %v1215_v30 = vadd.f32 %v4209_v31, %v1214_v27  ;;  %538 = vperm.xlu1 %3528, %v255_v13   ;;  %v846_v39 = vpop.permute.xlu0 %845  ;;  %v240_v27 = vld [vmem:[%s3876_s21 + $0x138] sm:$0xff]  ;;  %v1064_v32 = vadd.f32 %v4004_v54, %v998_v8 }
 0x132   : > { %v957_v40 = vmul.f32 %v3995_v47, %v846_v39  ;;  %v3354_v39 = vld [vmem:[%s5246_s2 + $0x178] sm:$0xff] }
 0x133   : > { %1261 = vmatmul.f32.gmra.mxu0 %v1123_v29  ;;  %v1398_v1 = vmax.f32 %v1215_v30, 0.0  ;;  %869 = vperm.xlu2 %3529, %v255_v13   ;;  %v1127_v29 = vmax.f32 %v1063_v9, 0.0  ;;  %v1128_v42 = vmax.f32 %v1064_v32, 0.0  ;;  %v242_v9 = vld [vmem:[%s3876_s21 + $0x148] sm:$0xff] }
 0x134   : > { %1769 = vmatpush.msra.mxu2 %v3354_v39 }
 0x135   : > { %v4284_v37 = vpop.permute.xlu1 %403  ;;  %1505 = vmatmul.f32.gmra.mxu1 %v1398_v1 }
 0x136   : > { %1770 = vmatpush.msra.mxu2 %v3353_v61 }
 0x138   : > { %v1217_v41 = vpop.f32.mrf.mxu0  ;;  %v509_v43 = vpop.permute.xlu2 %508 }
 0x139   : > { %v1218_v46 = vadd.f32 %v4209_v31, %v1217_v41  ;;  %3530 = vset.pattern.permute.xlu1 %v3831_v4  ;;  %v635_v38 = vmul.f32 %v3987_v45, %v509_v43  ;;  %v999_v41 = vadd.f32 %v935_v36, %v613_v35 }
 0x13a   : > { %801 = vperm.xlu1 %3530, %v4234_v55  }
 0x13b   : > { %1264 = vmatmul.f32.gmra.mxu0 %v1124_v15  ;;  %v1399_v49 = vmax.f32 %v1218_v46, 0.0  ;;  %v1021_v53 = vadd.f32 %v957_v40, %v635_v38  ;;  %3531 = vset.pattern.permute.xlu2 %v3830_v0  ;;  %v3352_v15 = vld [vmem:[%s5246_s2 + $0x168] sm:$0xff]  ;;  %v936_v38 = vmul.f32 %v3995_v47, %v4242_v60  ;;  %v3350_v60 = vld [vmem:[%s5246_s2 + $0x158] sm:$0xff] }
 0x13c   : > { %543 = vperm.xlu2 %3531, %v256_v50   ;;  %1771 = vmatpush.msra.mxu2 %v3352_v15 }
 0x13d   : > { %v4300_v57 = vpop.permute.xlu1 %408  ;;  %1508 = vmatmul.f32.gmra.mxu1 %v1399_v49  ;;  %v1087_v55 = vadd.f32 %v4004_v54, %v1021_v53  ;;  %v614_v49 = vmul.f32 %v3987_v45, %v4284_v37  ;;  %v241_v53 = vld [vmem:[%s3876_s21 + $0x140] sm:$0xff] }
 0x13e   : > { %1772 = vmatpush.msra.mxu2 %v3351_v63  ;;  %v615_v12 = vmul.f32 %v3987_v45, %v4300_v57 }
 0x13f   : > { %v1151_v51 = vmax.f32 %v1087_v55, 0.0 }
 0x140   : > { %v1220_v62 = vpop.f32.mrf.mxu0  ;;  %1773 = vmatpush.msra.mxu2 %v3350_v60 }
 0x141   : > { %v1221_v3 = vadd.f32 %v4209_v31, %v1220_v62  ;;  %v4308_v34 = vpop.permute.xlu2 %777  ;;  %1345 = vmatmul.f32.vlgmr.msra.gmra.mxu3 %v1151_v51  ;;  %v1000_v51 = vadd.f32 %v936_v38, %v614_v49 }
 0x142   : > { %873 = vperm.xlu1 %3530, %v256_v50   ;;  %3453 = vmatpush.msra.mxu3 %v3354_v39  ;;  %v1065_v50 = vadd.f32 %v4004_v54, %v999_v41 }
 0x143   : > { %1267 = vmatmul.f32.gmra.mxu0 %v1125_v5  ;;  %v1400_v10 = vmax.f32 %v1221_v3, 0.0  ;;  %v3349_v3 = vld [vmem:[%s5246_s2 + $0x150] sm:$0xff] }
 0x144   : > { %458 = vperm.xlu2 %3531, %v4215_v24   ;;  %3454 = vmatpush.msra.mxu3 %v3353_v61  ;;  %v1129_v2 = vmax.f32 %v1065_v50, 0.0  ;;  %v3340_v50 = vld [vmem:[%s5246_s2 + $0x108] sm:$0xff] }
 0x145   : > { %1511 = vmatmul.f32.gmra.mxu1 %v1400_v10  ;;  %1774 = vmatpush.msra.mxu2 %v3349_v3 }
 0x146   : > { %v4316_v14 = vpop.permute.xlu1 %769  ;;  %3455 = vmatpush.msra.mxu3 %v3352_v15  ;;  %v260_v15 = vld [vmem:[%s3876_s21 + $0x1d8] sm:$0xff] }
 0x147   : > { %1775 = vmatpush.msra.mxu2 %v3348_v26 }
 0x148   : > { %v1223_v7 = vpop.f32.mrf.mxu0  ;;  %3456 = vmatpush.msra.mxu3 %v3351_v63  ;;  %v4450_v63 = vld [vmem:[%s5247_s3] ss:$0 sm:$0xff] }
 0x149   : > { %v1224_v18 = vadd.f32 %v4209_v31, %v1223_v7  ;;  %v850_v21 = vpop.permute.xlu2 %849  ;;  %1776 = vmatpush.msra.mxu2 %v3347_v17 }
 0x14a   : > { %3533 = vset.pattern.permute.xlu1 %v3830_v0  ;;  %v958_v37 = vmul.f32 %v3995_v47, %v850_v21  ;;  %3457 = vmatpush.msra.mxu3 %v3350_v60 }
 0x14b   : > { %548 = vperm.xlu1 %3533, %v257_v16   ;;  %1270 = vmatmul.f32.gmra.mxu0 %v1126_v20  ;;  %v1401_v24 = vmax.f32 %v1224_v18, 0.0  ;;  %v937_v18 = vmul.f32 %v3995_v47, %v4255_v52  ;;  %v414_v20 = vpop.permute.xlu0 %413 }
 0x14c   : > { %3534 = vset.pattern.permute.xlu2 %v3831_v4  ;;  %3458 = vmatpush.msra.mxu3 %v3349_v3 }
 0x14d   : > { %1514 = vmatmul.f32.gmra.mxu1 %v1401_v24  ;;  %877 = vperm.xlu2 %3534, %v257_v16   ;;  %v1066_v16 = vadd.f32 %v4004_v54, %v1000_v51  ;;  %v1001_v57 = vadd.f32 %v937_v18, %v615_v12 }
 0x14e   : > { %v4325_v23 = vpop.permute.xlu1 %773  ;;  %3459 = vmatpush.msra.mxu3 %v3348_v26 }
 0x14f   : > { %v1130_v52 = vmax.f32 %v1066_v16, 0.0  ;;  %v1067_v8 = vadd.f32 %v4004_v54, %v1001_v57 }
 0x150   : > { %v1226_v13 = vpop.f32.mrf.mxu0  ;;  %3460 = vmatpush.msra.mxu3 %v3347_v17 }
 0x151   : > { %v1227_v30 = vadd.f32 %v4209_v31, %v1226_v13 }
 0x152   : > { %v4331_v1 = vpop.permute.xlu2 %518 }
 0x153   : > { %463 = vperm.xlu1 %3533, %v240_v27   ;;  %1273 = vmatmul.f32.gmra.mxu0 %v1127_v29  ;;  %v1402_v48 = vmax.f32 %v1227_v30, 0.0  ;;  %v4413_v30 = vld [vmem:[%s5245_s1 + $0x1] ss:$0 sm:$0xff]  ;;  %v4426_v36 = vpop.permute.xlu0 %428 }
 0x154   : > { %v938_v29 = vmul.f32 %v4413_v30, %v4316_v14  ;;  %v3342_v14 = vld [vmem:[%s5246_s2 + $0x118] sm:$0xff] }
 0x155   : > { %1517 = vmatmul.f32.gmra.mxu1 %v1402_v48  ;;  %809 = vperm.xlu2 %3534, %v240_v27   ;;  %v3344_v27 = vld [vmem:[%s5246_s2 + $0x128] sm:$0xff]  ;;  %v4420_v48 = vld [vmem:[%s5245_s1] ss:$0 sm:$0xff] }
 0x156   : > { %v616_v35 = vmul.f32 %v4420_v48, %v414_v20 }
 0x157   : > { %v4338_v22 = vpop.permute.xlu1 %423 }
 0x158   : > { %v1229_v40 = vpop.f32.mrf.mxu0  ;;  %v1002_v41 = vadd.f32 %v938_v29, %v616_v35  ;;  %v618_v17 = vmul.f32 %v4420_v48, %v4338_v22 }
 0x159   : > { %v1230_v43 = vadd.f32 %v4209_v31, %v1229_v40  ;;  %v1131_v40 = vmax.f32 %v1067_v8, 0.0 }
 0x15a   : > { %v4347_v44 = vpop.permute.xlu2 %433  ;;  %v1068_v60 = vadd.f32 %v4450_v63, %v1002_v41 }
 0x15b   : > { %3535 = vset.pattern.permute.xlu1 %v3831_v4  ;;  %1276 = vmatmul.f32.gmra.mxu0 %v1128_v42  ;;  %v1403_v46 = vmax.f32 %v1230_v43, 0.0  ;;  %v637_v43 = vmul.f32 %v4420_v48, %v4331_v1  ;;  %v529_v51 = vpop.permute.xlu0 %528  ;;  %v620_v41 = vmul.f32 %v4420_v48, %v4347_v44  ;;  %v4507_v44 = vld [vmem:[%s5247_s3 + $0x2] ss:$0 sm:$0xff] }
 0x15c   : > { %881 = vperm.xlu1 %3535, %v4261_v19   ;;  %v1132_v26 = vmax.f32 %v1068_v60, 0.0  ;;  %v639_v35 = vmul.f32 %v4420_v48, %v529_v51 }
 0x15d   : > { %1520 = vmatmul.f32.gmra.mxu1 %v1403_v46  ;;  %3536 = vset.pattern.permute.xlu2 %v3830_v0  ;;  %v3341_v46 = vld [vmem:[%s5246_s2 + $0x110] sm:$0xff] }
 0x15e   : > { %468 = vperm.xlu2 %3536, %v241_v53  }
 0x15f   : > { %v514_v19 = vpop.permute.xlu1 %513 }
 0x160   : > { %v636_v55 = vmul.f32 %v3987_v45, %v514_v19  ;;  %v1232_v59 = vpop.f32.mrf.mxu0  ;;  %v3346_v45 = vld [vmem:[%s5246_s2 + $0x138] sm:$0xff] }
 0x161   : > { %v1233_v62 = vadd.f32 %v4209_v31, %v1232_v59  ;;  %1777 = vmatpush.msra.mxu2 %v3346_v45  ;;  %3461 = vmatpush.msra.mxu3 %v3346_v45  ;;  %v4479_v45 = vld [vmem:[%s3876_s21 + $0x1f8] sm:$0xff] }
 0x162   : > { %v1022_v5 = vadd.f32 %v958_v37, %v636_v55  ;;  %v3339_v37 = vld [vmem:[%s5246_s2 + $0x100] sm:$0xff]  ;;  %v4458_v55 = vld [vmem:[%s3876_s21 + $0x1f0] sm:$0xff] }
 0x163   : > { %1279 = vmatmul.f32.gmra.mxu0 %v1129_v2  ;;  %v1404_v10 = vmax.f32 %v1233_v62, 0.0  ;;  %v4377_v11 = vpop.permute.xlu2 %857  ;;  %578 = vperm.xlu0 %3544, %v4458_v55  }
 0x164   : > { %813 = vperm.xlu1 %3535, %v241_v53   ;;  %v1088_v7 = vadd.f32 %v4004_v54, %v1022_v5  ;;  %v3343_v54 = vld [vmem:[%s5246_s2 + $0x120] sm:$0xff]  ;;  %v939_v53 = vmul.f32 %v4413_v30, %v4325_v23  ;;  %v617_v23 = vmul.f32 %v4420_v48, %v4273_v28  ;;  %v960_v62 = vmul.f32 %v4413_v30, %v4377_v11 }
 0x165   : > { %1523 = vmatmul.f32.gmra.mxu1 %v1404_v10  ;;  %v940_v11 = vmul.f32 %v4413_v30, %v4308_v34 }
 0x166   : > { %v1152_v21 = vmax.f32 %v1088_v7, 0.0  ;;  %558 = vperm.xlu2 %3536, %v4295_v56   ;;  %v3345_v56 = vld [vmem:[%s5246_s2 + $0x130] sm:$0xff]  ;;  %v1003_v3 = vadd.f32 %v939_v53, %v617_v23 }
 0x167   : > { %1778 = vmatpush.msra.mxu2 %v3345_v56  ;;  %3462 = vmatpush.msra.mxu3 %v3345_v56  ;;  %v1004_v22 = vadd.f32 %v940_v11, %v618_v17 }
 0x168   : > { %v4396_v24 = vpop.permute.xlu1 %781  ;;  %v1235_v6 = vpop.f32.mrf.mxu0  ;;  %1348 = vmatmul.f32.gmra.mxu3 %v1152_v21  ;;  %v1069_v18 = vadd.f32 %v4450_v63, %v1003_v3  ;;  %v261_v21 = vld [vmem:[%s3876_s21 + $0x1e0] sm:$0xff] }
 0x169   : > { %v1236_v47 = vadd.f32 %v4209_v31, %v1235_v6  ;;  %1779 = vmatpush.msra.mxu2 %v3344_v27  ;;  %3463 = vmatpush.msra.mxu3 %v3344_v27  ;;  %v1070_v27 = vadd.f32 %v4450_v63, %v1004_v22  ;;  %v245_v3 = vld [vmem:[%s3876_s21 + $0x160] sm:$0xff] }
 0x16b   : > { %1282 = vmatmul.f32.gmra.mxu0 %v1130_v52  ;;  %v1405_v25 = vmax.f32 %v1236_v47, 0.0  ;;  %v4403_v13 = vpop.permute.xlu2 %789  ;;  %1780 = vmatpush.msra.mxu2 %v3343_v54  ;;  %v1133_v52 = vmax.f32 %v1069_v18, 0.0 }
 0x16c   : > { %3537 = vset.pattern.permute.xlu1 %v3830_v0  ;;  %3464 = vmatpush.msra.mxu3 %v3343_v54 }
 0x16d   : > { %473 = vperm.xlu1 %3537, %v242_v9   ;;  %1526 = vmatmul.f32.gmra.mxu1 %v1405_v25  ;;  %v941_v25 = vmul.f32 %v4413_v30, %v4396_v24 }
 0x16e   : > { %3538 = vset.pattern.permute.xlu2 %v3831_v4  ;;  %1781 = vmatpush.msra.mxu2 %v3342_v14 }
 0x16f   : > { %817 = vperm.xlu2 %3538, %v242_v9   ;;  %3465 = vmatpush.msra.mxu3 %v3342_v14  ;;  %v619_v9 = vmul.f32 %v4420_v48, %v4426_v36 }
 0x170   : > { %v854_v32 = vpop.permute.xlu1 %853  ;;  %v1238_v39 = vpop.f32.mrf.mxu0  ;;  %1782 = vmatpush.msra.mxu2 %v3341_v46  ;;  %3547 = vset.pattern.permute.xlu0 %v3831_v4 }
 0x171   : > { %v959_v42 = vmul.f32 %v4413_v30, %v854_v32  ;;  %v1239_v61 = vadd.f32 %v4209_v31, %v1238_v39  ;;  %3466 = vmatpush.msra.mxu3 %v3341_v46  ;;  %905 = vperm.xlu0 %3547, %v4479_v45   ;;  %v1005_v54 = vadd.f32 %v941_v25, %v619_v9  ;;  %v1134_v32 = vmax.f32 %v1070_v27, 0.0 }
 0x172   : > { %1783 = vmatpush.msra.mxu2 %v3340_v50 }
 0x173   : > { %v1023_v38 = vadd.f32 %v959_v42, %v637_v43  ;;  %1285 = vmatmul.f32.gmra.mxu0 %v1131_v40  ;;  %v1406_v49 = vmax.f32 %v1239_v61, 0.0  ;;  %3467 = vmatpush.msra.mxu3 %v3340_v50  ;;  %v262_v42 = vld [vmem:[%s3876_s21 + $0x1e8] sm:$0xff] }
 0x174   : > { %v4443_v1 = vpop.permute.xlu2 %443  ;;  %1784 = vmatpush.msra.mxu2 %v3339_v37 }
 0x175   : > { %563 = vperm.xlu1 %3537, %v260_v15   ;;  %1529 = vmatmul.f32.gmra.mxu1 %v1406_v49  ;;  %v1089_v19 = vadd.f32 %v4450_v63, %v1023_v38 }
 0x176   : > { %3468 = vmatpush.msra.mxu3 %v3339_v37 }
 0x177   : > { %v1153_v59 = vmax.f32 %v1089_v19, 0.0  ;;  %889 = vperm.xlu2 %3538, %v260_v15   ;;  %v1071_v15 = vadd.f32 %v4450_v63, %v1005_v54 }
 0x178   : > { %v1241_v2 = vpop.f32.mrf.mxu0 }
 0x179   : > { %v1242_v5 = vadd.f32 %v4209_v31, %v1241_v2  ;;  %v524_v10 = vpop.permute.xlu1 %523  ;;  %1351 = vmatmul.f32.gmra.mxu3 %v1153_v59  ;;  %v1135_v37 = vmax.f32 %v1071_v15, 0.0 }
 0x17a   : > { %v638_v12 = vmul.f32 %v4420_v48, %v524_v10 }
 0x17b   : > { %1288 = vmatmul.f32.gmra.mxu0 %v1132_v26  ;;  %v1407_v28 = vmax.f32 %v1242_v5, 0.0 }
 0x17c   : > { %v1024_v7 = vadd.f32 %v960_v62, %v638_v12  ;;  %v534_v16 = vpop.permute.xlu2 %533 }
 0x17d   : > { %3540 = vset.pattern.permute.xlu1 %v3831_v4  ;;  %1532 = vmatmul.f32.gmra.mxu1 %v1407_v28 }
 0x17e   : > { %821 = vperm.xlu1 %3540, %v4277_v33   ;;  %v1090_v20 = vadd.f32 %v4450_v63, %v1024_v7  ;;  %v786_v33 = vpop.permute.xlu0 %785  ;;  %v943_v7 = vmul.f32 %v4413_v30, %v4403_v13 }
 0x17f   : > { %3541 = vset.pattern.permute.xlu2 %v3830_v0  ;;  %v942_v43 = vmul.f32 %v4413_v30, %v786_v33  ;;  %v622_v33 = vmul.f32 %v4420_v48, %v4443_v1 }
 0x180   : > { %v1244_v34 = vpop.f32.mrf.mxu0  ;;  %v1154_v57 = vmax.f32 %v1090_v20, 0.0  ;;  %568 = vperm.xlu2 %3541, %v261_v21  }
 0x181   : > { %v1245_v6 = vadd.f32 %v4209_v31, %v1244_v34  ;;  %v439_v47 = vpop.permute.xlu1 %438  ;;  %v1006_v50 = vadd.f32 %v942_v43, %v620_v41 }
 0x182   : > { %1354 = vmatmul.f32.gmra.mxu3 %v1154_v57  ;;  %v621_v5 = vmul.f32 %v4420_v48, %v439_v47 }
 0x183   : > { %1291 = vmatmul.f32.gmra.mxu0 %v1133_v52  ;;  %v1408_v56 = vmax.f32 %v1245_v6, 0.0  ;;  %v1072_v26 = vadd.f32 %v4450_v63, %v1006_v50 }
 0x184   : > { %v1007_v11 = vadd.f32 %v943_v7, %v621_v5 }
 0x185   : > { %1535 = vmatmul.f32.gmra.mxu1 %v1408_v56  ;;  %v4488_v8 = vpop.permute.xlu2 %797  ;;  %v1136_v18 = vmax.f32 %v1072_v26, 0.0 }
 0x186   : > { %893 = vperm.xlu1 %3540, %v261_v21   ;;  %v866_v39 = vpop.permute.xlu0 %865  ;;  %v1073_v47 = vadd.f32 %v4450_v63, %v1007_v11 }
 0x187   : > { %v962_v46 = vmul.f32 %v4413_v30, %v866_v39  ;;  %v945_v39 = vmul.f32 %v4413_v30, %v4488_v8 }
 0x188   : > { %v1247_v29 = vpop.f32.mrf.mxu0  ;;  %483 = vperm.xlu2 %3541, %v4365_v58   ;;  %v640_v58 = vmul.f32 %v4420_v48, %v534_v16 }
 0x189   : > { %v1248_v14 = vadd.f32 %v4209_v31, %v1247_v29  ;;  %v1137_v29 = vmax.f32 %v1073_v47, 0.0 }
 0x18a   : > { %v862_v36 = vpop.permute.xlu1 %861  ;;  %v1026_v19 = vadd.f32 %v962_v46, %v640_v58 }
 0x18b   : > { %v961_v24 = vmul.f32 %v4413_v30, %v862_v36  ;;  %1294 = vmatmul.f32.gmra.mxu0 %v1134_v32  ;;  %v1409_v40 = vmax.f32 %v1248_v14, 0.0 }
 0x18c   : > { %v1092_v12 = vadd.f32 %v4450_v63, %v1026_v19 }
 0x18d   : > { %v1025_v61 = vadd.f32 %v961_v24, %v639_v35  ;;  %1538 = vmatmul.f32.gmra.mxu1 %v1409_v40  ;;  %v4501_v38 = vpop.permute.xlu2 %869  ;;  %v246_v35 = vld [vmem:[%s3876_s21 + $0x168] sm:$0xff] }
 0x18e   : > { %3542 = vset.pattern.permute.xlu1 %v3830_v0  ;;  %v1156_v20 = vmax.f32 %v1092_v12, 0.0  ;;  %v806_v9 = vpop.permute.xlu0 %805  ;;  %v963_v36 = vmul.f32 %v4413_v30, %v4501_v38 }
 0x18f   : > { %573 = vperm.xlu1 %3542, %v262_v42   ;;  %v1091_v49 = vadd.f32 %v4450_v63, %v1025_v61 }
 0x190   : > { %v1250_v53 = vpop.f32.mrf.mxu0  ;;  %3543 = vset.pattern.permute.xlu2 %v3831_v4 }
 0x191   : > { %v1251_v60 = vadd.f32 %v4209_v31, %v1250_v53  ;;  %v1155_v23 = vmax.f32 %v1091_v49, 0.0  ;;  %897 = vperm.xlu2 %3543, %v262_v42  }
 0x192   : > { %v794_v59 = vpop.permute.xlu1 %793  ;;  %v1494_v51 = vpop.f32.mrf.mxu1 }
 0x193   : > { %v1495_v62 = vadd.f32 %v4507_v44, %v1494_v51  ;;  %1297 = vmatmul.f32.gmra.mxu0 %v1135_v37  ;;  %1357 = vmatmul.f32.gmra.mxu3 %v1155_v23  ;;  %v1410_v2 = vmax.f32 %v1251_v60, 0.0  ;;  %v944_v6 = vmul.f32 %v4413_v30, %v794_v59 }
 0x195   : > { %1541 = vmatmul.f32.gmra.mxu1 %v1410_v2  ;;  %v1686_v10 = vmax.f32 %v1495_v62, 0.0  ;;  %v1008_v25 = vadd.f32 %v944_v6, %v622_v33  ;;  %v247_v62 = vld [vmem:[%s3876_s21 + $0x170] sm:$0xff] }
 0x196   : > { %v4517_v28 = vpop.permute.xlu2 %543  ;;  %v454_v50 = vpop.permute.xlu0 %453 }
 0x197   : > { %488 = vperm.xlu1 %3542, %v245_v3   ;;  %1785 = vmatmul.f32.vlgmr.msra.gmra.mxu2 %v1686_v10  ;;  %v1074_v41 = vadd.f32 %v4450_v63, %v1008_v25  ;;  %v624_v23 = vmul.f32 %v4420_v48, %v454_v50 }
 0x198   : > { %v1253_v16 = vpop.f32.mrf.mxu0 }
 0x199   : > { %v1254_v17 = vadd.f32 %v4209_v31, %v1253_v16  ;;  %829 = vperm.xlu2 %3543, %v245_v3   ;;  %v1138_v38 = vmax.f32 %v1074_v41, 0.0  ;;  %v642_v16 = vmul.f32 %v4420_v48, %v4517_v28 }
 0x19a   : > { %v1497_v21 = vpop.f32.mrf.mxu1 }
 0x19b   : > { %v1498_v34 = vadd.f32 %v4507_v44, %v1497_v21  ;;  %v449_v57 = vpop.permute.xlu1 %448  ;;  %1300 = vmatmul.f32.gmra.mxu0 %v1136_v18  ;;  %1360 = vmatmul.f32.gmra.mxu3 %v1156_v20  ;;  %v1411_v22 = vmax.f32 %v1254_v17, 0.0  ;;  %v248_v21 = vld [vmem:[%s3876_s21 + $0x178] sm:$0xff] }
 0x19c   : > { %v623_v24 = vmul.f32 %v4420_v48, %v449_v57 }
 0x19d   : > { %1544 = vmatmul.f32.gmra.mxu1 %v1411_v22  ;;  %v1687_v13 = vmax.f32 %v1498_v34, 0.0 }
 0x19e   : > { %v4525_v52 = vpop.permute.xlu2 %458  ;;  %v1009_v46 = vadd.f32 %v945_v39, %v623_v24  ;;  %v554_v33 = vpop.permute.xlu0 %553 }
 0x19f   : > { %3545 = vset.pattern.permute.xlu1 %v3831_v4  ;;  %1788 = vmatmul.f32.gmra.mxu2 %v1687_v13  ;;  %v625_v17 = vmul.f32 %v4420_v48, %v4525_v52 }
 0x1a0   : > { %901 = vperm.xlu1 %3545, %v4458_v55   ;;  %v1256_v56 = vpop.f32.mrf.mxu0  ;;  %v1075_v51 = vadd.f32 %v4450_v63, %v1009_v46 }
 0x1a1   : > { %v1257_v27 = vadd.f32 %v4209_v31, %v1256_v56  ;;  %3546 = vset.pattern.permute.xlu2 %v3830_v0 }
 0x1a2   : > { %v1500_v54 = vpop.f32.mrf.mxu1  ;;  %493 = vperm.xlu2 %3546, %v246_v35   ;;  %v1139_v10 = vmax.f32 %v1075_v51, 0.0  ;;  %v644_v51 = vmul.f32 %v4420_v48, %v554_v33 }
 0x1a3   : > { %v1501_v14 = vadd.f32 %v4507_v44, %v1500_v54  ;;  %v539_v32 = vpop.permute.xlu1 %538  ;;  %1303 = vmatmul.f32.gmra.mxu0 %v1137_v29  ;;  %v1412_v1 = vmax.f32 %v1257_v27, 0.0 }
 0x1a4   : > { %v641_v55 = vmul.f32 %v4420_v48, %v539_v32 }
 0x1a5   : > { %1547 = vmatmul.f32.gmra.mxu1 %v1412_v1  ;;  %v1688_v40 = vmax.f32 %v1501_v14, 0.0 }
 0x1a6   : > { %v1027_v43 = vadd.f32 %v963_v36, %v641_v55 }
 0x1a7   : > { %1791 = vmatmul.f32.gmra.mxu2 %v1688_v40  ;;  %v878_v42 = vpop.permute.xlu2 %877 }
 0x1a8   : > { %833 = vperm.xlu1 %3545, %v246_v35   ;;  %v1259_v58 = vpop.f32.mrf.mxu0  ;;  %v1093_v61 = vadd.f32 %v4450_v63, %v1027_v43  ;;  %v965_v27 = vmul.f32 %v4413_v30, %v878_v42 }
 0x1a9   : > { %v1260_v15 = vadd.f32 %v4209_v31, %v1259_v58  ;;  %v4573_v58 = vpop.permute.xlu0 %478 }
 0x1aa   : > { %v1503_v49 = vpop.f32.mrf.mxu1  ;;  %v1157_v8 = vmax.f32 %v1093_v61, 0.0  ;;  %583 = vperm.xlu2 %3546, %v4479_v45  }
 0x1ab   : > { %v1504_v53 = vadd.f32 %v4507_v44, %v1503_v49  ;;  %1306 = vmatmul.f32.gmra.mxu0 %v1138_v38  ;;  %v1413_v19 = vmax.f32 %v1260_v15, 0.0 }
 0x1ac   : > { %v802_v60 = vpop.permute.xlu1 %801  ;;  %1363 = vmatmul.f32.gmra.mxu3 %v1157_v8  ;;  %v4580_v8 = vld [vmem:[%s5247_s3 + $0x1] ss:$0 sm:$0xff] }
 0x1ad   : > { %v946_v37 = vmul.f32 %v4413_v30, %v802_v60  ;;  %1550 = vmatmul.f32.gmra.mxu1 %v1413_v19  ;;  %v1689_v59 = vmax.f32 %v1504_v53, 0.0 }
 0x1af   : > { %1794 = vmatmul.f32.gmra.mxu2 %v1689_v59  ;;  %v810_v2 = vpop.permute.xlu2 %809  ;;  %v1010_v3 = vadd.f32 %v946_v37, %v624_v23 }
 0x1b0   : > { %3548 = vset.pattern.permute.xlu1 %v3830_v0  ;;  %v1262_v45 = vpop.f32.mrf.mxu0  ;;  %v947_v0 = vmul.f32 %v4413_v30, %v806_v9  ;;  %v948_v15 = vmul.f32 %v4413_v30, %v810_v2 }
 0x1b1   : > { %v1263_v5 = vadd.f32 %v4209_v31, %v1262_v45  ;;  %498 = vperm.xlu1 %3548, %v247_v62   ;;  %v886_v45 = vpop.permute.xlu0 %885 }
 0x1b2   : > { %v1506_v26 = vpop.f32.mrf.mxu1  ;;  %3549 = vset.pattern.permute.xlu2 %v3831_v4  ;;  %v1076_v4 = vadd.f32 %v4450_v63, %v1010_v3  ;;  %v1011_v6 = vadd.f32 %v947_v0, %v625_v17 }
 0x1b3   : > { %v1507_v12 = vadd.f32 %v4507_v44, %v1506_v26  ;;  %1309 = vmatmul.f32.gmra.mxu0 %v1139_v10  ;;  %v1414_v7 = vmax.f32 %v1263_v5, 0.0  ;;  %837 = vperm.xlu2 %3549, %v247_v62  }
 0x1b4   : > { %v874_v11 = vpop.permute.xlu1 %873  ;;  %v1140_v13 = vmax.f32 %v1076_v4, 0.0  ;;  %v1077_v54 = vadd.f32 %v4450_v63, %v1011_v6 }
 0x1b5   : > { %v964_v18 = vmul.f32 %v4413_v30, %v874_v11  ;;  %1553 = vmatmul.f32.gmra.mxu1 %v1414_v7  ;;  %v1690_v20 = vmax.f32 %v1507_v12, 0.0  ;;  %v967_v12 = vmul.f32 %v4413_v30, %v886_v45  ;;  %v629_v45 = vmul.f32 %v4420_v48, %v4573_v58 }
 0x1b6   : > { %v1141_v55 = vmax.f32 %v1077_v54, 0.0 }
 0x1b7   : > { %v1028_v34 = vadd.f32 %v964_v18, %v642_v16  ;;  %1797 = vmatmul.f32.gmra.mxu2 %v1690_v20 }
 0x1b8   : > { %v1265_v57 = vpop.f32.mrf.mxu0  ;;  %v4562_v22 = vpop.permute.xlu2 %468 }
 0x1b9   : > { %v1266_v28 = vadd.f32 %v4209_v31, %v1265_v57  ;;  %503 = vperm.xlu1 %3548, %v248_v21   ;;  %v1094_v47 = vadd.f32 %v4450_v63, %v1028_v34  ;;  %v627_v57 = vmul.f32 %v4420_v48, %v4562_v22 }
 0x1ba   : > { %v1509_v52 = vpop.f32.mrf.mxu1 }
 0x1bb   : > { %v1510_v56 = vadd.f32 %v4507_v44, %v1509_v52  ;;  %1312 = vmatmul.f32.gmra.mxu0 %v1140_v13  ;;  %v1158_v9 = vmax.f32 %v1094_v47, 0.0  ;;  %v1415_v25 = vmax.f32 %v1266_v28, 0.0  ;;  %841 = vperm.xlu2 %3549, %v248_v21  }
 0x1bd   : > { %v549_v29 = vpop.permute.xlu1 %548  ;;  %1366 = vmatmul.f32.gmra.mxu3 %v1158_v9  ;;  %1556 = vmatmul.f32.gmra.mxu1 %v1415_v25  ;;  %v1691_v35 = vmax.f32 %v1510_v56, 0.0 }
 0x1be   : > { %v643_v14 = vmul.f32 %v4420_v48, %v549_v29 }
 0x1bf   : > { %1800 = vmatmul.f32.gmra.mxu2 %v1691_v35 }
 0x1c0   : > { %v1029_v32 = vadd.f32 %v965_v27, %v643_v14  ;;  %v1268_v1 = vpop.f32.mrf.mxu0  ;;  %v559_v39 = vpop.permute.xlu2 %558 }
 0x1c1   : > { %v1269_v36 = vadd.f32 %v4209_v31, %v1268_v1  ;;  %v645_v10 = vmul.f32 %v4420_v48, %v559_v39 }
 0x1c2   : > { %v1512_v24 = vpop.f32.mrf.mxu1  ;;  %v1095_v40 = vadd.f32 %v4450_v63, %v1029_v32 }
 0x1c3   : > { %v1513_v41 = vadd.f32 %v4507_v44, %v1512_v24  ;;  %1315 = vmatmul.f32.gmra.mxu0 %v1141_v55  ;;  %v1416_v43 = vmax.f32 %v1269_v36, 0.0  ;;  %v1031_v18 = vadd.f32 %v967_v12, %v645_v10 }
 0x1c4   : > { %v1159_v42 = vmax.f32 %v1095_v40, 0.0 }
 0x1c5   : > { %v464_v61 = vpop.permute.xlu1 %463  ;;  %1559 = vmatmul.f32.gmra.mxu1 %v1416_v43  ;;  %v1692_v46 = vmax.f32 %v1513_v41, 0.0  ;;  %v1097_v52 = vadd.f32 %v4450_v63, %v1031_v18 }
 0x1c6   : > { %v626_v38 = vmul.f32 %v4420_v48, %v464_v61  ;;  %1369 = vmatmul.f32.gmra.mxu3 %v1159_v42 }
 0x1c7   : > { %1803 = vmatmul.f32.gmra.mxu2 %v1692_v46  ;;  %v1161_v29 = vmax.f32 %v1097_v52, 0.0 }
 0x1c8   : > { %v1012_v31 = vadd.f32 %v948_v15, %v626_v38  ;;  %v1271_v49 = vpop.f32.mrf.mxu0 }
 0x1c9   : > { %v1272_v50 = vadd.f32 %v4580_v8, %v1271_v49  ;;  %v818_v23 = vpop.permute.xlu2 %817 }
 0x1ca   : > { %v1515_v53 = vpop.f32.mrf.mxu1  ;;  %v1078_v19 = vadd.f32 %v4450_v63, %v1012_v31  ;;  %v950_v35 = vmul.f32 %v4413_v30, %v818_v23 }
 0x1cb   : > { %v1516_v60 = vadd.f32 %v4507_v44, %v1515_v53  ;;  %v1417_v37 = vmax.f32 %v1272_v50, 0.0 }
 0x1cc   : > { %v1142_v59 = vmax.f32 %v1078_v19, 0.0 }
 0x1cd   : > { %1562 = vmatmul.f32.gmra.mxu1 %v1417_v37  ;;  %v1693_v62 = vmax.f32 %v1516_v60, 0.0 }
 0x1ce   : > { %v882_v2 = vpop.permute.xlu1 %881  ;;  %1318 = vmatmul.f32.gmra.mxu0 %v1142_v59 }
 0x1cf   : > { %v966_v3 = vmul.f32 %v4413_v30, %v882_v2  ;;  %1806 = vmatmul.f32.gmra.mxu2 %v1693_v62 }
 0x1d0   : > { %v1274_v5 = vpop.f32.mrf.mxu0 }
 0x1d1   : > { %v1030_v26 = vadd.f32 %v966_v3, %v644_v51  ;;  %v1275_v7 = vadd.f32 %v4580_v8, %v1274_v5  ;;  %v890_v21 = vpop.permute.xlu2 %889  ;;  %v826_v51 = vpop.permute.xlu0 %825 }
 0x1d2   : > { %v1518_v16 = vpop.f32.mrf.mxu1  ;;  %v968_v46 = vmul.f32 %v4413_v30, %v890_v21  ;;  %v952_v10 = vmul.f32 %v4413_v30, %v826_v51 }
 0x1d3   : > { %v1418_v0 = vmax.f32 %v1275_v7, 0.0  ;;  %v1519_v11 = vadd.f32 %v4507_v44, %v1518_v16  ;;  %v1096_v17 = vadd.f32 %v4450_v63, %v1030_v26 }
 0x1d5   : > { %1565 = vmatmul.f32.gmra.mxu1 %v1418_v0  ;;  %v1160_v20 = vmax.f32 %v1096_v17, 0.0  ;;  %v1694_v4 = vmax.f32 %v1519_v11, 0.0 }
 0x1d6   : > { %v814_v34 = vpop.permute.xlu1 %813 }
 0x1d7   : > { %v949_v6 = vmul.f32 %v4413_v30, %v814_v34  ;;  %1372 = vmatmul.f32.gmra.mxu3 %v1160_v20  ;;  %1809 = vmatmul.f32.gmra.mxu2 %v1694_v4 }
 0x1d8   : > { %v1277_v28 = vpop.f32.mrf.mxu0 }
 0x1d9   : > { %v1013_v13 = vadd.f32 %v949_v6, %v627_v57  ;;  %v1278_v47 = vadd.f32 %v4580_v8, %v1277_v28 }
 0x1da   : > { %v1521_v33 = vpop.f32.mrf.mxu1  ;;  %v569_v14 = vpop.permute.xlu2 %568 }
 0x1db   : > { %v1419_v56 = vmax.f32 %v1278_v47, 0.0  ;;  %v1522_v9 = vadd.f32 %v4507_v44, %v1521_v33  ;;  %v1079_v25 = vadd.f32 %v4450_v63, %v1013_v13  ;;  %v647_v34 = vmul.f32 %v4420_v48, %v569_v14 }
 0x1dd   : > { %1568 = vmatmul.f32.gmra.mxu1 %v1419_v56  ;;  %v1143_v27 = vmax.f32 %v1079_v25, 0.0  ;;  %v1695_v22 = vmax.f32 %v1522_v9, 0.0 }
 0x1df   : > { %v474_v54 = vpop.permute.xlu1 %473  ;;  %1321 = vmatmul.f32.gmra.mxu0 %v1143_v27  ;;  %1375 = vmatmul.f32.gmra.mxu3 %v1161_v29 }
 0x1e0   : > { %v628_v32 = vmul.f32 %v4420_v48, %v474_v54  ;;  %1812 = vmatmul.f32.gmra.mxu2 %v1695_v22  ;;  %v1280_v1 = vpop.f32.mrf.mxu0 }
 0x1e1   : > { %v1281_v36 = vadd.f32 %v4580_v8, %v1280_v1 }
 0x1e2   : > { %v1014_v55 = vadd.f32 %v950_v35, %v628_v32  ;;  %v1524_v39 = vpop.f32.mrf.mxu1  ;;  %v484_v49 = vpop.permute.xlu2 %483 }
 0x1e3   : > { %v1420_v24 = vmax.f32 %v1281_v36, 0.0  ;;  %v1525_v40 = vadd.f32 %v4507_v44, %v1524_v39  ;;  %v630_v12 = vmul.f32 %v4420_v48, %v484_v49 }
 0x1e4   : > { %v1080_v41 = vadd.f32 %v4450_v63, %v1014_v55 }
 0x1e5   : > { %1571 = vmatmul.f32.gmra.mxu1 %v1420_v24  ;;  %v1696_v43 = vmax.f32 %v1525_v40, 0.0  ;;  %v1016_v20 = vadd.f32 %v952_v10, %v630_v12 }
 0x1e6   : > { %v1144_v42 = vmax.f32 %v1080_v41, 0.0 }
 0x1e7   : > { %v564_v61 = vpop.permute.xlu1 %563  ;;  %v1082_v33 = vadd.f32 %v4450_v63, %v1016_v20  ;;  %v1346_v20 = vpop.f32.mrf.mxu3 }
 0x1e8   : > { %v646_v15 = vmul.f32 %v4420_v48, %v564_v61  ;;  %1815 = vmatmul.f32.gmra.mxu2 %v1696_v43  ;;  %v1283_v38 = vpop.f32.mrf.mxu0  ;;  %1324 = vmatmul.f32.gmra.mxu0 %v1144_v42  ;;  %v579_v43 = vpop.permute.xlu0 %578 }
 0x1e9   : > { %v1284_v31 = vadd.f32 %v4580_v8, %v1283_v38  ;;  %v1146_v27 = vmax.f32 %v1082_v33, 0.0  ;;  %v649_v51 = vmul.f32 %v4420_v48, %v579_v43 }
 0x1ea   : > { %v1032_v50 = vadd.f32 %v968_v46, %v646_v15  ;;  %v1527_v53 = vpop.f32.mrf.mxu1 }
 0x1eb   : > { %v1421_v19 = vmax.f32 %v1284_v31, 0.0  ;;  %v1528_v60 = vadd.f32 %v4507_v44, %v1527_v53  ;;  %v898_v11 = vpop.permute.xlu2 %897 }
 0x1ec   : > { %v1098_v37 = vadd.f32 %v4450_v63, %v1032_v50  ;;  %v970_v22 = vmul.f32 %v4413_v30, %v898_v11 }
 0x1ed   : > { %1574 = vmatmul.f32.gmra.mxu1 %v1421_v19  ;;  %v1697_v23 = vmax.f32 %v1528_v60, 0.0 }
 0x1ee   : > { %v1162_v59 = vmax.f32 %v1098_v37, 0.0 }
 0x1f0   : > { %1818 = vmatmul.f32.gmra.mxu2 %v1697_v23  ;;  %v822_v62 = vpop.permute.xlu1 %821  ;;  %v1286_v2 = vpop.f32.mrf.mxu0  ;;  %1378 = vmatmul.f32.gmra.mxu3 %v1162_v59 }
 0x1f1   : > { %v951_v3 = vmul.f32 %v4413_v30, %v822_v62  ;;  %v1287_v5 = vadd.f32 %v4580_v8, %v1286_v2 }
 0x1f2   : > { %v1530_v26 = vpop.f32.mrf.mxu1 }
 0x1f3   : > { %v1015_v7 = vadd.f32 %v951_v3, %v629_v45  ;;  %v1422_v16 = vmax.f32 %v1287_v5, 0.0  ;;  %v1531_v0 = vadd.f32 %v4507_v44, %v1530_v26  ;;  %v830_v9 = vpop.permute.xlu2 %829  ;;  %v906_v45 = vpop.permute.xlu0 %905 }
 0x1f4   : > { %v953_v38 = vmul.f32 %v4413_v30, %v830_v9 }
 0x1f5   : > { %1577 = vmatmul.f32.gmra.mxu1 %v1422_v16  ;;  %v1698_v17 = vmax.f32 %v1531_v0, 0.0  ;;  %v1081_v18 = vadd.f32 %v4450_v63, %v1015_v7  ;;  %v972_v0 = vmul.f32 %v4413_v30, %v906_v45 }
 0x1f7   : > { %v1145_v58 = vmax.f32 %v1081_v18, 0.0 }
 0x1f8   : > { %1821 = vmatmul.f32.gmra.mxu2 %v1698_v17  ;;  %v894_v4 = vpop.permute.xlu1 %893  ;;  %v1289_v21 = vpop.f32.mrf.mxu0 }
 0x1f9   : > { %v969_v57 = vmul.f32 %v4413_v30, %v894_v4  ;;  %v1290_v6 = vadd.f32 %v4580_v8, %v1289_v21  ;;  %1327 = vmatmul.f32.gmra.mxu0 %v1145_v58 }
 0x1fa   : > { %v1533_v28 = vpop.f32.mrf.mxu1 }
 0x1fb   : > { %v1033_v13 = vadd.f32 %v969_v57, %v647_v34  ;;  %v1423_v47 = vmax.f32 %v1290_v6, 0.0  ;;  %v1534_v52 = vadd.f32 %v4507_v44, %v1533_v28  ;;  %v4644_v6 = vld [vmem:[%s5247_s3 + $0x3] ss:$0 sm:$0xff] }
 0x1fc   : > { %v494_v41 = vpop.permute.xlu2 %493 }
 0x1fd   : > { %1580 = vmatmul.f32.gmra.mxu1 %v1423_v47  ;;  %v1699_v56 = vmax.f32 %v1534_v52, 0.0  ;;  %v1099_v25 = vadd.f32 %v4450_v63, %v1033_v13  ;;  %v632_v28 = vmul.f32 %v4420_v48, %v494_v41 }
 0x1ff   : > { %v1163_v29 = vmax.f32 %v1099_v25, 0.0 }
 0x200   : > { %1824 = vmatmul.f32.gmra.mxu2 %v1699_v56  ;;  %v1292_v35 = vpop.f32.mrf.mxu0 }
 0x201   : > { %v1293_v54 = vadd.f32 %v4580_v8, %v1292_v35  ;;  %v574_v14 = vpop.permute.xlu1 %573  ;;  %1330 = vmatmul.f32.gmra.mxu0 %v1146_v27  ;;  %1381 = vmatmul.f32.gmra.mxu3 %v1163_v29 }
 0x202   : > { %v648_v32 = vmul.f32 %v4420_v48, %v574_v14  ;;  %v1536_v1 = vpop.f32.mrf.mxu1 }
 0x203   : > { %v1424_v36 = vmax.f32 %v1293_v54, 0.0  ;;  %v1537_v55 = vadd.f32 %v4507_v44, %v1536_v1 }
 0x204   : > { %v1034_v39 = vadd.f32 %v970_v22, %v648_v32  ;;  %v584_v2 = vpop.permute.xlu2 %583 }
 0x205   : > { %1583 = vmatmul.f32.gmra.mxu1 %v1424_v36  ;;  %v1700_v24 = vmax.f32 %v1537_v55, 0.0  ;;  %v650_v7 = vmul.f32 %v4420_v48, %v584_v2  ;;  %v1349_v36 = vpop.f32.mrf.mxu3 }
 0x206   : > { %v1100_v40 = vadd.f32 %v4450_v63, %v1034_v39  ;;  %v1350_v2 = vadd.f32 %v4580_v8, %v1349_v36 }
 0x207   : > { %v1036_v58 = vadd.f32 %v972_v0, %v650_v7 }
 0x208   : > { %1827 = vmatmul.f32.gmra.mxu2 %v1700_v24  ;;  %v1295_v42 = vpop.f32.mrf.mxu0  ;;  %v1164_v61 = vmax.f32 %v1100_v40, 0.0 }
 0x209   : > { %v1296_v46 = vadd.f32 %v4580_v8, %v1295_v42  ;;  %v489_v15 = vpop.permute.xlu1 %488  ;;  %v1102_v27 = vadd.f32 %v4450_v63, %v1036_v58 }
 0x20a   : > { %v631_v31 = vmul.f32 %v4420_v48, %v489_v15  ;;  %1384 = vmatmul.f32.gmra.mxu3 %v1164_v61  ;;  %v1539_v49 = vpop.f32.mrf.mxu1 }
 0x20b   : > { %v1425_v50 = vmax.f32 %v1296_v46, 0.0  ;;  %v1540_v53 = vadd.f32 %v4507_v44, %v1539_v49  ;;  %v1166_v1 = vmax.f32 %v1102_v27, 0.0  ;;  %v1347_v46 = vadd.f32 %v4580_v8, %v1346_v20 }
 0x20c   : > { %v1017_v19 = vadd.f32 %v953_v38, %v631_v31 }
 0x20d   : > { %1586 = vmatmul.f32.gmra.mxu1 %v1425_v50  ;;  %v1701_v60 = vmax.f32 %v1540_v53, 0.0  ;;  %v838_v22 = vpop.permute.xlu2 %837 }
 0x20e   : > { %v1083_v37 = vadd.f32 %v4450_v63, %v1017_v19  ;;  %v955_v55 = vmul.f32 %v4413_v30, %v838_v22 }
 0x210   : > { %1830 = vmatmul.f32.gmra.mxu2 %v1701_v60  ;;  %v1298_v23 = vpop.f32.mrf.mxu0  ;;  %v1147_v59 = vmax.f32 %v1083_v37, 0.0  ;;  %v1442_v60 = vmax.f32 %v1347_v46, 0.0 }
 0x211   : > { %v1299_v62 = vadd.f32 %v4580_v8, %v1298_v23  ;;  %v1352_v23 = vpop.f32.mrf.mxu3 }
 0x212   : > { %v902_v3 = vpop.permute.xlu1 %901  ;;  %1333 = vmatmul.f32.gmra.mxu0 %v1147_v59  ;;  %v1542_v5 = vpop.f32.mrf.mxu1 }
 0x213   : > { %v1426_v10 = vmax.f32 %v1299_v62, 0.0  ;;  %v971_v26 = vmul.f32 %v4413_v30, %v902_v3  ;;  %v1543_v12 = vadd.f32 %v4507_v44, %v1542_v5 }
 0x215   : > { %v1035_v16 = vadd.f32 %v971_v26, %v649_v51  ;;  %1589 = vmatmul.f32.gmra.mxu1 %v1426_v10  ;;  %v1702_v11 = vmax.f32 %v1543_v12, 0.0  ;;  %v842_v37 = vpop.permute.xlu2 %841 }
 0x216   : > { %v956_v10 = vmul.f32 %v4413_v30, %v842_v37 }
 0x217   : > { %v1101_v17 = vadd.f32 %v4450_v63, %v1035_v16 }
 0x218   : > { %1833 = vmatmul.f32.gmra.mxu2 %v1702_v11  ;;  %v1301_v18 = vpop.f32.mrf.mxu0 }
 0x219   : > { %v1302_v4 = vadd.f32 %v4580_v8, %v1301_v18  ;;  %v1165_v21 = vmax.f32 %v1101_v17, 0.0 }
 0x21a   : > { %v834_v34 = vpop.permute.xlu1 %833  ;;  %v1545_v57 = vpop.f32.mrf.mxu1 }
 0x21b   : > { %v1427_v13 = vmax.f32 %v1302_v4, 0.0  ;;  %v954_v47 = vmul.f32 %v4413_v30, %v834_v34  ;;  %v1546_v52 = vadd.f32 %v4507_v44, %v1545_v57  ;;  %v1786_v33 = vpop.f32.mrf.mxu2  ;;  %1387 = vmatmul.f32.gmra.mxu3 %v1165_v21  ;;  %v1443_v21 = vmax.f32 %v1350_v2, 0.0 }
 0x21c   : > { %v1787_v56 = vadd.f32 %v4644_v6, %v1786_v33  ;;  %v1355_v33 = vpop.f32.mrf.mxu3 }
 0x21d   : > { %v1018_v9 = vadd.f32 %v954_v47, %v632_v28  ;;  %1592 = vmatmul.f32.gmra.mxu1 %v1427_v13  ;;  %v1703_v25 = vmax.f32 %v1546_v52, 0.0 }
 0x21e   : > { %v3355_v29 = vmul.f32 -1.442695, %v1787_v56 }
 0x21f   : > { %v1084_v35 = vadd.f32 %v4450_v63, %v1018_v9 }
 0x220   : > { %3556 = vpow2.f32 %v3355_v29  ;;  %1836 = vmatmul.f32.gmra.mxu2 %v1703_v25  ;;  %v1304_v54 = vpop.f32.mrf.mxu0  ;;  %v1353_v29 = vadd.f32 %v4580_v8, %v1352_v23 }
 0x221   : > { %v1305_v14 = vadd.f32 %v4580_v8, %v1304_v54  ;;  %v1148_v32 = vmax.f32 %v1084_v35, 0.0 }
 0x222   : > { %v1548_v39 = vpop.f32.mrf.mxu1 }
 0x223   : > { %v1428_v24 = vmax.f32 %v1305_v14, 0.0  ;;  %v1549_v40 = vadd.f32 %v4507_v44, %v1548_v39  ;;  %v1789_v41 = vpop.f32.mrf.mxu2  ;;  %v499_v43 = vpop.permute.xlu1 %498  ;;  %1336 = vmatmul.f32.gmra.mxu0 %v1148_v32  ;;  %1390 = vmatmul.f32.gmra.mxu3 %v1166_v1 }
 0x224   : > { %v1790_v42 = vadd.f32 %v4644_v6, %v1789_v41  ;;  %v633_v61 = vmul.f32 %v4420_v48, %v499_v43  ;;  %v1444_v41 = vmax.f32 %v1353_v29, 0.0 }
 0x225   : > { %1595 = vmatmul.f32.gmra.mxu1 %v1428_v24  ;;  %v1704_v15 = vmax.f32 %v1549_v40, 0.0 }
 0x226   : > { %v3557_v38 = vpop.eup %3556  ;;  %v3356_v31 = vmul.f32 -1.442695, %v1790_v42  ;;  %v1019_v49 = vadd.f32 %v955_v55, %v633_v61 }
 0x227   : > { %v2170_v50 = vadd.f32 1.0, %v3557_v38 }
 0x228   : > { %3558 = vpow2.f32 %v3356_v31  ;;  %1839 = vmatmul.f32.gmra.mxu2 %v1704_v15  ;;  %v1307_v53 = vpop.f32.mrf.mxu0  ;;  %v1085_v19 = vadd.f32 %v4450_v63, %v1019_v49  ;;  %v1358_v49 = vpop.f32.mrf.mxu3 }
 0x229   : > { %3560 = vrcp.f32 %v2170_v50  ;;  %v1308_v59 = vadd.f32 %v4580_v8, %v1307_v53  ;;  %vm2239_vm0 = vweird.f32 %v2170_v50  ;;  %v2243_v30 = vand.u32 2147483647, %v2170_v50 }
 0x22a   : > { %v1551_v51 = vpop.f32.mrf.mxu1  ;;  %v1149_v62 = vmax.f32 %v1085_v19, 0.0  ;;  %v2245_v34 = vand.u32 2147483648, %v2170_v50 }
 0x22b   : > { %v1552_v45 = vadd.f32 %v4507_v44, %v1551_v51  ;;  %v1792_v3 = vpop.f32.mrf.mxu2  ;;  %v504_v5 = vpop.permute.xlu1 %503  ;;  %1637 = vmatmul.f32.vlgmr.msrb.gmra.mxu3 %v1442_v60  ;;  %v1429_v26 = vmax.f32 %v1308_v59, 0.0  ;;  %vm2244_vm3 = vcmp.eq.f32.partialorder %v2243_v30, 8.507059e+37  ;;  %v1356_v60 = vadd.f32 %v4580_v8, %v1355_v33 }
 0x22c   : > { %v1793_v12 = vadd.f32 %v4644_v6, %v1792_v3  ;;  %v634_v7 = vmul.f32 %v4420_v48, %v504_v5  ;;  %1339 = vmatmul.f32.gmra.mxu0 %v1149_v62  ;;  %v2246_v35 = vor.u32 1.1754944e-38, %v2245_v34  ;;  %v1359_v30 = vadd.f32 %v4580_v8, %v1358_v49 }
 0x22d   : > { %v1705_v16 = vmax.f32 %v1552_v45, 0.0  ;;  %1598 = vmatmul.f32.gmra.mxu1 %v1429_v26 }
 0x22e   : > { %v3559_v0 = vpop.eup %3558  ;;  %v3357_v11 = vmul.f32 -1.442695, %v1793_v12  ;;  %v1020_v17 = vadd.f32 %v956_v10, %v634_v7  ;;  %v1445_v12 = vmax.f32 %v1356_v60, 0.0 }
 0x22f   : > { %v3561_v18 = vpop.eup %3560  ;;  %v4665_v20 = vadd.f32 1.0, %v3559_v0 }
 0x230   : > { %v2235_v58 = vmul.f32 %v3561_v18, %v2170_v50  ;;  %3562 = vpow2.f32 %v3357_v11  ;;  %1842 = vmatmul.f32.gmra.mxu2 %v1705_v16  ;;  %v1310_v4 = vpop.f32.mrf.mxu0  ;;  %vm2240_vm1 = vweird.f32 %v3561_v18  ;;  %v1086_v13 = vadd.f32 %v4450_v63, %v1020_v17 }
 0x231   : > { %3564 = vrcp.f32 %v4665_v20  ;;  %v1311_v57 = vadd.f32 %v4580_v8, %v1310_v4  ;;  %vm4674_vm2 = vmor %vm2239_vm0, %vm2240_vm1  ;;  %v2258_v46 = vand.u32 2147483647, %v4665_v20  ;;  %v2260_v15 = vand.u32 2147483648, %v4665_v20 }
 0x232   : > { %v2236_v48 = vsub.f32 1.0, %v2235_v58  ;;  %v1554_v28 = vpop.f32.mrf.mxu1  ;;  %v1150_v27 = vmax.f32 %v1086_v13, 0.0  ;;  %vm2254_vm5 = vweird.f32 %v4665_v20 }
 0x233   : > { %v1555_v47 = vadd.f32 %v4507_v44, %v1554_v28  ;;  %v1795_v52 = vpop.f32.mrf.mxu2  ;;  %1640 = vmatmul.f32.gmra.mxu3 %v1443_v21  ;;  %v1430_v9 = vmax.f32 %v1311_v57, 0.0  ;;  %v2261_v2 = vor.u32 1.1754944e-38, %v2260_v15  ;;  %vm2259_vm7 = vcmp.eq.f32.partialorder %v2258_v46, 8.507059e+37  ;;  %v1361_v57 = vpop.f32.mrf.mxu3 }
 0x234   : > { %v2237_v56 = vmul.f32 %v3561_v18, %v2236_v48  ;;  %v1796_v25 = vadd.f32 %v4644_v6, %v1795_v52  ;;  %1342 = vmatmul.f32.gmra.mxu0 %v1150_v27 }
 0x235   : > { %v1706_v63 = vmax.f32 %v1555_v47, 0.0  ;;  %1601 = vmatmul.f32.gmra.mxu1 %v1430_v9 }
 0x236   : > { %v3563_v54 = vpop.eup %3562  ;;  %v2238_v14 = vadd.f32 %v3561_v18, %v2237_v56  ;;  %v3358_v32 = vmul.f32 -1.442695, %v1796_v25  ;;  %v1446_v25 = vmax.f32 %v1359_v30, 0.0 }
 0x237   : > { %v3565_v1 = vpop.eup %3564  ;;  %v4678_v36 = vadd.f32 1.0, %v3563_v54 }
 0x238   : > { %v2242_v55 = vsel %vm4674_vm2, %v3561_v18, %v2238_v14  ;;  %v2250_v39 = vmul.f32 %v3565_v1, %v4665_v20  ;;  %3566 = vpow2.f32 %v3358_v32  ;;  %1845 = vmatmul.f32.gmra.mxu2 %v1706_v63  ;;  %v1313_v24 = vpop.f32.mrf.mxu0  ;;  %vm2255_vm4 = vweird.f32 %v3565_v1 }
 0x239   : > { %v2247_v40 = vsel %vm2244_vm3, %v2246_v35, %v2242_v55  ;;  %3568 = vrcp.f32 %v4678_v36  ;;  %v1314_v42 = vadd.f32 %v4580_v8, %v1313_v24  ;;  %vm2256_vm6 = vmor %vm2254_vm5, %vm2255_vm4  ;;  %v2273_v11 = vand.u32 2147483647, %v4678_v36  ;;  %v4720_v35 = vld [vmem:[%s5247_s3 + $0x2] ss:$0 sm:$0xff] }
 0x23a   : > { %3194 = vst [vmem:[%s4688_s29] sm:$0xff] %v2247_v40  ;;  %v2251_v43 = vsub.f32 1.0, %v2250_v39  ;;  %v1557_v61 = vpop.f32.mrf.mxu1  ;;  %v2275_v17 = vand.u32 2147483648, %v4678_v36  ;;  %vm2269_vm9 = vweird.f32 %v4678_v36  ;;  %v1362_v55 = vadd.f32 %v4580_v8, %v1361_v57 }
 0x23b   : > { %v1558_v38 = vadd.f32 %v4507_v44, %v1557_v61  ;;  %v1798_v31 = vpop.f32.mrf.mxu2  ;;  %1643 = vmatmul.f32.gmra.mxu3 %v1444_v41  ;;  %v1431_v53 = vmax.f32 %v1314_v42, 0.0  ;;  %vm2274_vm11 = vcmp.eq.f32.partialorder %v2273_v11, 8.507059e+37  ;;  %v1364_v41 = vpop.f32.mrf.mxu3 }
 0x23c   : > { %v2252_v50 = vmul.f32 %v3565_v1, %v2251_v43  ;;  %v1799_v19 = vadd.f32 %v4644_v6, %v1798_v31 }
 0x23d   : > { %v1707_v37 = vmax.f32 %v1558_v38, 0.0  ;;  %1604 = vmatmul.f32.gmra.mxu1 %v1431_v53  ;;  %v1447_v53 = vmax.f32 %v1362_v55, 0.0 }
 0x23e   : > { %v3567_v23 = vpop.eup %3566  ;;  %v2253_v59 = vadd.f32 %v3565_v1, %v2252_v50  ;;  %v3359_v51 = vmul.f32 -1.442695, %v1799_v19 }
 0x23f   : > { %v3569_v62 = vpop.eup %3568  ;;  %v4699_v45 = vadd.f32 1.0, %v3567_v23 }
 0x240   : > { %v2257_v3 = vsel %vm2256_vm6, %v3565_v1, %v2253_v59  ;;  %v2265_v5 = vmul.f32 %v3569_v62, %v4678_v36  ;;  %3570 = vpow2.f32 %v3359_v51  ;;  %1848 = vmatmul.f32.gmra.mxu2 %v1707_v37  ;;  %v1316_v10 = vpop.f32.mrf.mxu0  ;;  %vm2270_vm8 = vweird.f32 %v3569_v62 }
 0x241   : > { %v2262_v26 = vsel %vm2259_vm7, %v2261_v2, %v2257_v3  ;;  %3572 = vrcp.f32 %v4699_v45  ;;  %v1317_v16 = vadd.f32 %v4580_v8, %v1316_v10  ;;  %vm2271_vm10 = vmor %vm2269_vm9, %vm2270_vm8  ;;  %v2290_v22 = vand.u32 2147483648, %v4699_v45 }
 0x242   : > { %3195 = vst [vmem:[%s4688_s29 + $0x8] sm:$0xff] %v2262_v26  ;;  %v2266_v7 = vsub.f32 1.0, %v2265_v5  ;;  %v1560_v0 = vpop.f32.mrf.mxu1  ;;  %v2288_v1 = vand.u32 2147483647, %v4699_v45  ;;  %vm2284_vm13 = vweird.f32 %v4699_v45 }
 0x243   : > { %v1561_v18 = vadd.f32 %v4507_v44, %v1560_v0  ;;  %v1801_v20 = vpop.f32.mrf.mxu2  ;;  %1646 = vmatmul.f32.gmra.mxu3 %v1445_v12  ;;  %v1432_v4 = vmax.f32 %v1317_v16, 0.0  ;;  %v2276_v44 = vor.u32 1.1754944e-38, %v2275_v17  ;;  %v2291_v46 = vor.u32 1.1754944e-38, %v2290_v22  ;;  %v1367_v26 = vpop.f32.mrf.mxu3 }
 0x244   : > { %v2267_v58 = vmul.f32 %v3569_v62, %v2266_v7  ;;  %v1802_v21 = vadd.f32 %v4644_v6, %v1801_v20  ;;  %vm2289_vm15 = vcmp.eq.f32.partialorder %v2288_v1, 8.507059e+37 }
 0x245   : > { %v1708_v34 = vmax.f32 %v1561_v18, 0.0  ;;  %1607 = vmatmul.f32.gmra.mxu1 %v1432_v4 }
 0x246   : > { %v3571_v48 = vpop.eup %3570  ;;  %v2268_v28 = vadd.f32 %v3569_v62, %v2267_v58  ;;  %v3360_v13 = vmul.f32 -1.442695, %v1802_v21 }
 0x247   : > { %v3573_v47 = vpop.eup %3572  ;;  %v4711_v52 = vadd.f32 1.0, %v3571_v48 }
 0x248   : > { %v2272_v33 = vsel %vm2271_vm10, %v3569_v62, %v2268_v28  ;;  %v2280_v56 = vmul.f32 %v3573_v47, %v4699_v45  ;;  %3574 = vpow2.f32 %v3360_v13  ;;  %1851 = vmatmul.f32.gmra.mxu2 %v1708_v34  ;;  %vm2285_vm12 = vweird.f32 %v3573_v47 }
 0x249   : > { %v2277_v9 = vsel %vm2274_vm11, %v2276_v44, %v2272_v33  ;;  %3576 = vrcp.f32 %v4711_v52  ;;  %vm2286_vm14 = vmor %vm2284_vm13, %vm2285_vm12  ;;  %v2305_v37 = vand.u32 2147483648, %v4711_v52  ;;  %v2303_v62 = vand.u32 2147483647, %v4711_v52 }
 0x24a   : > { %3196 = vst [vmem:[%s4688_s29 + $0x10] sm:$0xff] %v2277_v9  ;;  %v2281_v27 = vsub.f32 1.0, %v2280_v56  ;;  %v1563_v29 = vpop.f32.mrf.mxu1  ;;  %v1365_v45 = vadd.f32 %v4580_v8, %v1364_v41  ;;  %vm2299_vm1 = vweird.f32 %v4711_v52 }
 0x24b   : > { %v1564_v63 = vadd.f32 %v4720_v35, %v1563_v29  ;;  %v1804_v54 = vpop.f32.mrf.mxu2  ;;  %v1319_v14 = vpop.f32.mrf.mxu0  ;;  %1649 = vmatmul.f32.gmra.mxu3 %v1446_v25  ;;  %v2306_v16 = vor.u32 1.1754944e-38, %v2305_v37  ;;  %vm2304_vm3 = vcmp.eq.f32.partialorder %v2303_v62, 8.507059e+37 }
 0x24c   : > { %v2282_v32 = vmul.f32 %v3573_v47, %v2281_v27  ;;  %v1805_v36 = vadd.f32 %v4644_v6, %v1804_v54  ;;  %v1320_v39 = vadd.f32 %v4580_v8, %v1319_v14  ;;  %v1448_v20 = vmax.f32 %v1365_v45, 0.0  ;;  %v1370_v54 = vpop.f32.mrf.mxu3 }
 0x24d   : > { %v1709_v24 = vmax.f32 %v1564_v63, 0.0 }
 0x24e   : > { %v3575_v40 = vpop.eup %3574  ;;  %v2283_v43 = vadd.f32 %v3573_v47, %v2282_v32  ;;  %v3361_v42 = vmul.f32 -1.442695, %v1805_v36  ;;  %v1433_v38 = vmax.f32 %v1320_v39, 0.0 }
 0x24f   : > { %v3577_v61 = vpop.eup %3576  ;;  %v4728_v15 = vadd.f32 1.0, %v3575_v40 }
 0x250   : > { %v2287_v31 = vsel %vm2286_vm14, %v3573_v47, %v2283_v43  ;;  %v2295_v49 = vmul.f32 %v3577_v61, %v4711_v52  ;;  %3578 = vpow2.f32 %v3361_v42  ;;  %1854 = vmatmul.f32.gmra.mxu2 %v1709_v24  ;;  %1610 = vmatmul.f32.gmra.mxu1 %v1433_v38  ;;  %vm2300_vm0 = vweird.f32 %v3577_v61 }
 0x251   : > { %v2292_v50 = vsel %vm2289_vm15, %v2291_v46, %v2287_v31  ;;  %3580 = vrcp.f32 %v4728_v15  ;;  %vm2301_vm2 = vmor %vm2299_vm1, %vm2300_vm0  ;;  %v2320_v21 = vand.u32 2147483648, %v4728_v15  ;;  %v2318_v57 = vand.u32 2147483647, %v4728_v15 }
 0x252   : > { %3197 = vst [vmem:[%s4688_s29 + $0x18] sm:$0xff] %v2292_v50  ;;  %v2296_v19 = vsub.f32 1.0, %v2295_v49  ;;  %v1566_v60 = vpop.f32.mrf.mxu1  ;;  %v1368_v47 = vadd.f32 %v4580_v8, %v1367_v26  ;;  %vm2314_vm5 = vweird.f32 %v4728_v15 }
 0x253   : > { %v1567_v23 = vadd.f32 %v4720_v35, %v1566_v60  ;;  %v1807_v59 = vpop.f32.mrf.mxu2  ;;  %1652 = vmatmul.f32.gmra.mxu3 %v1447_v53  ;;  %v2321_v27 = vor.u32 1.1754944e-38, %v2320_v21  ;;  %vm2319_vm7 = vcmp.eq.f32.partialorder %v2318_v57, 8.507059e+37 }
 0x254   : > { %v2297_v51 = vmul.f32 %v3577_v61, %v2296_v19  ;;  %v1808_v2 = vadd.f32 %v4644_v6, %v1807_v59  ;;  %v1449_v1 = vmax.f32 %v1368_v47, 0.0 }
 0x255   : > { %v1710_v3 = vmax.f32 %v1567_v23, 0.0 }
 0x256   : > { %v3579_v5 = vpop.eup %3578  ;;  %v2298_v10 = vadd.f32 %v3577_v61, %v2297_v51  ;;  %v3362_v12 = vmul.f32 -1.442695, %v1808_v2 }
 0x257   : > { %v3581_v7 = vpop.eup %3580  ;;  %v4739_v0 = vadd.f32 1.0, %v3579_v5 }
 0x258   : > { %v2302_v11 = vsel %vm2301_vm2, %v3577_v61, %v2298_v10  ;;  %v2310_v17 = vmul.f32 %v3581_v7, %v4728_v15  ;;  %3582 = vpow2.f32 %v3362_v12  ;;  %1857 = vmatmul.f32.gmra.mxu2 %v1710_v3  ;;  %vm2315_vm4 = vweird.f32 %v3581_v7 }
 0x259   : > { %v2307_v18 = vsel %vm2304_vm3, %v2306_v16, %v2302_v11  ;;  %3584 = vrcp.f32 %v4739_v0  ;;  %vm2316_vm6 = vmor %vm2314_vm5, %vm2315_vm4  ;;  %v2335_v39 = vand.u32 2147483648, %v4739_v0  ;;  %v2333_v43 = vand.u32 2147483647, %v4739_v0 }
 0x25a   : > { %3198 = vst [vmem:[%s4688_s29 + $0x20] sm:$0xff] %v2307_v18  ;;  %v2311_v58 = vsub.f32 1.0, %v2310_v17  ;;  %v1569_v4 = vpop.f32.mrf.mxu1  ;;  %v1371_v61 = vadd.f32 %v4580_v8, %v1370_v54  ;;  %vm2329_vm9 = vweird.f32 %v4739_v0  ;;  %v1373_v59 = vpop.f32.mrf.mxu3 }
 0x25b   : > { %v1570_v30 = vadd.f32 %v4720_v35, %v1569_v4  ;;  %v1810_v34 = vpop.f32.mrf.mxu2  ;;  %1655 = vmatmul.f32.gmra.mxu3 %v1448_v20  ;;  %v2336_v19 = vor.u32 1.1754944e-38, %v2335_v39  ;;  %vm2334_vm11 = vcmp.eq.f32.partialorder %v2333_v43, 8.507059e+37 }
 0x25c   : > { %v2312_v48 = vmul.f32 %v3581_v7, %v2311_v58  ;;  %v1811_v28 = vadd.f32 %v4644_v6, %v1810_v34  ;;  %v1322_v13 = vpop.f32.mrf.mxu0  ;;  %v1450_v51 = vmax.f32 %v1371_v61, 0.0 }
 0x25d   : > { %v1711_v44 = vmax.f32 %v1570_v30, 0.0  ;;  %v1323_v52 = vadd.f32 %v4580_v8, %v1322_v13 }
 0x25e   : > { %v3583_v33 = vpop.eup %3582  ;;  %v2313_v56 = vadd.f32 %v3581_v7, %v2312_v48  ;;  %v3363_v9 = vmul.f32 -1.442695, %v1811_v28 }
 0x25f   : > { %v3585_v25 = vpop.eup %3584  ;;  %v4751_v29 = vadd.f32 1.0, %v3583_v33  ;;  %v1434_v22 = vmax.f32 %v1323_v52, 0.0 }
 0x260   : > { %v2317_v63 = vsel %vm2316_vm6, %v3581_v7, %v2313_v56  ;;  %v2325_v14 = vmul.f32 %v3585_v25, %v4739_v0  ;;  %3586 = vpow2.f32 %v3363_v9  ;;  %1860 = vmatmul.f32.gmra.mxu2 %v1711_v44  ;;  %vm2330_vm8 = vweird.f32 %v3585_v25 }
 0x261   : > { %v2322_v32 = vsel %vm2319_vm7, %v2321_v27, %v2317_v63  ;;  %3588 = vrcp.f32 %v4751_v29  ;;  %1613 = vmatmul.f32.gmra.mxu1 %v1434_v22  ;;  %vm2331_vm10 = vmor %vm2329_vm9, %vm2330_vm8  ;;  %v2350_v5 = vand.u32 2147483648, %v4751_v29  ;;  %v2348_v7 = vand.u32 2147483647, %v4751_v29 }
 0x262   : > { %3199 = vst [vmem:[%s4688_s29 + $0x28] sm:$0xff] %v2322_v32  ;;  %v2326_v36 = vsub.f32 1.0, %v2325_v14  ;;  %v1572_v55 = vpop.f32.mrf.mxu1  ;;  %v1374_v0 = vadd.f32 %v4580_v8, %v1373_v59  ;;  %vm2344_vm13 = vweird.f32 %v4751_v29  ;;  %v1376_v28 = vpop.f32.mrf.mxu3 }
 0x263   : > { %v1573_v24 = vadd.f32 %v4720_v35, %v1572_v55  ;;  %v1813_v40 = vpop.f32.mrf.mxu2  ;;  %1658 = vmatmul.f32.gmra.mxu3 %v1449_v1  ;;  %v2351_v4 = vor.u32 1.1754944e-38, %v2350_v5  ;;  %vm2349_vm15 = vcmp.eq.f32.partialorder %v2348_v7, 8.507059e+37 }
 0x264   : > { %v2327_v41 = vmul.f32 %v3585_v25, %v2326_v36  ;;  %v1814_v42 = vadd.f32 %v4644_v6, %v1813_v40 }
 0x265   : > { %v1712_v46 = vmax.f32 %v1573_v24, 0.0  ;;  %v1325_v15 = vpop.f32.mrf.mxu0 }
 0x266   : > { %v3587_v38 = vpop.eup %3586  ;;  %v2328_v31 = vadd.f32 %v3585_v25, %v2327_v41  ;;  %v3364_v49 = vmul.f32 -1.442695, %v1814_v42  ;;  %v1326_v50 = vadd.f32 %v4580_v8, %v1325_v15  ;;  %v1451_v8 = vmax.f32 %v1374_v0, 0.0 }
 0x267   : > { %v3589_v53 = vpop.eup %3588  ;;  %v4763_v60 = vadd.f32 1.0, %v3587_v38 }
 0x268   : > { %v2332_v37 = vsel %vm2331_vm10, %v3585_v25, %v2328_v31  ;;  %v2340_v23 = vmul.f32 %v3589_v53, %v4751_v29  ;;  %3590 = vpow2.f32 %v3364_v49  ;;  %1863 = vmatmul.f32.gmra.mxu2 %v1712_v46  ;;  %v1435_v45 = vmax.f32 %v1326_v50, 0.0  ;;  %v4786_v25 = vld [vmem:[%s5247_s3 + $0x1] ss:$0 sm:$0xff] }
 0x269   : > { %v2337_v62 = vsel %vm2334_vm11, %v2336_v19, %v2332_v37  ;;  %3592 = vrcp.f32 %v4763_v60  ;;  %vm2345_vm12 = vweird.f32 %v3589_v53  ;;  %v2365_v47 = vand.u32 2147483648, %v4763_v60 }
 0x26a   : > { %3200 = vst [vmem:[%s4688_s29 + $0x30] sm:$0xff] %v2337_v62  ;;  %v2341_v2 = vsub.f32 1.0, %v2340_v23  ;;  %v1575_v3 = vpop.f32.mrf.mxu1  ;;  %1616 = vmatmul.f32.gmra.mxu1 %v1435_v45  ;;  %vm2346_vm14 = vmor %vm2344_vm13, %vm2345_vm12  ;;  %v2363_v56 = vand.u32 2147483647, %v4763_v60  ;;  %v1377_v27 = vadd.f32 %v4786_v25, %v1376_v28  ;;  %vm2359_vm1 = vweird.f32 %v4763_v60 }
 0x26b   : > { %v1576_v10 = vadd.f32 %v4720_v35, %v1575_v3  ;;  %v1816_v26 = vpop.f32.mrf.mxu2  ;;  %1661 = vmatmul.f32.gmra.mxu3 %v1450_v51  ;;  %v2366_v1 = vor.u32 1.1754944e-38, %v2365_v47 }
 0x26c   : > { %v2342_v12 = vmul.f32 %v3589_v53, %v2341_v2  ;;  %v1817_v16 = vadd.f32 %v4644_v6, %v1816_v26  ;;  %vm2364_vm3 = vcmp.eq.f32.partialorder %v2363_v56, 8.507059e+37  ;;  %v1452_v41 = vmax.f32 %v1377_v27, 0.0 }
 0x26d   : > { %v1713_v11 = vmax.f32 %v1576_v10, 0.0 }
 0x26e   : > { %v3591_v17 = vpop.eup %3590  ;;  %v2343_v18 = vadd.f32 %v3589_v53, %v2342_v12  ;;  %v3365_v20 = vmul.f32 -1.442695, %v1817_v16 }
 0x26f   : > { %v3593_v58 = vpop.eup %3592  ;;  %v4774_v21 = vadd.f32 1.0, %v3591_v17 }
 0x270   : > { %v2347_v30 = vsel %vm2346_vm14, %v3589_v53, %v2343_v18  ;;  %v2355_v34 = vmul.f32 %v3593_v58, %v4763_v60  ;;  %3594 = vpow2.f32 %v3365_v20  ;;  %1866 = vmatmul.f32.gmra.mxu2 %v1713_v11  ;;  %vm2360_vm0 = vweird.f32 %v3593_v58 }
 0x271   : > { %v2352_v48 = vsel %vm2349_vm15, %v2351_v4, %v2347_v30  ;;  %3596 = vrcp.f32 %v4774_v21  ;;  %vm2361_vm2 = vmor %vm2359_vm1, %vm2360_vm0  ;;  %v2380_v15 = vand.u32 2147483648, %v4774_v21  ;;  %v2378_v50 = vand.u32 2147483647, %v4774_v21 }
 0x272   : > { %3201 = vst [vmem:[%s4688_s29 + $0x38] sm:$0xff] %v2352_v48  ;;  %v2356_v57 = vsub.f32 1.0, %v2355_v34  ;;  %v1578_v13 = vpop.f32.mrf.mxu1  ;;  %vm2374_vm5 = vweird.f32 %v4774_v21 }
 0x273   : > { %v1579_v44 = vadd.f32 %v4720_v35, %v1578_v13  ;;  %v1819_v52 = vpop.f32.mrf.mxu2  ;;  %1664 = vmatmul.f32.gmra.mxu3 %v1451_v8  ;;  %v1379_v42 = vpop.f32.mrf.mxu3  ;;  %v2381_v2 = vor.u32 1.1754944e-38, %v2380_v15  ;;  %vm2379_vm7 = vcmp.eq.f32.partialorder %v2378_v50, 8.507059e+37 }
 0x274   : > { %v2357_v33 = vmul.f32 %v3593_v58, %v2356_v57  ;;  %v1820_v9 = vadd.f32 %v4644_v6, %v1819_v52  ;;  %v1380_v19 = vadd.f32 %v4786_v25, %v1379_v42 }
 0x275   : > { %v1714_v29 = vmax.f32 %v1579_v44, 0.0 }
 0x276   : > { %v3595_v22 = vpop.eup %3594  ;;  %v2358_v63 = vadd.f32 %v3593_v58, %v2357_v33  ;;  %v3366_v54 = vmul.f32 -1.442695, %v1820_v9  ;;  %v1328_v14 = vpop.f32.mrf.mxu0  ;;  %v1453_v12 = vmax.f32 %v1380_v19, 0.0 }
 0x277   : > { %v3597_v32 = vpop.eup %3596  ;;  %v4790_v36 = vadd.f32 1.0, %v3595_v22  ;;  %v1329_v55 = vadd.f32 %v4786_v25, %v1328_v14 }
 0x278   : > { %v2362_v39 = vsel %vm2361_vm2, %v3593_v58, %v2358_v63  ;;  %v2370_v24 = vmul.f32 %v3597_v32, %v4774_v21  ;;  %3598 = vpow2.f32 %v3366_v54  ;;  %1869 = vmatmul.f32.gmra.mxu2 %v1714_v29  ;;  %vm2375_vm4 = vweird.f32 %v3597_v32 }
 0x279   : > { %v2367_v40 = vsel %vm2364_vm3, %v2366_v1, %v2362_v39  ;;  %3600 = vrcp.f32 %v4790_v36  ;;  %v1436_v61 = vmax.f32 %v1329_v55, 0.0  ;;  %vm2376_vm6 = vmor %vm2374_vm5, %vm2375_vm4  ;;  %v2395_v11 = vand.u32 2147483648, %v4790_v36 }
 0x27a   : > { %3202 = vst [vmem:[%s4688_s29 + $0x40] sm:$0xff] %v2367_v40  ;;  %v2371_v43 = vsub.f32 1.0, %v2370_v24  ;;  %v1581_v46 = vpop.f32.mrf.mxu1  ;;  %v2393_v58 = vand.u32 2147483647, %v4790_v36  ;;  %vm2389_vm9 = vweird.f32 %v4790_v36 }
 0x27b   : > { %v1582_v38 = vadd.f32 %v4720_v35, %v1581_v46  ;;  %v1822_v31 = vpop.f32.mrf.mxu2  ;;  %1667 = vmatmul.f32.gmra.mxu3 %v1452_v41  ;;  %1619 = vmatmul.f32.gmra.mxu1 %v1436_v61  ;;  %v2396_v13 = vor.u32 1.1754944e-38, %v2395_v11 }
 0x27c   : > { %v2372_v49 = vmul.f32 %v3597_v32, %v2371_v43  ;;  %v1823_v53 = vadd.f32 %v4644_v6, %v1822_v31  ;;  %vm2394_vm11 = vcmp.eq.f32.partialorder %v2393_v58, 8.507059e+37 }
 0x27d   : > { %v1715_v60 = vmax.f32 %v1582_v38, 0.0 }
 0x27e   : > { %v3599_v37 = vpop.eup %3598  ;;  %v2373_v23 = vadd.f32 %v3597_v32, %v2372_v49  ;;  %v3367_v59 = vmul.f32 -1.442695, %v1823_v53  ;;  %v1331_v51 = vpop.f32.mrf.mxu0 }
 0x27f   : > { %v3601_v62 = vpop.eup %3600  ;;  %v4802_v45 = vadd.f32 1.0, %v3599_v37  ;;  %v1332_v3 = vadd.f32 %v4786_v25, %v1331_v51 }
 0x280   : > { %v2377_v5 = vsel %vm2376_vm6, %v3597_v32, %v2373_v23  ;;  %v2385_v10 = vmul.f32 %v3601_v62, %v4790_v36  ;;  %3602 = vpow2.f32 %v3367_v59  ;;  %1872 = vmatmul.f32.gmra.mxu2 %v1715_v60  ;;  %vm2390_vm8 = vweird.f32 %v3601_v62 }
 0x281   : > { %v2382_v26 = vsel %vm2379_vm7, %v2381_v2, %v2377_v5  ;;  %3604 = vrcp.f32 %v4802_v45  ;;  %v1437_v16 = vmax.f32 %v1332_v3, 0.0  ;;  %vm2391_vm10 = vmor %vm2389_vm9, %vm2390_vm8  ;;  %v2410_v29 = vand.u32 2147483648, %v4802_v45 }
 0x282   : > { %3203 = vst [vmem:[%s4688_s29 + $0x48] sm:$0xff] %v2382_v26  ;;  %v2386_v7 = vsub.f32 1.0, %v2385_v10  ;;  %v1584_v0 = vpop.f32.mrf.mxu1  ;;  %v2408_v14 = vand.u32 2147483647, %v4802_v45  ;;  %vm2404_vm13 = vweird.f32 %v4802_v45 }
 0x283   : > { %v1585_v17 = vadd.f32 %v4720_v35, %v1584_v0  ;;  %v1825_v18 = vpop.f32.mrf.mxu2  ;;  %1670 = vmatmul.f32.gmra.mxu3 %v1453_v12  ;;  %1622 = vmatmul.f32.gmra.mxu1 %v1437_v16  ;;  %v2411_v43 = vor.u32 1.1754944e-38, %v2410_v29 }
 0x284   : > { %v2387_v20 = vmul.f32 %v3601_v62, %v2386_v7  ;;  %v1826_v4 = vadd.f32 %v4644_v6, %v1825_v18  ;;  %v1382_v21 = vpop.f32.mrf.mxu3  ;;  %vm2409_vm15 = vcmp.eq.f32.partialorder %v2408_v14, 8.507059e+37 }
 0x285   : > { %v1716_v30 = vmax.f32 %v1585_v17, 0.0  ;;  %v1383_v34 = vadd.f32 %v4786_v25, %v1382_v21 }
 0x286   : > { %v3603_v48 = vpop.eup %3602  ;;  %v2388_v8 = vadd.f32 %v3601_v62, %v2387_v20  ;;  %v3368_v57 = vmul.f32 -1.442695, %v1826_v4 }
 0x287   : > { %v3605_v28 = vpop.eup %3604  ;;  %v4814_v47 = vadd.f32 1.0, %v3603_v48  ;;  %v1454_v56 = vmax.f32 %v1383_v34, 0.0 }
 0x288   : > { %v2392_v44 = vsel %vm2391_vm10, %v3601_v62, %v2388_v8  ;;  %v2400_v52 = vmul.f32 %v3605_v28, %v4802_v45  ;;  %3606 = vpow2.f32 %v3368_v57  ;;  %1875 = vmatmul.f32.gmra.mxu2 %v1716_v30  ;;  %vm2405_vm12 = vweird.f32 %v3605_v28 }
 0x289   : > { %v2397_v33 = vsel %vm2394_vm11, %v2396_v13, %v2392_v44  ;;  %3608 = vrcp.f32 %v4814_v47  ;;  %vm2406_vm14 = vmor %vm2404_vm13, %vm2405_vm12  ;;  %v2423_v19 = vand.u32 2147483647, %v4814_v47  ;;  %v2425_v60 = vand.u32 2147483648, %v4814_v47 }
 0x28a   : > { %3204 = vst [vmem:[%s4688_s29 + $0x50] sm:$0xff] %v2397_v33  ;;  %v2401_v9 = vsub.f32 1.0, %v2400_v52  ;;  %v1587_v27 = vpop.f32.mrf.mxu1  ;;  %vm2419_vm1 = vweird.f32 %v4814_v47 }
 0x28b   : > { %v1588_v22 = vadd.f32 %v4720_v35, %v1587_v27  ;;  %v1828_v63 = vpop.f32.mrf.mxu2  ;;  %1673 = vmatmul.f32.gmra.mxu3 %v1454_v56  ;;  %v2426_v26 = vor.u32 1.1754944e-38, %v2425_v60  ;;  %vm2424_vm3 = vcmp.eq.f32.partialorder %v2423_v19, 8.507059e+37 }
 0x28c   : > { %v2402_v54 = vmul.f32 %v3605_v28, %v2401_v9  ;;  %v1829_v32 = vadd.f32 %v4644_v6, %v1828_v63 }
 0x28d   : > { %v1717_v1 = vmax.f32 %v1588_v22, 0.0  ;;  %v1385_v36 = vpop.f32.mrf.mxu3 }
 0x28e   : > { %v3607_v55 = vpop.eup %3606  ;;  %v2403_v39 = vadd.f32 %v3605_v28, %v2402_v54  ;;  %v3369_v24 = vmul.f32 -1.442695, %v1829_v32  ;;  %v1386_v40 = vadd.f32 %v4786_v25, %v1385_v36 }
 0x28f   : > { %v3609_v41 = vpop.eup %3608  ;;  %v4825_v42 = vadd.f32 1.0, %v3607_v55  ;;  %v1334_v61 = vpop.f32.mrf.mxu0 }
 0x290   : > { %v2407_v46 = vsel %vm2406_vm14, %v3605_v28, %v2403_v39  ;;  %v2415_v15 = vmul.f32 %v3609_v41, %v4814_v47  ;;  %3610 = vpow2.f32 %v3369_v24  ;;  %1878 = vmatmul.f32.gmra.mxu2 %v1717_v1  ;;  %v1455_v49 = vmax.f32 %v1386_v40, 0.0  ;;  %v4859_v39 = vld [vmem:[%s5247_s3 + $0x3] ss:$0 sm:$0xff] }
 0x291   : > { %v2412_v38 = vsel %vm2409_vm15, %v2411_v43, %v2407_v46  ;;  %3612 = vrcp.f32 %v4825_v42  ;;  %v1335_v50 = vadd.f32 %v4786_v25, %v1334_v61  ;;  %vm2420_vm0 = vweird.f32 %v3609_v41 }
 0x292   : > { %3205 = vst [vmem:[%s4688_s29 + $0x58] sm:$0xff] %v2412_v38  ;;  %v2416_v31 = vsub.f32 1.0, %v2415_v15  ;;  %v1590_v53 = vpop.f32.mrf.mxu1  ;;  %vm2421_vm2 = vmor %vm2419_vm1, %vm2420_vm0  ;;  %v2440_v18 = vand.u32 2147483648, %v4825_v42  ;;  %v2438_v21 = vand.u32 2147483647, %v4825_v42  ;;  %vm2434_vm5 = vweird.f32 %v4825_v42 }
 0x293   : > { %v1591_v37 = vadd.f32 %v4720_v35, %v1590_v53  ;;  %v1831_v23 = vpop.f32.mrf.mxu2  ;;  %v1438_v51 = vmax.f32 %v1335_v50, 0.0  ;;  %1676 = vmatmul.f32.gmra.mxu3 %v1455_v49 }
 0x294   : > { %v2417_v59 = vmul.f32 %v3609_v41, %v2416_v31  ;;  %v1832_v62 = vadd.f32 %v4644_v6, %v1831_v23  ;;  %v2441_v47 = vor.u32 1.1754944e-38, %v2440_v18  ;;  %vm2439_vm7 = vcmp.eq.f32.partialorder %v2438_v21, 8.507059e+37 }
 0x295   : > { %v1718_v2 = vmax.f32 %v1591_v37, 0.0  ;;  %1625 = vmatmul.f32.gmra.mxu1 %v1438_v51 }
 0x296   : > { %v3611_v45 = vpop.eup %3610  ;;  %v2418_v3 = vadd.f32 %v3609_v41, %v2417_v59  ;;  %v3370_v5 = vmul.f32 -1.442695, %v1832_v62 }
 0x297   : > { %v3613_v10 = vpop.eup %3612  ;;  %v4836_v12 = vadd.f32 1.0, %v3611_v45 }
 0x298   : > { %v2422_v7 = vsel %vm2421_vm2, %v3609_v41, %v2418_v3  ;;  %v2430_v16 = vmul.f32 %v3613_v10, %v4825_v42  ;;  %3614 = vpow2.f32 %v3370_v5  ;;  %1881 = vmatmul.f32.gmra.mxu2 %v1718_v2  ;;  %vm2435_vm4 = vweird.f32 %v3613_v10 }
 0x299   : > { %v2427_v0 = vsel %vm2424_vm3, %v2426_v26, %v2422_v7  ;;  %3616 = vrcp.f32 %v4836_v12  ;;  %vm2436_vm6 = vmor %vm2434_vm5, %vm2435_vm4  ;;  %v2453_v54 = vand.u32 2147483647, %v4836_v12  ;;  %v2455_v14 = vand.u32 2147483648, %v4836_v12 }
 0x29a   : > { %3206 = vst [vmem:[%s4688_s29 + $0x60] sm:$0xff] %v2427_v0  ;;  %v2431_v11 = vsub.f32 1.0, %v2430_v16  ;;  %v1593_v17 = vpop.f32.mrf.mxu1  ;;  %vm2449_vm9 = vweird.f32 %v4836_v12 }
 0x29b   : > { %v1594_v20 = vadd.f32 %v4720_v35, %v1593_v17  ;;  %v1834_v58 = vpop.f32.mrf.mxu2  ;;  %v2456_v15 = vor.u32 1.1754944e-38, %v2455_v14  ;;  %vm2454_vm11 = vcmp.eq.f32.partialorder %v2453_v54, 8.507059e+37 }
 0x29c   : > { %v2432_v4 = vmul.f32 %v3613_v10, %v2431_v11  ;;  %v1835_v30 = vadd.f32 %v4644_v6, %v1834_v58 }
 0x29d   : > { %v1719_v34 = vmax.f32 %v1594_v20, 0.0 }
 0x29e   : > { %v3615_v48 = vpop.eup %3614  ;;  %v2433_v8 = vadd.f32 %v3613_v10, %v2432_v4  ;;  %v3371_v57 = vmul.f32 -1.442695, %v1835_v30  ;;  %v1388_v28 = vpop.f32.mrf.mxu3 }
 0x29f   : > { %v3617_v13 = vpop.eup %3616  ;;  %v4846_v44 = vadd.f32 1.0, %v3615_v48  ;;  %v1389_v52 = vadd.f32 %v4786_v25, %v1388_v28 }
 0x2a0   : > { %v2437_v33 = vsel %vm2436_vm6, %v3613_v10, %v2433_v8  ;;  %v2445_v56 = vmul.f32 %v3617_v13, %v4836_v12  ;;  %3618 = vpow2.f32 %v3371_v57  ;;  %1884 = vmatmul.f32.gmra.mxu2 %v1719_v34  ;;  %v1337_v6 = vpop.f32.mrf.mxu0  ;;  %vm2450_vm8 = vweird.f32 %v3617_v13 }
 0x2a1   : > { %v2442_v9 = vsel %vm2439_vm7, %v2441_v47, %v2437_v33  ;;  %3620 = vrcp.f32 %v4846_v44  ;;  %v1456_v29 = vmax.f32 %v1389_v52, 0.0  ;;  %v1338_v22 = vadd.f32 %v4786_v25, %v1337_v6  ;;  %vm2451_vm10 = vmor %vm2449_vm9, %vm2450_vm8 }
 0x2a2   : > { %3207 = vst [vmem:[%s4688_s29 + $0x68] sm:$0xff] %v2442_v9  ;;  %v2446_v27 = vsub.f32 1.0, %v2445_v56  ;;  %v1596_v63 = vpop.f32.mrf.mxu1  ;;  %v2468_v59 = vand.u32 2147483647, %v4846_v44  ;;  %v2470_v51 = vand.u32 2147483648, %v4846_v44  ;;  %vm2464_vm13 = vweird.f32 %v4846_v44 }
 0x2a3   : > { %v1597_v32 = vadd.f32 %v4720_v35, %v1596_v63  ;;  %v1837_v1 = vpop.f32.mrf.mxu2  ;;  %v1439_v55 = vmax.f32 %v1338_v22, 0.0  ;;  %1679 = vmatmul.f32.gmra.mxu3 %v1456_v29 }
 0x2a4   : > { %v2447_v36 = vmul.f32 %v3617_v13, %v2446_v27  ;;  %v1838_v24 = vadd.f32 %v4859_v39, %v1837_v1  ;;  %v2471_v11 = vor.u32 1.1754944e-38, %v2470_v51  ;;  %vm2469_vm15 = vcmp.eq.f32.partialorder %v2468_v59, 8.507059e+37 }
 0x2a5   : > { %v1720_v40 = vmax.f32 %v1597_v32, 0.0  ;;  %1628 = vmatmul.f32.gmra.mxu1 %v1439_v55 }
 0x2a6   : > { %v3619_v41 = vpop.eup %3618  ;;  %v2448_v43 = vadd.f32 %v3617_v13, %v2447_v36  ;;  %v3372_v42 = vmul.f32 -1.442695, %v1838_v24  ;;  %v1391_v61 = vpop.f32.mrf.mxu3 }
 0x2a7   : > { %v3621_v46 = vpop.eup %3620  ;;  %v4863_v38 = vadd.f32 1.0, %v3619_v41  ;;  %v1392_v31 = vadd.f32 %v4786_v25, %v1391_v61 }
 0x2a8   : > { %v2452_v49 = vsel %vm2451_vm10, %v3617_v13, %v2448_v43  ;;  %v2460_v50 = vmul.f32 %v3621_v46, %v4846_v44  ;;  %3622 = vpow2.f32 %v3372_v42  ;;  %1887 = vmatmul.f32.gmra.mxu2 %v1720_v40  ;;  %vm2465_vm12 = vweird.f32 %v3621_v46 }
 0x2a9   : > { %v2457_v53 = vsel %vm2454_vm11, %v2456_v15, %v2452_v49  ;;  %3624 = vrcp.f32 %v4863_v38  ;;  %v1340_v19 = vpop.f32.mrf.mxu0  ;;  %v1457_v37 = vmax.f32 %v1392_v31, 0.0  ;;  %vm2466_vm14 = vmor %vm2464_vm13, %vm2465_vm12  ;;  %v2483_v48 = vand.u32 2147483647, %v4863_v38 }
 0x2aa   : > { %3208 = vst [vmem:[%s4688_s29 + $0x70] sm:$0xff] %v2457_v53  ;;  %v2461_v60 = vsub.f32 1.0, %v2460_v50  ;;  %v1341_v23 = vadd.f32 %v4786_v25, %v1340_v19  ;;  %v1599_v62 = vpop.f32.mrf.mxu1  ;;  %v2485_v8 = vand.u32 2147483648, %v4863_v38  ;;  %vm2479_vm1 = vweird.f32 %v4863_v38 }
 0x2ab   : > { %v1840_v2 = vpop.f32.mrf.mxu2  ;;  %v1600_v5 = vadd.f32 %v4720_v35, %v1599_v62  ;;  %1682 = vmatmul.f32.gmra.mxu3 %v1457_v37  ;;  %vm2484_vm3 = vcmp.eq.f32.partialorder %v2483_v48, 8.507059e+37 }
 0x2ac   : > { %v2462_v45 = vmul.f32 %v3621_v46, %v2461_v60  ;;  %v1440_v3 = vmax.f32 %v1341_v23, 0.0  ;;  %v1841_v10 = vadd.f32 %v4859_v39, %v1840_v2  ;;  %v2486_v22 = vor.u32 1.1754944e-38, %v2485_v8 }
 0x2ad   : > { %v1721_v7 = vmax.f32 %v1600_v5, 0.0 }
 0x2ae   : > { %v3623_v26 = vpop.eup %3622  ;;  %v2463_v12 = vadd.f32 %v3621_v46, %v2462_v45  ;;  %1631 = vmatmul.f32.gmra.mxu1 %v1440_v3  ;;  %v1638_v16 = vpop.f32.mrf.mxu3  ;;  %v3373_v18 = vmul.f32 -1.442695, %v1841_v10 }
 0x2af   : > { %v3625_v0 = vpop.eup %3624  ;;  %v4875_v17 = vadd.f32 1.0, %v3623_v26  ;;  %v1639_v20 = vadd.f32 %v4720_v35, %v1638_v16 }
 0x2b0   : > { %v2467_v58 = vsel %vm2466_vm14, %v3621_v46, %v2463_v12  ;;  %v2475_v4 = vmul.f32 %v3625_v0, %v4863_v38  ;;  %1890 = vmatmul.f32.gmra.mxu2 %v1721_v7  ;;  %vm2480_vm0 = vweird.f32 %v3625_v0 }
 0x2b1   : > { %v2472_v21 = vsel %vm2469_vm15, %v2471_v11, %v2467_v58  ;;  %3626 = vrcp.f32 %v4875_v17  ;;  %v1734_v34 = vmax.f32 %v1639_v20, 0.0  ;;  %v1343_v57 = vpop.f32.mrf.mxu0  ;;  %vm2481_vm2 = vmor %vm2479_vm1, %vm2480_vm0  ;;  %v2500_v40 = vand.u32 2147483648, %v4875_v17 }
 0x2b2   : > { %3209 = vst [vmem:[%s4688_s29 + $0x78] sm:$0xff] %v2472_v21  ;;  %v2476_v30 = vsub.f32 1.0, %v2475_v4  ;;  %3628 = vpow2.f32 %v3373_v18  ;;  %v1602_v28 = vpop.f32.mrf.mxu1  ;;  %v1344_v47 = vadd.f32 %v4786_v25, %v1343_v57  ;;  %v2498_v42 = vand.u32 2147483647, %v4875_v17 }
 0x2b3   : > { %v1603_v44 = vadd.f32 %v4720_v35, %v1602_v28  ;;  %v1843_v52 = vpop.f32.mrf.mxu2  ;;  %1929 = vmatmul.f32.vlgmr.msra.gmra.mxu3 %v1734_v34  ;;  %vm2494_vm5 = vweird.f32 %v4875_v17  ;;  %v2501_v53 = vor.u32 1.1754944e-38, %v2500_v40 }
 0x2b4   : > { %v2477_v13 = vmul.f32 %v3625_v0, %v2476_v30  ;;  %v1844_v33 = vadd.f32 %v4859_v39, %v1843_v52  ;;  %v1441_v6 = vmax.f32 %v1344_v47, 0.0  ;;  %vm2499_vm7 = vcmp.eq.f32.partialorder %v2498_v42, 8.507059e+37 }
 0x2b5   : > { %v1722_v9 = vmax.f32 %v1603_v44, 0.0 }
 0x2b6   : > { %v2478_v56 = vadd.f32 %v3625_v0, %v2477_v13  ;;  %v1641_v27 = vpop.f32.mrf.mxu3  ;;  %v3374_v63 = vmul.f32 -1.442695, %v1844_v33  ;;  %1634 = vmatmul.f32.gmra.mxu1 %v1441_v6 }
 0x2b7   : > { %v3627_v29 = vpop.eup %3626  ;;  %v1642_v54 = vadd.f32 %v4720_v35, %v1641_v27 }
 0x2b8   : > { %v3629_v25 = vpop.eup %3628  ;;  %v2482_v14 = vsel %vm2481_vm2, %v3625_v0, %v2478_v56  ;;  %v2490_v32 = vmul.f32 %v3627_v29, %v4875_v17  ;;  %1893 = vmatmul.f32.gmra.mxu2 %v1722_v9  ;;  %3630 = vpow2.f32 %v3374_v63  ;;  %vm2495_vm4 = vweird.f32 %v3627_v29 }
 0x2b9   : > { %v2487_v1 = vsel %vm2484_vm3, %v2486_v22, %v2482_v14  ;;  %v2188_v36 = vadd.f32 1.0, %v3629_v25  ;;  %v1735_v55 = vmax.f32 %v1642_v54, 0.0  ;;  %vm2496_vm6 = vmor %vm2494_vm5, %vm2495_vm4 }
 0x2ba   : > { %3210 = vst [vmem:[%s4688_s29 + $0x80] sm:$0xff] %v2487_v1  ;;  %v2491_v24 = vsub.f32 1.0, %v2490_v32  ;;  %v1605_v41 = vpop.f32.mrf.mxu1 }
 0x2bb   : > { %3632 = vrcp.f32 %v2188_v36  ;;  %v1606_v61 = vadd.f32 %v4720_v35, %v1605_v41  ;;  %v1846_v46 = vpop.f32.mrf.mxu2  ;;  %1932 = vmatmul.f32.gmra.mxu3 %v1735_v55  ;;  %v2515_v26 = vand.u32 2147483648, %v2188_v36  ;;  %v2513_v16 = vand.u32 2147483647, %v2188_v36 }
 0x2bc   : > { %v2492_v43 = vmul.f32 %v3627_v29, %v2491_v24  ;;  %v1847_v15 = vadd.f32 %v4859_v39, %v1846_v46  ;;  %vm2509_vm9 = vweird.f32 %v2188_v36 }
 0x2bd   : > { %v1723_v31 = vmax.f32 %v1606_v61, 0.0  ;;  %v2516_v30 = vor.u32 1.1754944e-38, %v2515_v26  ;;  %vm2514_vm11 = vcmp.eq.f32.partialorder %v2513_v16, 8.507059e+37 }
 0x2be   : > { %v2493_v38 = vadd.f32 %v3627_v29, %v2492_v43  ;;  %v1644_v49 = vpop.f32.mrf.mxu3  ;;  %v3631_v50 = vpop.eup %3630  ;;  %v3375_v19 = vmul.f32 -1.442695, %v1847_v15 }
 0x2bf   : > { %v1645_v60 = vadd.f32 %v4720_v35, %v1644_v49  ;;  %v2189_v23 = vadd.f32 1.0, %v3631_v50 }
 0x2c0   : > { %v2497_v37 = vsel %vm2496_vm6, %v3627_v29, %v2493_v38  ;;  %1896 = vmatmul.f32.gmra.mxu2 %v1723_v31  ;;  %3634 = vpow2.f32 %v3375_v19  ;;  %v4908_v29 = vld [vmem:[%s5247_s3 + $0x2] ss:$0 sm:$0xff] }
 0x2c1   : > { %v3633_v59 = vpop.eup %3632  ;;  %v2502_v51 = vsel %vm2499_vm7, %v2501_v53, %v2497_v37  ;;  %v1736_v62 = vmax.f32 %v1645_v60, 0.0  ;;  %3636 = vrcp.f32 %v2189_v23  ;;  %v2528_v44 = vand.u32 2147483647, %v2189_v23 }
 0x2c2   : > { %3211 = vst [vmem:[%s4688_s29 + $0x88] sm:$0xff] %v2502_v51  ;;  %v2505_v2 = vmul.f32 %v3633_v59, %v2188_v36  ;;  %v1608_v45 = vpop.f32.mrf.mxu1  ;;  %vm2510_vm8 = vweird.f32 %v3633_v59  ;;  %vm2524_vm13 = vweird.f32 %v2189_v23 }
 0x2c3   : > { %v1609_v5 = vadd.f32 %v4720_v35, %v1608_v45  ;;  %v1849_v10 = vpop.f32.mrf.mxu2  ;;  %1935 = vmatmul.f32.gmra.mxu3 %v1736_v62  ;;  %vm2511_vm10 = vmor %vm2509_vm9, %vm2510_vm8  ;;  %vm2529_vm15 = vcmp.eq.f32.partialorder %v2528_v44, 8.507059e+37 }
 0x2c4   : > { %v2506_v3 = vsub.f32 1.0, %v2505_v2  ;;  %v1850_v12 = vadd.f32 %v4859_v39, %v1849_v10 }
 0x2c5   : > { %v1724_v0 = vmax.f32 %v1609_v5, 0.0 }
 0x2c6   : > { %v2507_v7 = vmul.f32 %v3633_v59, %v2506_v3  ;;  %v1647_v11 = vpop.f32.mrf.mxu3  ;;  %v3635_v17 = vpop.eup %3634  ;;  %v3376_v18 = vmul.f32 -1.442695, %v1850_v12 }
 0x2c7   : > { %v1648_v20 = vadd.f32 %v4720_v35, %v1647_v11  ;;  %v3637_v58 = vpop.eup %3636  ;;  %v4900_v21 = vadd.f32 1.0, %v3635_v17  ;;  %v2530_v35 = vand.u32 2147483648, %v2189_v23 }
 0x2c8   : > { %v2508_v4 = vadd.f32 %v3633_v59, %v2507_v7  ;;  %1899 = vmatmul.f32.gmra.mxu2 %v1724_v0  ;;  %v2520_v34 = vmul.f32 %v3637_v58, %v2189_v23  ;;  %3638 = vpow2.f32 %v3376_v18  ;;  %vm2525_vm12 = vweird.f32 %v3637_v58 }
 0x2c9   : > { %v1737_v48 = vmax.f32 %v1648_v20, 0.0  ;;  %3640 = vrcp.f32 %v4900_v21  ;;  %vm2526_vm14 = vmor %vm2524_vm13, %vm2525_vm12  ;;  %v2531_v25 = vor.u32 1.1754944e-38, %v2530_v35  ;;  %v2545_v41 = vand.u32 2147483648, %v4900_v21 }
 0x2ca   : > { %v2512_v8 = vsel %vm2511_vm10, %v3633_v59, %v2508_v4  ;;  %v2521_v28 = vsub.f32 1.0, %v2520_v34  ;;  %v2543_v61 = vand.u32 2147483647, %v4900_v21  ;;  %vm2539_vm1 = vweird.f32 %v4900_v21 }
 0x2cb   : > { %v2517_v57 = vsel %vm2514_vm11, %v2516_v30, %v2512_v8  ;;  %v1852_v13 = vpop.f32.mrf.mxu2  ;;  %1938 = vmatmul.f32.gmra.mxu3 %v1737_v48  ;;  %v2546_v19 = vor.u32 1.1754944e-38, %v2545_v41 }
 0x2cc   : > { %3212 = vst [vmem:[%s4688_s29 + $0x90] sm:$0xff] %v2517_v57  ;;  %v2522_v47 = vmul.f32 %v3637_v58, %v2521_v28  ;;  %v1853_v52 = vadd.f32 %v4859_v39, %v1852_v13  ;;  %vm2544_vm3 = vcmp.eq.f32.partialorder %v2543_v61, 8.507059e+37 }
 0x2cd   : > { %v1611_v33 = vpop.f32.mrf.mxu1 }
 0x2ce   : > { %v1650_v56 = vpop.f32.mrf.mxu3  ;;  %v3639_v6 = vpop.eup %3638  ;;  %v2523_v9 = vadd.f32 %v3637_v58, %v2522_v47  ;;  %v3377_v27 = vmul.f32 -1.442695, %v1853_v52  ;;  %v1612_v22 = vadd.f32 %v4908_v29, %v1611_v33 }
 0x2cf   : > { %v1651_v63 = vadd.f32 %v4908_v29, %v1650_v56  ;;  %v3641_v54 = vpop.eup %3640  ;;  %v2191_v14 = vadd.f32 1.0, %v3639_v6 }
 0x2d0   : > { %v2527_v32 = vsel %vm2526_vm14, %v3637_v58, %v2523_v9  ;;  %v2535_v1 = vmul.f32 %v3641_v54, %v4900_v21  ;;  %3642 = vpow2.f32 %v3377_v27  ;;  %v1725_v24 = vmax.f32 %v1612_v22, 0.0 }
 0x2d1   : > { %v2532_v36 = vsel %vm2529_vm15, %v2531_v25, %v2527_v32  ;;  %3644 = vrcp.f32 %v2191_v14  ;;  %v1738_v40 = vmax.f32 %v1651_v63, 0.0  ;;  %vm2540_vm0 = vweird.f32 %v3641_v54 }
 0x2d2   : > { %3213 = vst [vmem:[%s4688_s29 + $0x98] sm:$0xff] %v2532_v36  ;;  %v2536_v55 = vsub.f32 1.0, %v2535_v1  ;;  %1902 = vmatmul.f32.gmra.mxu2 %v1725_v24  ;;  %vm2541_vm2 = vmor %vm2539_vm1, %vm2540_vm0  ;;  %v2560_v2 = vand.u32 2147483648, %v2191_v14  ;;  %v2558_v5 = vand.u32 2147483647, %v2191_v14  ;;  %vm2554_vm5 = vweird.f32 %v2191_v14 }
 0x2d3   : > { %v1855_v43 = vpop.f32.mrf.mxu2  ;;  %1941 = vmatmul.f32.gmra.mxu3 %v1738_v40 }
 0x2d4   : > { %v2537_v42 = vmul.f32 %v3641_v54, %v2536_v55  ;;  %v1856_v46 = vadd.f32 %v4859_v39, %v1855_v43  ;;  %v2561_v20 = vor.u32 1.1754944e-38, %v2560_v2  ;;  %vm2559_vm7 = vcmp.eq.f32.partialorder %v2558_v5, 8.507059e+37 }
 0x2d6   : > { %v1653_v15 = vpop.f32.mrf.mxu3  ;;  %v3643_v38 = vpop.eup %3642  ;;  %v2538_v31 = vadd.f32 %v3641_v54, %v2537_v42  ;;  %v3378_v49 = vmul.f32 -1.442695, %v1856_v46 }
 0x2d7   : > { %v1654_v50 = vadd.f32 %v4908_v29, %v1653_v15  ;;  %v3645_v53 = vpop.eup %3644  ;;  %v2192_v60 = vadd.f32 1.0, %v3643_v38 }
 0x2d8   : > { %v2542_v37 = vsel %vm2541_vm2, %v3641_v54, %v2538_v31  ;;  %v2550_v23 = vmul.f32 %v3645_v53, %v2191_v14  ;;  %3646 = vpow2.f32 %v3378_v49  ;;  %vm2555_vm4 = vweird.f32 %v3645_v53 }
 0x2d9   : > { %v2547_v59 = vsel %vm2544_vm3, %v2546_v19, %v2542_v37  ;;  %3648 = vrcp.f32 %v2192_v60  ;;  %v1739_v62 = vmax.f32 %v1654_v50, 0.0  ;;  %vm2556_vm6 = vmor %vm2554_vm5, %vm2555_vm4  ;;  %v2575_v57 = vand.u32 2147483648, %v2192_v60 }
 0x2da   : > { %3214 = vst [vmem:[%s4688_s29 + $0xa0] sm:$0xff] %v2547_v59  ;;  %v2551_v51 = vsub.f32 1.0, %v2550_v23  ;;  %v2573_v13 = vand.u32 2147483647, %v2192_v60  ;;  %vm2569_vm9 = vweird.f32 %v2192_v60 }
 0x2db   : > { %v1858_v45 = vpop.f32.mrf.mxu2  ;;  %1944 = vmatmul.f32.gmra.mxu3 %v1739_v62  ;;  %v2576_v27 = vor.u32 1.1754944e-38, %v2575_v57 }
 0x2dc   : > { %v2552_v3 = vmul.f32 %v3645_v53, %v2551_v51  ;;  %v1859_v10 = vadd.f32 %v4859_v39, %v1858_v45  ;;  %vm2574_vm11 = vcmp.eq.f32.partialorder %v2573_v13, 8.507059e+37 }
 0x2de   : > { %v1614_v26 = vpop.f32.mrf.mxu1  ;;  %v1656_v12 = vpop.f32.mrf.mxu3  ;;  %v2553_v16 = vadd.f32 %v3645_v53, %v2552_v3  ;;  %v3379_v0 = vmul.f32 -1.442695, %v1859_v10 }
 0x2df   : > { %v3647_v7 = vpop.eup %3646  ;;  %v1615_v11 = vadd.f32 %v4908_v29, %v1614_v26  ;;  %v1657_v17 = vadd.f32 %v4908_v29, %v1656_v12 }
 0x2e0   : > { %v3649_v18 = vpop.eup %3648  ;;  %v2193_v58 = vadd.f32 1.0, %v3647_v7  ;;  %v2557_v4 = vsel %vm2556_vm6, %v3645_v53, %v2553_v16  ;;  %3650 = vpow2.f32 %v3379_v0 }
 0x2e1   : > { %v2565_v21 = vmul.f32 %v3649_v18, %v2192_v60  ;;  %v2562_v30 = vsel %vm2559_vm7, %v2561_v20, %v2557_v4  ;;  %v1726_v48 = vmax.f32 %v1615_v11, 0.0  ;;  %v1740_v8 = vmax.f32 %v1657_v17, 0.0 }
 0x2e2   : > { %3652 = vrcp.f32 %v2193_v58  ;;  %3215 = vst [vmem:[%s4688_s29 + $0xa8] sm:$0xff] %v2562_v30  ;;  %vm2570_vm8 = vweird.f32 %v3649_v18  ;;  %v2588_v55 = vand.u32 2147483647, %v2193_v58  ;;  %v2590_v24 = vand.u32 2147483648, %v2193_v58 }
 0x2e3   : > { %v2566_v34 = vsub.f32 1.0, %v2565_v21  ;;  %v1861_v28 = vpop.f32.mrf.mxu2  ;;  %1905 = vmatmul.f32.gmra.mxu2 %v1726_v48  ;;  %1947 = vmatmul.f32.gmra.mxu3 %v1740_v8  ;;  %vm2571_vm10 = vmor %vm2569_vm9, %vm2570_vm8  ;;  %vm2584_vm13 = vweird.f32 %v2193_v58 }
 0x2e4   : > { %v1862_v47 = vadd.f32 %v4859_v39, %v1861_v28  ;;  %v2591_v50 = vor.u32 1.1754944e-38, %v2590_v24  ;;  %vm2589_vm15 = vcmp.eq.f32.partialorder %v2588_v55, 8.507059e+37 }
 0x2e5   : > { %v2567_v35 = vmul.f32 %v3649_v18, %v2566_v34 }
 0x2e6   : > { %v1659_v44 = vpop.f32.mrf.mxu3  ;;  %v3651_v52 = vpop.eup %3650  ;;  %v3380_v56 = vmul.f32 -1.442695, %v1862_v47 }
 0x2e7   : > { %v2568_v33 = vadd.f32 %v3649_v18, %v2567_v35  ;;  %v1660_v6 = vadd.f32 %v4908_v29, %v1659_v44  ;;  %v2194_v22 = vadd.f32 1.0, %v3651_v52  ;;  %v1617_v25 = vpop.f32.mrf.mxu1 }
 0x2e8   : > { %v3653_v9 = vpop.eup %3652  ;;  %3654 = vpow2.f32 %v3380_v56  ;;  %v1618_v36 = vadd.f32 %v4908_v29, %v1617_v25 }
 0x2e9   : > { %v2572_v63 = vsel %vm2571_vm10, %v3649_v18, %v2568_v33  ;;  %v2580_v54 = vmul.f32 %v3653_v9, %v2193_v58  ;;  %3656 = vrcp.f32 %v2194_v22  ;;  %v1741_v1 = vmax.f32 %v1660_v6, 0.0 }
 0x2ea   : > { %v2577_v14 = vsel %vm2574_vm11, %v2576_v27, %v2572_v63  ;;  %vm2585_vm12 = vweird.f32 %v3653_v9  ;;  %v1727_v43 = vmax.f32 %v1618_v36, 0.0  ;;  %v2605_v51 = vand.u32 2147483648, %v2194_v22 }
 0x2eb   : > { %3216 = vst [vmem:[%s4688_s29 + $0xb0] sm:$0xff] %v2577_v14  ;;  %v2581_v32 = vsub.f32 1.0, %v2580_v54  ;;  %v1864_v40 = vpop.f32.mrf.mxu2  ;;  %1950 = vmatmul.f32.gmra.mxu3 %v1741_v1  ;;  %vm2586_vm14 = vmor %vm2584_vm13, %vm2585_vm12  ;;  %v2603_v45 = vand.u32 2147483647, %v2194_v22  ;;  %vm2599_vm1 = vweird.f32 %v2194_v22 }
 0x2ec   : > { %v1865_v42 = vadd.f32 %v4859_v39, %v1864_v40  ;;  %1908 = vmatmul.f32.gmra.mxu2 %v1727_v43  ;;  %v2606_v0 = vor.u32 1.1754944e-38, %v2605_v51 }
 0x2ed   : > { %v2582_v41 = vmul.f32 %v3653_v9, %v2581_v32  ;;  %vm2604_vm3 = vcmp.eq.f32.partialorder %v2603_v45, 8.507059e+37 }
 0x2ee   : > { %v1662_v61 = vpop.f32.mrf.mxu3  ;;  %v3655_v46 = vpop.eup %3654  ;;  %v3381_v38 = vmul.f32 -1.442695, %v1865_v42 }
 0x2ef   : > { %v2583_v15 = vadd.f32 %v3653_v9, %v2582_v41  ;;  %v1663_v31 = vadd.f32 %v4908_v29, %v1662_v61  ;;  %v3657_v49 = vpop.eup %3656  ;;  %v2195_v53 = vadd.f32 1.0, %v3655_v46 }
 0x2f0   : > { %v2595_v60 = vmul.f32 %v3657_v49, %v2194_v22  ;;  %3658 = vpow2.f32 %v3381_v38  ;;  %vm2600_vm0 = vweird.f32 %v3657_v49 }
 0x2f1   : > { %v2587_v19 = vsel %vm2586_vm14, %v3653_v9, %v2583_v15  ;;  %3660 = vrcp.f32 %v2195_v53  ;;  %v1742_v59 = vmax.f32 %v1663_v31, 0.0  ;;  %vm2601_vm2 = vmor %vm2599_vm1, %vm2600_vm0  ;;  %v2618_v34 = vand.u32 2147483647, %v2195_v53 }
 0x2f2   : > { %v2592_v37 = vsel %vm2589_vm15, %v2591_v50, %v2587_v19  ;;  %v2596_v23 = vsub.f32 1.0, %v2595_v60  ;;  %v2620_v48 = vand.u32 2147483648, %v2195_v53  ;;  %vm2614_vm5 = vweird.f32 %v2195_v53 }
 0x2f3   : > { %3217 = vst [vmem:[%s4688_s29 + $0xb8] sm:$0xff] %v2592_v37  ;;  %v1867_v62 = vpop.f32.mrf.mxu2  ;;  %1953 = vmatmul.f32.gmra.mxu3 %v1742_v59  ;;  %vm2619_vm7 = vcmp.eq.f32.partialorder %v2618_v34, 8.507059e+37 }
 0x2f4   : > { %v2597_v2 = vmul.f32 %v3657_v49, %v2596_v23  ;;  %v1868_v3 = vadd.f32 %v4859_v39, %v1867_v62  ;;  %v2621_v6 = vor.u32 1.1754944e-38, %v2620_v48 }
 0x2f6   : > { %v1665_v5 = vpop.f32.mrf.mxu3  ;;  %v3659_v10 = vpop.eup %3658  ;;  %v2598_v26 = vadd.f32 %v3657_v49, %v2597_v2  ;;  %v3382_v12 = vmul.f32 -1.442695, %v1868_v3 }
 0x2f7   : > { %v1666_v7 = vadd.f32 %v4908_v29, %v1665_v5  ;;  %v3661_v16 = vpop.eup %3660  ;;  %v4933_v11 = vadd.f32 1.0, %v3659_v10 }
 0x2f8   : > { %v2602_v17 = vsel %vm2601_vm2, %v3657_v49, %v2598_v26  ;;  %v2610_v18 = vmul.f32 %v3661_v16, %v2195_v53  ;;  %3662 = vpow2.f32 %v3382_v12  ;;  %v1620_v20 = vpop.f32.mrf.mxu1  ;;  %vm2615_vm4 = vweird.f32 %v3661_v16 }
 0x2f9   : > { %v2607_v58 = vsel %vm2604_vm3, %v2606_v0, %v2602_v17  ;;  %3664 = vrcp.f32 %v4933_v11  ;;  %v1743_v21 = vmax.f32 %v1666_v7, 0.0  ;;  %v1621_v30 = vadd.f32 %v4908_v29, %v1620_v20  ;;  %vm2616_vm6 = vmor %vm2614_vm5, %vm2615_vm4 }
 0x2fa   : > { %3218 = vst [vmem:[%s4688_s29 + $0xc0] sm:$0xff] %v2607_v58  ;;  %v2611_v4 = vsub.f32 1.0, %v2610_v18  ;;  %v2633_v1 = vand.u32 2147483647, %v4933_v11  ;;  %v2635_v36 = vand.u32 2147483648, %v4933_v11  ;;  %vm2629_vm9 = vweird.f32 %v4933_v11 }
 0x2fb   : > { %v1870_v8 = vpop.f32.mrf.mxu2  ;;  %v1728_v28 = vmax.f32 %v1621_v30, 0.0  ;;  %1956 = vmatmul.f32.gmra.mxu3 %v1743_v21 }
 0x2fc   : > { %v2612_v57 = vmul.f32 %v3661_v16, %v2611_v4  ;;  %v1871_v35 = vadd.f32 %v4859_v39, %v1870_v8  ;;  %v2636_v31 = vor.u32 1.1754944e-38, %v2635_v36  ;;  %vm2634_vm11 = vcmp.eq.f32.partialorder %v2633_v1, 8.507059e+37 }
 0x2fd   : > { %1911 = vmatmul.f32.gmra.mxu2 %v1728_v28 }
 0x2fe   : > { %v1668_v13 = vpop.f32.mrf.mxu3  ;;  %v3663_v47 = vpop.eup %3662  ;;  %v2613_v44 = vadd.f32 %v3661_v16, %v2612_v57  ;;  %v3383_v52 = vmul.f32 -1.442695, %v1871_v35 }
 0x2ff   : > { %v1669_v33 = vadd.f32 %v4908_v29, %v1668_v13  ;;  %v3665_v56 = vpop.eup %3664  ;;  %v2197_v9 = vadd.f32 1.0, %v3663_v47 }
 0x300   : > { %v2617_v27 = vsel %vm2616_vm6, %v3661_v16, %v2613_v44  ;;  %v2625_v22 = vmul.f32 %v3665_v56, %v4933_v11  ;;  %3666 = vpow2.f32 %v3383_v52  ;;  %v1623_v63 = vpop.f32.mrf.mxu1  ;;  %vm2630_vm8 = vweird.f32 %v3665_v56 }
 0x301   : > { %v2622_v54 = vsel %vm2619_vm7, %v2621_v6, %v2617_v27  ;;  %3668 = vrcp.f32 %v2197_v9  ;;  %v1744_v14 = vmax.f32 %v1669_v33, 0.0  ;;  %v1624_v32 = vadd.f32 %v4908_v29, %v1623_v63  ;;  %vm2631_vm10 = vmor %vm2629_vm9, %vm2630_vm8 }
 0x302   : > { %3219 = vst [vmem:[%s4688_s29 + $0xc8] sm:$0xff] %v2622_v54  ;;  %v2626_v25 = vsub.f32 1.0, %v2625_v22  ;;  %v2650_v23 = vand.u32 2147483648, %v2197_v9  ;;  %v2648_v62 = vand.u32 2147483647, %v2197_v9  ;;  %vm2644_vm13 = vweird.f32 %v2197_v9 }
 0x303   : > { %v1873_v55 = vpop.f32.mrf.mxu2  ;;  %v1729_v40 = vmax.f32 %v1624_v32, 0.0  ;;  %1959 = vmatmul.f32.gmra.mxu3 %v1744_v14 }
 0x304   : > { %v2627_v24 = vmul.f32 %v3665_v56, %v2626_v25  ;;  %v1874_v41 = vadd.f32 %v4859_v39, %v1873_v55  ;;  %v2651_v7 = vor.u32 1.1754944e-38, %v2650_v23  ;;  %vm2649_vm15 = vcmp.eq.f32.partialorder %v2648_v62, 8.507059e+37 }
 0x305   : > { %1914 = vmatmul.f32.gmra.mxu2 %v1729_v40 }
 0x306   : > { %v1671_v43 = vpop.f32.mrf.mxu3  ;;  %v3667_v42 = vpop.eup %3666  ;;  %v2628_v61 = vadd.f32 %v3665_v56, %v2627_v24  ;;  %v3384_v46 = vmul.f32 -1.442695, %v1874_v41 }
 0x307   : > { %v1672_v15 = vadd.f32 %v4908_v29, %v1671_v43  ;;  %v3669_v38 = vpop.eup %3668  ;;  %v2198_v49 = vadd.f32 1.0, %v3667_v42 }
 0x308   : > { %v2632_v50 = vsel %vm2631_vm10, %v3665_v56, %v2628_v61  ;;  %v2640_v53 = vmul.f32 %v3669_v38, %v2197_v9  ;;  %3670 = vpow2.f32 %v3384_v46  ;;  %vm2645_vm12 = vweird.f32 %v3669_v38 }
 0x309   : > { %v2637_v19 = vsel %vm2634_vm11, %v2636_v31, %v2632_v50  ;;  %3672 = vrcp.f32 %v2198_v49  ;;  %v1745_v37 = vmax.f32 %v1672_v15, 0.0  ;;  %vm2646_vm14 = vmor %vm2644_vm13, %vm2645_vm12  ;;  %v2665_v4 = vand.u32 2147483648, %v2198_v49 }
 0x30a   : > { %3220 = vst [vmem:[%s4688_s29 + $0xd0] sm:$0xff] %v2637_v19  ;;  %v2641_v60 = vsub.f32 1.0, %v2640_v53  ;;  %v2663_v48 = vand.u32 2147483647, %v2198_v49  ;;  %vm2659_vm1 = vweird.f32 %v2198_v49 }
 0x30b   : > { %v1876_v59 = vpop.f32.mrf.mxu2  ;;  %1962 = vmatmul.f32.gmra.mxu3 %v1745_v37  ;;  %v2666_v52 = vor.u32 1.1754944e-38, %v2665_v4 }
 0x30c   : > { %v2642_v51 = vmul.f32 %v3669_v38, %v2641_v60  ;;  %v1877_v2 = vadd.f32 %v4859_v39, %v1876_v59  ;;  %vm2664_vm3 = vcmp.eq.f32.partialorder %v2663_v48, 8.507059e+37 }
 0x30e   : > { %v1674_v45 = vpop.f32.mrf.mxu3  ;;  %v3671_v3 = vpop.eup %3670  ;;  %v2643_v5 = vadd.f32 %v3669_v38, %v2642_v51  ;;  %v3385_v10 = vmul.f32 -1.442695, %v1877_v2 }
 0x30f   : > { %v1675_v26 = vadd.f32 %v4908_v29, %v1674_v45  ;;  %v3673_v12 = vpop.eup %3672  ;;  %v2199_v16 = vadd.f32 1.0, %v3671_v3 }
 0x310   : > { %v2647_v0 = vsel %vm2646_vm14, %v3669_v38, %v2643_v5  ;;  %v2655_v11 = vmul.f32 %v3673_v12, %v2198_v49  ;;  %3674 = vpow2.f32 %v3385_v10  ;;  %vm2660_vm0 = vweird.f32 %v3673_v12 }
 0x311   : > { %v2652_v17 = vsel %vm2649_vm15, %v2651_v7, %v2647_v0  ;;  %3676 = vrcp.f32 %v2199_v16  ;;  %v1746_v20 = vmax.f32 %v1675_v26, 0.0  ;;  %vm2661_vm2 = vmor %vm2659_vm1, %vm2660_vm0  ;;  %v2680_v54 = vand.u32 2147483648, %v2199_v16 }
 0x312   : > { %3221 = vst [vmem:[%s4688_s29 + $0xd8] sm:$0xff] %v2652_v17  ;;  %v2656_v18 = vsub.f32 1.0, %v2655_v11  ;;  %v1626_v58 = vpop.f32.mrf.mxu1  ;;  %v2678_v32 = vand.u32 2147483647, %v2199_v16  ;;  %vm2674_vm5 = vweird.f32 %v2199_v16 }
 0x313   : > { %v1627_v21 = vadd.f32 %v4908_v29, %v1626_v58  ;;  %v1879_v30 = vpop.f32.mrf.mxu2  ;;  %1965 = vmatmul.f32.gmra.mxu3 %v1746_v20  ;;  %v2681_v41 = vor.u32 1.1754944e-38, %v2680_v54 }
 0x314   : > { %v2657_v34 = vmul.f32 %v3673_v12, %v2656_v18  ;;  %v1880_v8 = vadd.f32 %v4859_v39, %v1879_v30  ;;  %vm2679_vm7 = vcmp.eq.f32.partialorder %v2678_v32, 8.507059e+37 }
 0x315   : > { %v1730_v57 = vmax.f32 %v1627_v21, 0.0 }
 0x316   : > { %v3675_v28 = vpop.eup %3674  ;;  %v2658_v35 = vadd.f32 %v3673_v12, %v2657_v34  ;;  %v3386_v13 = vmul.f32 -1.442695, %v1880_v8  ;;  %v1677_v47 = vpop.f32.mrf.mxu3 }
 0x317   : > { %v3677_v44 = vpop.eup %3676  ;;  %v2200_v33 = vadd.f32 1.0, %v3675_v28  ;;  %v1678_v56 = vadd.f32 %v4908_v29, %v1677_v47  ;;  %1917 = vmatmul.f32.gmra.mxu2 %v1730_v57 }
 0x318   : > { %v2662_v6 = vsel %vm2661_vm2, %v3673_v12, %v2658_v35  ;;  %v2670_v9 = vmul.f32 %v3677_v44, %v2199_v16  ;;  %3678 = vpow2.f32 %v3386_v13  ;;  %vm2675_vm4 = vweird.f32 %v3677_v44 }
 0x319   : > { %v2667_v27 = vsel %vm2664_vm3, %v2666_v52, %v2662_v6  ;;  %3680 = vrcp.f32 %v2200_v33  ;;  %v1747_v63 = vmax.f32 %v1678_v56, 0.0  ;;  %vm2676_vm6 = vmor %vm2674_vm5, %vm2675_vm4  ;;  %v2695_v31 = vand.u32 2147483648, %v2200_v33 }
 0x31a   : > { %3222 = vst [vmem:[%s4688_s29 + $0xe0] sm:$0xff] %v2667_v27  ;;  %v2671_v22 = vsub.f32 1.0, %v2670_v9  ;;  %v2693_v19 = vand.u32 2147483647, %v2200_v33  ;;  %vm2689_vm9 = vweird.f32 %v2200_v33 }
 0x31b   : > { %v1882_v25 = vpop.f32.mrf.mxu2  ;;  %1968 = vmatmul.f32.gmra.mxu3 %v1747_v63  ;;  %v2696_v45 = vor.u32 1.1754944e-38, %v2695_v31 }
 0x31c   : > { %v2672_v14 = vmul.f32 %v3677_v44, %v2671_v22  ;;  %v1883_v1 = vadd.f32 %v4859_v39, %v1882_v25  ;;  %vm2694_vm11 = vcmp.eq.f32.partialorder %v2693_v19, 8.507059e+37  ;;  %v4975_v22 = vld [vmem:[%s5247_s3 + $0x3] ss:$0 sm:$0xff] }
 0x31e   : > { %v3679_v36 = vpop.eup %3678  ;;  %v2673_v55 = vadd.f32 %v3677_v44, %v2672_v14  ;;  %v3387_v24 = vmul.f32 -1.442695, %v1883_v1 }
 0x31f   : > { %v3681_v40 = vpop.eup %3680  ;;  %v2201_v43 = vadd.f32 1.0, %v3679_v36 }
 0x320   : > { %v2677_v42 = vsel %vm2676_vm6, %v3677_v44, %v2673_v55  ;;  %v2685_v61 = vmul.f32 %v3681_v40, %v2200_v33  ;;  %3682 = vpow2.f32 %v3387_v24  ;;  %vm2690_vm8 = vweird.f32 %v3681_v40 }
 0x321   : > { %v2682_v46 = vsel %vm2679_vm7, %v2681_v41, %v2677_v42  ;;  %3684 = vrcp.f32 %v2201_v43  ;;  %vm2691_vm10 = vmor %vm2689_vm9, %vm2690_vm8  ;;  %v2710_v11 = vand.u32 2147483648, %v2201_v43  ;;  %v2708_v58 = vand.u32 2147483647, %v2201_v43 }
 0x322   : > { %3223 = vst [vmem:[%s4688_s29 + $0xe8] sm:$0xff] %v2682_v46  ;;  %v2686_v15 = vsub.f32 1.0, %v2685_v61  ;;  %v1629_v38 = vpop.f32.mrf.mxu1  ;;  %vm2704_vm13 = vweird.f32 %v2201_v43 }
 0x323   : > { %v1630_v49 = vadd.f32 %v4908_v29, %v1629_v38  ;;  %v1885_v50 = vpop.f32.mrf.mxu2  ;;  %v2711_v28 = vor.u32 1.1754944e-38, %v2710_v11  ;;  %vm2709_vm15 = vcmp.eq.f32.partialorder %v2708_v58, 8.507059e+37 }
 0x324   : > { %v2687_v53 = vmul.f32 %v3681_v40, %v2686_v15  ;;  %v1886_v60 = vadd.f32 %v4859_v39, %v1885_v50 }
 0x325   : > { %v1731_v37 = vmax.f32 %v1630_v49, 0.0 }
 0x326   : > { %v3683_v23 = vpop.eup %3682  ;;  %v2688_v59 = vadd.f32 %v3681_v40, %v2687_v53  ;;  %v3388_v51 = vmul.f32 -1.442695, %v1886_v60  ;;  %v1680_v62 = vpop.f32.mrf.mxu3 }
 0x327   : > { %v3685_v2 = vpop.eup %3684  ;;  %v4960_v3 = vadd.f32 1.0, %v3683_v23  ;;  %v1681_v5 = vadd.f32 %v4908_v29, %v1680_v62  ;;  %1920 = vmatmul.f32.gmra.mxu2 %v1731_v37 }
 0x328   : > { %v2692_v10 = vsel %vm2691_vm10, %v3681_v40, %v2688_v59  ;;  %v2700_v26 = vmul.f32 %v3685_v2, %v2201_v43  ;;  %3686 = vpow2.f32 %v3388_v51  ;;  %vm2705_vm12 = vweird.f32 %v3685_v2 }
 0x329   : > { %v2697_v12 = vsel %vm2694_vm11, %v2696_v45, %v2692_v10  ;;  %3688 = vrcp.f32 %v4960_v3  ;;  %v1748_v16 = vmax.f32 %v1681_v5, 0.0  ;;  %vm2706_vm14 = vmor %vm2704_vm13, %vm2705_vm12  ;;  %v2725_v56 = vand.u32 2147483648, %v4960_v3 }
 0x32a   : > { %3224 = vst [vmem:[%s4688_s29 + $0xf0] sm:$0xff] %v2697_v12  ;;  %v2701_v7 = vsub.f32 1.0, %v2700_v26  ;;  %v2723_v27 = vand.u32 2147483647, %v4960_v3  ;;  %vm2719_vm1 = vweird.f32 %v4960_v3 }
 0x32b   : > { %v1632_v0 = vpop.f32.mrf.mxu1  ;;  %v1888_v17 = vpop.f32.mrf.mxu2  ;;  %1971 = vmatmul.f32.gmra.mxu3 %v1748_v16  ;;  %v2726_v24 = vor.u32 1.1754944e-38, %v2725_v56 }
 0x32c   : > { %v1633_v18 = vadd.f32 %v4908_v29, %v1632_v0  ;;  %v2702_v20 = vmul.f32 %v3685_v2, %v2701_v7  ;;  %v1889_v4 = vadd.f32 %v4859_v39, %v1888_v17  ;;  %vm2724_vm3 = vcmp.eq.f32.partialorder %v2723_v27, 8.507059e+37 }
 0x32e   : > { %v1732_v21 = vmax.f32 %v1633_v18, 0.0  ;;  %v3687_v30 = vpop.eup %3686  ;;  %v2703_v34 = vadd.f32 %v3685_v2, %v2702_v20  ;;  %v3389_v48 = vmul.f32 -1.442695, %v1889_v4  ;;  %v1683_v8 = vpop.f32.mrf.mxu3 }
 0x32f   : > { %v3689_v57 = vpop.eup %3688  ;;  %v2203_v35 = vadd.f32 1.0, %v3687_v30  ;;  %v1684_v13 = vadd.f32 %v4908_v29, %v1683_v8 }
 0x330   : > { %1923 = vmatmul.f32.gmra.mxu2 %v1732_v21  ;;  %v2707_v47 = vsel %vm2706_vm14, %v3685_v2, %v2703_v34  ;;  %v2715_v44 = vmul.f32 %v3689_v57, %v4960_v3  ;;  %3690 = vpow2.f32 %v3389_v48  ;;  %vm2720_vm0 = vweird.f32 %v3689_v57 }
 0x331   : > { %v2712_v39 = vsel %vm2709_vm15, %v2711_v28, %v2707_v47  ;;  %3692 = vrcp.f32 %v2203_v35  ;;  %v1749_v33 = vmax.f32 %v1684_v13, 0.0  ;;  %vm2721_vm2 = vmor %vm2719_vm1, %vm2720_vm0  ;;  %v2738_v38 = vand.u32 2147483647, %v2203_v35 }
 0x332   : > { %3225 = vst [vmem:[%s4688_s29 + $0xf8] sm:$0xff] %v2712_v39  ;;  %v2716_v52 = vsub.f32 1.0, %v2715_v44  ;;  %v2740_v31 = vand.u32 2147483648, %v2203_v35  ;;  %vm2734_vm5 = vweird.f32 %v2203_v35 }
 0x333   : > { %v1891_v6 = vpop.f32.mrf.mxu2  ;;  %v1635_v54 = vpop.f32.mrf.mxu1  ;;  %1974 = vmatmul.f32.gmra.mxu3 %v1749_v33  ;;  %vm2739_vm7 = vcmp.eq.f32.partialorder %v2738_v38, 8.507059e+37 }
 0x334   : > { %v2717_v9 = vmul.f32 %v3689_v57, %v2716_v52  ;;  %v1892_v63 = vadd.f32 %v4975_v22, %v1891_v6  ;;  %v1636_v25 = vadd.f32 %v4908_v29, %v1635_v54  ;;  %v2741_v51 = vor.u32 1.1754944e-38, %v2740_v31 }
 0x336   : > { %v3691_v14 = vpop.eup %3690  ;;  %v2718_v32 = vadd.f32 %v3689_v57, %v2717_v9  ;;  %v3390_v1 = vmul.f32 -1.442695, %v1892_v63  ;;  %v1930_v36 = vpop.f32.mrf.mxu3  ;;  %v1733_v41 = vmax.f32 %v1636_v25, 0.0 }
 0x337   : > { %v3693_v55 = vpop.eup %3692  ;;  %v2204_v40 = vadd.f32 1.0, %v3691_v14  ;;  %v1931_v43 = vadd.f32 %v4975_v22, %v1930_v36 }
 0x338   : > { %v2722_v42 = vsel %vm2721_vm2, %v3689_v57, %v2718_v32  ;;  %v2730_v61 = vmul.f32 %v3693_v55, %v2203_v35  ;;  %3694 = vpow2.f32 %v3390_v1  ;;  %1926 = vmatmul.f32.gmra.mxu2 %v1733_v41  ;;  %vm2735_vm4 = vweird.f32 %v3693_v55 }
 0x339   : > { %v2727_v46 = vsel %vm2724_vm3, %v2726_v24, %v2722_v42  ;;  %3696 = vrcp.f32 %v2204_v40  ;;  %v3403_v15 = vmul.f32 -1.442695, %v1931_v43  ;;  %vm2736_vm6 = vmor %vm2734_vm5, %vm2735_vm4  ;;  %v2753_v7 = vand.u32 2147483647, %v2204_v40 }
 0x33a   : > { %3226 = vst [vmem:[%s4688_s29 + $0x100] sm:$0xff] %v2727_v46  ;;  %v2731_v29 = vsub.f32 1.0, %v2730_v61  ;;  %v2755_v16 = vand.u32 2147483648, %v2204_v40  ;;  %vm2749_vm9 = vweird.f32 %v2204_v40 }
 0x33b   : > { %v1894_v49 = vpop.f32.mrf.mxu2  ;;  %3698 = vpow2.f32 %v3403_v15  ;;  %vm2754_vm11 = vcmp.eq.f32.partialorder %v2753_v7, 8.507059e+37 }
 0x33c   : > { %v2732_v50 = vmul.f32 %v3693_v55, %v2731_v29  ;;  %v1895_v53 = vadd.f32 %v4975_v22, %v1894_v49  ;;  %v2756_v34 = vor.u32 1.1754944e-38, %v2755_v16 }
 0x33e   : > { %v3695_v19 = vpop.eup %3694  ;;  %v2733_v60 = vadd.f32 %v3693_v55, %v2732_v50  ;;  %v3391_v37 = vmul.f32 -1.442695, %v1895_v53  ;;  %v1933_v23 = vpop.f32.mrf.mxu3 }
 0x33f   : > { %v3697_v59 = vpop.eup %3696  ;;  %v2205_v62 = vadd.f32 1.0, %v3695_v19  ;;  %v1934_v2 = vadd.f32 %v4975_v22, %v1933_v23 }
 0x340   : > { %v2737_v45 = vsel %vm2736_vm6, %v3693_v55, %v2733_v60  ;;  %v2745_v3 = vmul.f32 %v3697_v59, %v2204_v40  ;;  %3700 = vpow2.f32 %v3391_v37  ;;  %vm2750_vm8 = vweird.f32 %v3697_v59 }
 0x341   : > { %v2742_v5 = vsel %vm2739_vm7, %v2741_v51, %v2737_v45  ;;  %3702 = vrcp.f32 %v2205_v62  ;;  %v3699_v10 = vpop.eup %3698  ;;  %v3404_v12 = vmul.f32 -1.442695, %v1934_v2  ;;  %vm2751_vm10 = vmor %vm2749_vm9, %vm2750_vm8  ;;  %v2768_v13 = vand.u32 2147483647, %v2205_v62 }
 0x342   : > { %3227 = vst [vmem:[%s4688_s29 + $0x108] sm:$0xff] %v2742_v5  ;;  %v2746_v26 = vsub.f32 1.0, %v2745_v3  ;;  %v4985_v0 = vadd.f32 1.0, %v3699_v10  ;;  %v2770_v33 = vand.u32 2147483648, %v2205_v62  ;;  %vm2764_vm13 = vweird.f32 %v2205_v62 }
 0x343   : > { %v1897_v11 = vpop.f32.mrf.mxu2  ;;  %3704 = vpow2.f32 %v3404_v12  ;;  %vm4997_vm14 = vcmp.eq.f32.partialorder %v2768_v13, 8.507059e+37 }
 0x344   : > { %v2747_v17 = vmul.f32 %v3697_v59, %v2746_v26  ;;  %v1898_v18 = vadd.f32 %v4975_v22, %v1897_v11  ;;  %3706 = vrcp.f32 %v4985_v0  ;;  %v2963_v54 = vand.u32 2147483647, %v4985_v0 }
 0x345   : > { %v2771_v24 = vor.u32 1.1754944e-38, %v2770_v33  ;;  %v2965_v40 = vand.u32 2147483648, %v4985_v0  ;;  %vm2959_vm1 = vweird.f32 %v4985_v0 }
 0x346   : > { %v3701_v20 = vpop.eup %3700  ;;  %v2748_v58 = vadd.f32 %v3697_v59, %v2747_v17  ;;  %v3392_v4 = vmul.f32 -1.442695, %v1898_v18  ;;  %v1936_v21 = vpop.f32.mrf.mxu3  ;;  %vm2964_vm2 = vcmp.eq.f32.partialorder %v2963_v54, 8.507059e+37 }
 0x347   : > { %v3703_v30 = vpop.eup %3702  ;;  %v4989_v48 = vadd.f32 1.0, %v3701_v20  ;;  %v1937_v8 = vadd.f32 %v4975_v22, %v1936_v21  ;;  %v2966_v50 = vor.u32 1.1754944e-38, %v2965_v40 }
 0x348   : > { %v2752_v57 = vsel %vm2751_vm10, %v3697_v59, %v2748_v58  ;;  %v2760_v28 = vmul.f32 %v3703_v30, %v2205_v62  ;;  %3708 = vpow2.f32 %v3392_v4  ;;  %vm2765_vm12 = vweird.f32 %v3703_v30 }
 0x349   : > { %v2757_v35 = vsel %vm2754_vm11, %v2756_v34, %v2752_v57  ;;  %3710 = vrcp.f32 %v4989_v48  ;;  %v3705_v47 = vpop.eup %3704  ;;  %v3405_v39 = vmul.f32 -1.442695, %v1937_v8  ;;  %vm2766_vm15 = vmor %vm2764_vm13, %vm2765_vm12  ;;  %v2783_v53 = vand.u32 2147483647, %v4989_v48 }
 0x34a   : > { %3228 = vst [vmem:[%s4688_s29 + $0x110] sm:$0xff] %v2757_v35  ;;  %v2761_v44 = vsub.f32 1.0, %v2760_v28  ;;  %v3707_v52 = vpop.eup %3706  ;;  %v4994_v56 = vadd.f32 1.0, %v3705_v47  ;;  %v2785_v19 = vand.u32 2147483648, %v4989_v48  ;;  %vm2779_vm5 = vweird.f32 %v4989_v48 }
 0x34b   : > { %v1900_v6 = vpop.f32.mrf.mxu2  ;;  %v2955_v27 = vmul.f32 %v3707_v52, %v4985_v0  ;;  %vm2960_vm0 = vweird.f32 %v3707_v52  ;;  %vm2784_vm7 = vcmp.eq.f32.partialorder %v2783_v53, 8.507059e+37 }
 0x34c   : > { %v2762_v9 = vmul.f32 %v3703_v30, %v2761_v44  ;;  %3712 = vrcp.f32 %v4994_v56  ;;  %v1901_v1 = vadd.f32 %v4975_v22, %v1900_v6  ;;  %vm2961_vm3 = vmor %vm2959_vm1, %vm2960_vm0  ;;  %v2978_v5 = vand.u32 2147483647, %v4994_v56 }
 0x34d   : > { %v2956_v32 = vsub.f32 1.0, %v2955_v27  ;;  %3714 = vpow2.f32 %v3405_v39  ;;  %v2786_v26 = vor.u32 1.1754944e-38, %v2785_v19  ;;  %v2980_v12 = vand.u32 2147483648, %v4994_v56 }
 0x34e   : > { %v3709_v25 = vpop.eup %3708  ;;  %v2763_v14 = vadd.f32 %v3703_v30, %v2762_v9  ;;  %v1939_v36 = vpop.f32.mrf.mxu3  ;;  %v3393_v31 = vmul.f32 -1.442695, %v1901_v1  ;;  %vm2974_vm9 = vweird.f32 %v4994_v56  ;;  %vm2979_vm10 = vcmp.eq.f32.partialorder %v2978_v5, 8.507059e+37 }
 0x34f   : > { %v3711_v55 = vpop.eup %3710  ;;  %v5005_v41 = vadd.f32 1.0, %v3709_v25  ;;  %v1940_v43 = vadd.f32 %v4975_v22, %v1939_v36  ;;  %v2957_v61 = vmul.f32 %v3707_v52, %v2956_v32  ;;  %v2981_v34 = vor.u32 1.1754944e-38, %v2980_v12 }
 0x350   : > { %v2767_v42 = vsel %vm2766_vm15, %v3703_v30, %v2763_v14  ;;  %v2775_v46 = vmul.f32 %v3711_v55, %v4989_v48  ;;  %vm2780_vm4 = vweird.f32 %v3711_v55 }
 0x351   : > { %v2772_v29 = vsel %vm4997_vm14, %v2771_v24, %v2767_v42  ;;  %3716 = vrcp.f32 %v5005_v41  ;;  %v2958_v15 = vadd.f32 %v3707_v52, %v2957_v61  ;;  %v3406_v60 = vmul.f32 -1.442695, %v1940_v43  ;;  %vm2781_vm6 = vmor %vm2779_vm5, %vm2780_vm4 }
 0x352   : > { %3229 = vst [vmem:[%s4688_s29 + $0x118] sm:$0xff] %v2772_v29  ;;  %v2776_v38 = vsub.f32 1.0, %v2775_v46  ;;  %v3713_v49 = vpop.eup %3712  ;;  %3718 = vpow2.f32 %v3393_v31  ;;  %v2798_v48 = vand.u32 2147483647, %v5005_v41  ;;  %v2800_v8 = vand.u32 2147483648, %v5005_v41 }
 0x353   : > { %v3715_v37 = vpop.eup %3714  ;;  %v2962_v23 = vsel %vm2961_vm3, %v3707_v52, %v2958_v15  ;;  %v2970_v51 = vmul.f32 %v3713_v49, %v4994_v56  ;;  %3720 = vpow2.f32 %v3406_v60  ;;  %vm2975_vm8 = vweird.f32 %v3713_v49 }
 0x354   : > { %v2777_v59 = vmul.f32 %v3711_v55, %v2776_v38  ;;  %v2967_v62 = vsel %vm2964_vm2, %v2966_v50, %v2962_v23  ;;  %v5018_v2 = vadd.f32 1.0, %v3715_v37  ;;  %vm2976_vm11 = vmor %vm2974_vm9, %vm2975_vm8  ;;  %vm2794_vm13 = vweird.f32 %v5005_v41 }
 0x355   : > { %3242 = vst [vmem:[%s4688_s29 + $0x180] sm:$0xff] %v2967_v62  ;;  %v2971_v3 = vsub.f32 1.0, %v2970_v51  ;;  %v1903_v7 = vpop.f32.mrf.mxu2  ;;  %v2801_v9 = vor.u32 1.1754944e-38, %v2800_v8  ;;  %vm2799_vm15 = vcmp.eq.f32.partialorder %v2798_v48, 8.507059e+37 }
 0x356   : > { %v2778_v45 = vadd.f32 %v3711_v55, %v2777_v59  ;;  %3722 = vrcp.f32 %v5018_v2  ;;  %v1942_v16 = vpop.f32.mrf.mxu3  ;;  %v1904_v20 = vadd.f32 %v4975_v22, %v1903_v7  ;;  %v2993_v14 = vand.u32 2147483647, %v5018_v2 }
 0x357   : > { %v3717_v10 = vpop.eup %3716  ;;  %v2972_v11 = vmul.f32 %v3713_v49, %v2971_v3  ;;  %v1943_v21 = vadd.f32 %v4975_v22, %v1942_v16  ;;  %v2995_v32 = vand.u32 2147483648, %v5018_v2  ;;  %vm2989_vm1 = vweird.f32 %v5018_v2 }
 0x358   : > { %v2782_v0 = vsel %vm2781_vm6, %v3711_v55, %v2778_v45  ;;  %v2790_v17 = vmul.f32 %v3717_v10, %v5005_v41  ;;  %v3719_v30 = vpop.eup %3718  ;;  %v3394_v57 = vmul.f32 -1.442695, %v1904_v20  ;;  %vm2795_vm12 = vweird.f32 %v3717_v10 }
 0x359   : > { %v2787_v18 = vsel %vm2784_vm7, %v2786_v26, %v2782_v0  ;;  %v2973_v58 = vadd.f32 %v3713_v49, %v2972_v11  ;;  %v3721_v28 = vpop.eup %3720  ;;  %v5031_v47 = vadd.f32 1.0, %v3719_v30  ;;  %v3407_v6 = vmul.f32 -1.442695, %v1943_v21  ;;  %vm2796_vm14 = vmor %vm2794_vm13, %vm2795_vm12 }
 0x35a   : > { %3230 = vst [vmem:[%s4688_s29 + $0x120] sm:$0xff] %v2787_v18  ;;  %v2791_v4 = vsub.f32 1.0, %v2790_v17  ;;  %v5034_v52 = vadd.f32 1.0, %v3721_v28  ;;  %3724 = vpow2.f32 %v3394_v57  ;;  %v2996_v61 = vor.u32 1.1754944e-38, %v2995_v32 }
 0x35b   : > { %v2977_v35 = vsel %vm2976_vm11, %v3713_v49, %v2973_v58  ;;  %3726 = vrcp.f32 %v5031_v47  ;;  %vm2994_vm3 = vcmp.eq.f32.partialorder %v2993_v14, 8.507059e+37  ;;  %v2813_v49 = vand.u32 2147483647, %v5031_v47 }
 0x35c   : > { %v2792_v13 = vmul.f32 %v3717_v10, %v2791_v4  ;;  %v3723_v44 = vpop.eup %3722  ;;  %v2982_v39 = vsel %vm2979_vm10, %v2981_v34, %v2977_v35  ;;  %3728 = vrcp.f32 %v5034_v52  ;;  %v2815_v50 = vand.u32 2147483648, %v5031_v47 }
 0x35d   : > { %3243 = vst [vmem:[%s4688_s29 + $0x188] sm:$0xff] %v2982_v39  ;;  %v2985_v56 = vmul.f32 %v3723_v44, %v5018_v2  ;;  %vm2990_vm0 = vweird.f32 %v3723_v44  ;;  %3730 = vpow2.f32 %v3407_v6  ;;  %v3010_v23 = vand.u32 2147483648, %v5034_v52 }
 0x35e   : > { %v2793_v33 = vadd.f32 %v3717_v10, %v2792_v13  ;;  %v1945_v27 = vpop.f32.mrf.mxu3  ;;  %vm2991_vm2 = vmor %vm2989_vm1, %vm2990_vm0  ;;  %v3008_v3 = vand.u32 2147483647, %v5034_v52  ;;  %vm2809_vm6 = vweird.f32 %v5031_v47  ;;  %vm3004_vm7 = vweird.f32 %v5034_v52 }
 0x35f   : > { %v2986_v54 = vsub.f32 1.0, %v2985_v56  ;;  %v1946_v36 = vadd.f32 %v4975_v22, %v1945_v27  ;;  %v2816_v12 = vor.u32 1.1754944e-38, %v2815_v50  ;;  %vm2814_vm9 = vcmp.eq.f32.partialorder %v2813_v49, 8.507059e+37 }
 0x360   : > { %v2797_v63 = vsel %vm2796_vm14, %v3717_v10, %v2793_v33  ;;  %v3725_v55 = vpop.eup %3724  ;;  %v3011_v11 = vor.u32 1.1754944e-38, %v3010_v23  ;;  %vm3009_vm11 = vcmp.eq.f32.partialorder %v3008_v3, 8.507059e+37 }
 0x361   : > { %v2802_v25 = vsel %vm2799_vm15, %v2801_v9, %v2797_v63  ;;  %v2987_v1 = vmul.f32 %v3723_v44, %v2986_v54  ;;  %v3727_v24 = vpop.eup %3726  ;;  %v5045_v41 = vadd.f32 1.0, %v3725_v55  ;;  %v3408_v43 = vmul.f32 -1.442695, %v1946_v36 }
 0x362   : > { %3231 = vst [vmem:[%s4688_s29 + $0x128] sm:$0xff] %v2802_v25  ;;  %v3729_v42 = vpop.eup %3728  ;;  %v2805_v46 = vmul.f32 %v3727_v24, %v5031_v47  ;;  %vm2810_vm4 = vweird.f32 %v3727_v24 }
 0x363   : > { %v2988_v40 = vadd.f32 %v3723_v44, %v2987_v1  ;;  %v3000_v15 = vmul.f32 %v3729_v42, %v5034_v52  ;;  %3732 = vrcp.f32 %v5045_v41  ;;  %v3731_v60 = vpop.eup %3730  ;;  %vm3005_vm5 = vweird.f32 %v3729_v42  ;;  %vm2811_vm8 = vmor %vm2809_vm6, %vm2810_vm4 }
 0x364   : > { %v2806_v31 = vsub.f32 1.0, %v2805_v46  ;;  %3734 = vpow2.f32 %v3408_v43  ;;  %v5055_v62 = vadd.f32 1.0, %v3731_v60  ;;  %vm3006_vm10 = vmor %vm3004_vm7, %vm3005_vm5  ;;  %v2828_v48 = vand.u32 2147483647, %v5045_v41 }
 0x365   : > { %v2992_v29 = vsel %vm2991_vm2, %v3723_v44, %v2988_v40  ;;  %v3001_v37 = vsub.f32 1.0, %v3000_v15  ;;  %v2830_v8 = vand.u32 2147483648, %v5045_v41  ;;  %vm2824_vm13 = vweird.f32 %v5045_v41 }
 0x366   : > { %v2997_v38 = vsel %vm2994_vm3, %v2996_v61, %v2992_v29  ;;  %v1906_v53 = vpop.f32.mrf.mxu2  ;;  %v1948_v19 = vpop.f32.mrf.mxu3  ;;  %v2807_v51 = vmul.f32 %v3727_v24, %v2806_v31  ;;  %3736 = vrcp.f32 %v5055_v62  ;;  %vm2829_vm15 = vcmp.eq.f32.partialorder %v2828_v48, 8.507059e+37 }
 0x367   : > { %3244 = vst [vmem:[%s4688_s29 + $0x190] sm:$0xff] %v2997_v38  ;;  %v1907_v59 = vadd.f32 %v4975_v22, %v1906_v53  ;;  %v1949_v2 = vadd.f32 %v4975_v22, %v1948_v19  ;;  %v3002_v45 = vmul.f32 %v3729_v42, %v3001_v37  ;;  %v2831_v9 = vor.u32 1.1754944e-38, %v2830_v8 }
 0x368   : > { %v2808_v10 = vadd.f32 %v3727_v24, %v2807_v51  ;;  %v3023_v54 = vand.u32 2147483647, %v5055_v62  ;;  %v3025_v25 = vand.u32 2147483648, %v5055_v62  ;;  %vm3019_vm1 = vweird.f32 %v5055_v62 }
 0x369   : > { %v3395_v5 = vmul.f32 -1.442695, %v1907_v59  ;;  %v3733_v26 = vpop.eup %3732  ;;  %v3003_v7 = vadd.f32 %v3729_v42, %v3002_v45  ;;  %v3409_v16 = vmul.f32 -1.442695, %v1949_v2 }
 0x36a   : > { %v2812_v0 = vsel %vm2811_vm8, %v3727_v24, %v2808_v10  ;;  %v2820_v17 = vmul.f32 %v3733_v26, %v5045_v41  ;;  %v3735_v18 = vpop.eup %3734  ;;  %vm2825_vm12 = vweird.f32 %v3733_v26  ;;  %vm3024_vm3 = vcmp.eq.f32.partialorder %v3023_v54, 8.507059e+37 }
 0x36b   : > { %3738 = vpow2.f32 %v3395_v5  ;;  %v2817_v20 = vsel %vm2814_vm9, %v2816_v12, %v2812_v0  ;;  %v3007_v58 = vsel %vm3006_vm10, %v3729_v42, %v3003_v7  ;;  %v5065_v30 = vadd.f32 1.0, %v3735_v18  ;;  %vm2826_vm14 = vmor %vm2824_vm13, %vm2825_vm12 }
 0x36c   : > { %3740 = vpow2.f32 %v3409_v16  ;;  %3232 = vst [vmem:[%s4688_s29 + $0x130] sm:$0xff] %v2817_v20  ;;  %v3012_v4 = vsel %vm3009_vm11, %v3011_v11, %v3007_v58  ;;  %v2821_v21 = vsub.f32 1.0, %v2820_v17  ;;  %v3737_v28 = vpop.eup %3736  ;;  %v3026_v43 = vor.u32 1.1754944e-38, %v3025_v25 }
 0x36d   : > { %3245 = vst [vmem:[%s4688_s29 + $0x198] sm:$0xff] %v3012_v4  ;;  %3742 = vrcp.f32 %v5065_v30  ;;  %v3015_v44 = vmul.f32 %v3737_v28, %v5055_v62  ;;  %vm3020_vm0 = vweird.f32 %v3737_v28  ;;  %v3038_v42 = vand.u32 2147483647, %v5065_v30 }
 0x36e   : > { %v1951_v34 = vpop.f32.mrf.mxu3  ;;  %v2822_v35 = vmul.f32 %v3733_v26, %v2821_v21  ;;  %vm3021_vm2 = vmor %vm3019_vm1, %vm3020_vm0  ;;  %v3040_v49 = vand.u32 2147483648, %v5065_v30  ;;  %vm3034_vm5 = vweird.f32 %v5065_v30 }
 0x36f   : > { %v1952_v57 = vadd.f32 %v4975_v22, %v1951_v34  ;;  %v1909_v13 = vpop.f32.mrf.mxu2  ;;  %v3016_v27 = vsub.f32 1.0, %v3015_v44  ;;  %vm3039_vm6 = vcmp.eq.f32.partialorder %v3038_v42, 8.507059e+37 }
 0x370   : > { %v2823_v52 = vadd.f32 %v3733_v26, %v2822_v35  ;;  %v1910_v56 = vadd.f32 %v4975_v22, %v1909_v13  ;;  %v3041_v51 = vor.u32 1.1754944e-38, %v3040_v49 }
 0x371   : > { %v3739_v47 = vpop.eup %3738  ;;  %v3410_v39 = vmul.f32 -1.442695, %v1952_v57  ;;  %v3017_v32 = vmul.f32 %v3737_v28, %v3016_v27 }
 0x372   : > { %v5074_v33 = vadd.f32 1.0, %v3739_v47  ;;  %v3741_v6 = vpop.eup %3740  ;;  %v2827_v63 = vsel %vm2826_vm14, %v3733_v26, %v2823_v52  ;;  %v3396_v55 = vmul.f32 -1.442695, %v1910_v56 }
 0x373   : > { %3744 = vpow2.f32 %v3410_v39  ;;  %v2832_v14 = vsel %vm2829_vm15, %v2831_v9, %v2827_v63  ;;  %v5080_v1 = vadd.f32 1.0, %v3741_v6  ;;  %v3743_v36 = vpop.eup %3742  ;;  %v3018_v40 = vadd.f32 %v3737_v28, %v3017_v32 }
 0x374   : > { %3746 = vrcp.f32 %v5074_v33  ;;  %3233 = vst [vmem:[%s4688_s29 + $0x138] sm:$0xff] %v2832_v14  ;;  %v3030_v41 = vmul.f32 %v3743_v36, %v5065_v30  ;;  %vm3035_vm4 = vweird.f32 %v3743_v36  ;;  %vm2839_vm8 = vweird.f32 %v5074_v33 }
 0x375   : > { %3748 = vrcp.f32 %v5080_v1  ;;  %v3022_v46 = vsel %vm3021_vm2, %v3737_v28, %v3018_v40  ;;  %vm3036_vm7 = vmor %vm3034_vm5, %vm3035_vm4  ;;  %v2843_v62 = vand.u32 2147483647, %v5074_v33  ;;  %v2845_v2 = vand.u32 2147483648, %v5074_v33 }
 0x376   : > { %v1954_v24 = vpop.f32.mrf.mxu3  ;;  %v3031_v29 = vsub.f32 1.0, %v3030_v41  ;;  %3750 = vpow2.f32 %v3396_v55  ;;  %v3027_v31 = vsel %vm3024_vm3, %v3026_v43, %v3022_v46  ;;  %v3053_v7 = vand.u32 2147483647, %v5080_v1 }
 0x377   : > { %v1955_v15 = vadd.f32 %v4975_v22, %v1954_v24  ;;  %3246 = vst [vmem:[%s4688_s29 + $0x1a0] sm:$0xff] %v3027_v31  ;;  %v3055_v16 = vand.u32 2147483648, %v5080_v1  ;;  %vm2844_vm11 = vcmp.eq.f32.partialorder %v2843_v62, 8.507059e+37  ;;  %v2846_v21 = vor.u32 1.1754944e-38, %v2845_v2 }
 0x378   : > { %v3032_v53 = vmul.f32 %v3743_v36, %v3031_v29  ;;  %vm3049_vm12 = vweird.f32 %v5080_v1  ;;  %vm5111_vm14 = vcmp.eq.f32.partialorder %v3053_v7, 8.507059e+37 }
 0x379   : > { %v3745_v61 = vpop.eup %3744  ;;  %v3411_v60 = vmul.f32 -1.442695, %v1955_v15  ;;  %v3056_v35 = vor.u32 1.1754944e-38, %v3055_v16 }
 0x37a   : > { %v3747_v38 = vpop.eup %3746  ;;  %v5089_v50 = vadd.f32 1.0, %v3745_v61  ;;  %v3033_v37 = vadd.f32 %v3743_v36, %v3032_v53 }
 0x37b   : > { %v2835_v19 = vmul.f32 %v3747_v38, %v5074_v33  ;;  %v3749_v59 = vpop.eup %3748  ;;  %vm2840_vm9 = vweird.f32 %v3747_v38 }
 0x37c   : > { %3752 = vrcp.f32 %v5089_v50  ;;  %v3751_v3 = vpop.eup %3750  ;;  %v3037_v5 = vsel %vm3036_vm7, %v3743_v36, %v3033_v37  ;;  %v3045_v26 = vmul.f32 %v3749_v59, %v5080_v1  ;;  %vm2841_vm10 = vmor %vm2839_vm8, %vm2840_vm9  ;;  %vm3050_vm13 = vweird.f32 %v3749_v59 }
 0x37d   : > { %v2836_v23 = vsub.f32 1.0, %v2835_v19  ;;  %3754 = vpow2.f32 %v3411_v60  ;;  %v3042_v12 = vsel %vm3039_vm6, %v3041_v51, %v3037_v5  ;;  %v5101_v0 = vadd.f32 1.0, %v3751_v3  ;;  %vm3051_vm15 = vmor %vm3049_vm12, %vm3050_vm13 }
 0x37e   : > { %v1957_v45 = vpop.f32.mrf.mxu3  ;;  %3247 = vst [vmem:[%s4688_s29 + $0x1a8] sm:$0xff] %v3042_v12  ;;  %v3046_v18 = vsub.f32 1.0, %v3045_v26  ;;  %v3068_v33 = vand.u32 2147483647, %v5089_v50  ;;  %v3070_v56 = vand.u32 2147483648, %v5089_v50  ;;  %vm3064_vm1 = vweird.f32 %v5089_v50 }
 0x37f   : > { %v2837_v10 = vmul.f32 %v3747_v38, %v2836_v23  ;;  %v1958_v20 = vadd.f32 %v4975_v22, %v1957_v45  ;;  %3756 = vrcp.f32 %v5101_v0  ;;  %v2858_v24 = vand.u32 2147483647, %v5101_v0 }
 0x380   : > { %v1912_v11 = vpop.f32.mrf.mxu2  ;;  %v3047_v48 = vmul.f32 %v3749_v59, %v3046_v18  ;;  %v3071_v55 = vor.u32 1.1754944e-38, %v3070_v56  ;;  %vm3069_vm3 = vcmp.eq.f32.partialorder %v3068_v33, 8.507059e+37  ;;  %v2860_v46 = vand.u32 2147483648, %v5101_v0 }
 0x381   : > { %v2838_v17 = vadd.f32 %v3747_v38, %v2837_v10  ;;  %v1913_v58 = vadd.f32 %v4975_v22, %v1912_v11  ;;  %v3412_v39 = vmul.f32 -1.442695, %v1958_v20  ;;  %vm2854_vm5 = vweird.f32 %v5101_v0 }
 0x382   : > { %v3753_v4 = vpop.eup %3752  ;;  %v3048_v47 = vadd.f32 %v3749_v59, %v3047_v48  ;;  %vm5136_vm6 = vcmp.eq.f32.partialorder %v2858_v24, 8.507059e+37  ;;  %v2861_v51 = vor.u32 1.1754944e-38, %v2860_v46 }
 0x383   : > { %v3755_v30 = vpop.eup %3754  ;;  %v2842_v34 = vsel %vm2841_vm10, %v3747_v38, %v2838_v17  ;;  %v3060_v8 = vmul.f32 %v3753_v4, %v5089_v50  ;;  %v3397_v52 = vmul.f32 -1.442695, %v1913_v58  ;;  %vm3065_vm0 = vweird.f32 %v3753_v4 }
 0x384   : > { %v2847_v57 = vsel %vm2844_vm11, %v2846_v21, %v2842_v34  ;;  %v5115_v13 = vadd.f32 1.0, %v3755_v30  ;;  %v3052_v9 = vsel %vm3051_vm15, %v3749_v59, %v3048_v47  ;;  %vm3066_vm2 = vmor %vm3064_vm1, %vm3065_vm0 }
 0x385   : > { %3234 = vst [vmem:[%s4688_s29 + $0x140] sm:$0xff] %v2847_v57  ;;  %v3061_v44 = vsub.f32 1.0, %v3060_v8  ;;  %v3757_v54 = vpop.eup %3756  ;;  %v3057_v25 = vsel %vm5111_vm14, %v3056_v35, %v3052_v9 }
 0x386   : > { %3758 = vrcp.f32 %v5115_v13  ;;  %v1960_v6 = vpop.f32.mrf.mxu3  ;;  %3248 = vst [vmem:[%s4688_s29 + $0x1b0] sm:$0xff] %v3057_v25  ;;  %v2850_v1 = vmul.f32 %v3757_v54, %v5101_v0  ;;  %vm2855_vm4 = vweird.f32 %v3757_v54  ;;  %v3083_v62 = vand.u32 2147483647, %v5115_v13 }
 0x387   : > { %v3062_v27 = vmul.f32 %v3753_v4, %v3061_v44  ;;  %3760 = vpow2.f32 %v3412_v39  ;;  %v1961_v63 = vadd.f32 %v4975_v22, %v1960_v6  ;;  %vm2856_vm7 = vmor %vm2854_vm5, %vm2855_vm4  ;;  %v3085_v2 = vand.u32 2147483648, %v5115_v13 }
 0x388   : > { %3762 = vpow2.f32 %v3397_v52  ;;  %v1915_v14 = vpop.f32.mrf.mxu2  ;;  %v2851_v43 = vsub.f32 1.0, %v2850_v1  ;;  %vm3079_vm9 = vweird.f32 %v5115_v13  ;;  %vm3084_vm11 = vcmp.eq.f32.partialorder %v3083_v62, 8.507059e+37 }
 0x389   : > { %v3063_v32 = vadd.f32 %v3753_v4, %v3062_v27  ;;  %v3413_v36 = vmul.f32 -1.442695, %v1961_v63  ;;  %v1916_v40 = vadd.f32 %v4975_v22, %v1915_v14  ;;  %v3086_v0 = vor.u32 1.1754944e-38, %v3085_v2 }
 0x38a   : > { %v2852_v38 = vmul.f32 %v3757_v54, %v2851_v43 }
 0x38b   : > { %v3067_v41 = vsel %vm3066_vm2, %v3753_v4, %v3063_v32  ;;  %3764 = vpow2.f32 %v3413_v36  ;;  %v3398_v29 = vmul.f32 -1.442695, %v1916_v40 }
 0x38c   : > { %v3759_v42 = vpop.eup %3758  ;;  %v3072_v61 = vsel %vm3069_vm3, %v3071_v55, %v3067_v41  ;;  %v2853_v60 = vadd.f32 %v3757_v54, %v2852_v38 }
 0x38d   : > { %v3761_v15 = vpop.eup %3760  ;;  %3249 = vst [vmem:[%s4688_s29 + $0x1b8] sm:$0xff] %v3072_v61  ;;  %v3075_v31 = vmul.f32 %v3759_v42, %v5115_v13  ;;  %3766 = vpow2.f32 %v3398_v29  ;;  %vm3080_vm8 = vweird.f32 %v3759_v42 }
 0x38e   : > { %v3763_v49 = vpop.eup %3762  ;;  %v5140_v53 = vadd.f32 1.0, %v3761_v15  ;;  %v1963_v19 = vpop.f32.mrf.mxu3  ;;  %v2857_v3 = vsel %vm2856_vm7, %v3757_v54, %v2853_v60  ;;  %vm3081_vm10 = vmor %vm3079_vm9, %vm3080_vm8 }
 0x38f   : > { %v3076_v37 = vsub.f32 1.0, %v3075_v31  ;;  %v5142_v23 = vadd.f32 1.0, %v3763_v49  ;;  %v1964_v59 = vadd.f32 %v4975_v22, %v1963_v19  ;;  %v2862_v10 = vsel %vm5136_vm6, %v2861_v51, %v2857_v3 }
 0x390   : > { %3768 = vrcp.f32 %v5140_v53  ;;  %3235 = vst [vmem:[%s4688_s29 + $0x148] sm:$0xff] %v2862_v10  ;;  %v3098_v20 = vand.u32 2147483647, %v5140_v53  ;;  %v3100_v58 = vand.u32 2147483648, %v5140_v53  ;;  %vm3094_vm12 = vweird.f32 %v5140_v53 }
 0x391   : > { %v3765_v45 = vpop.eup %3764  ;;  %v3077_v5 = vmul.f32 %v3759_v42, %v3076_v37  ;;  %3770 = vrcp.f32 %v5142_v23  ;;  %v3414_v7 = vmul.f32 -1.442695, %v1964_v59  ;;  %v2873_v48 = vand.u32 2147483647, %v5142_v23 }
 0x392   : > { %v5153_v12 = vadd.f32 1.0, %v3765_v45  ;;  %v2875_v28 = vand.u32 2147483648, %v5142_v23  ;;  %vm2869_vm13 = vweird.f32 %v5142_v23  ;;  %vm5169_vm14 = vcmp.eq.f32.partialorder %v3098_v20, 8.507059e+37 }
 0x393   : > { %v3078_v26 = vadd.f32 %v3759_v42, %v3077_v5  ;;  %v3767_v16 = vpop.eup %3766  ;;  %v3101_v6 = vor.u32 1.1754944e-38, %v3100_v58  ;;  %vm5174_vm0 = vcmp.eq.f32.partialorder %v2873_v48, 8.507059e+37 }
 0x394   : > { %3772 = vrcp.f32 %v5153_v12  ;;  %v5158_v4 = vadd.f32 1.0, %v3767_v16  ;;  %v2876_v63 = vor.u32 1.1754944e-38, %v2875_v28  ;;  %v3113_v32 = vand.u32 2147483647, %v5153_v12 }
 0x395   : > { %v3082_v11 = vsel %vm3081_vm10, %v3759_v42, %v3078_v26  ;;  %3774 = vpow2.f32 %v3414_v7  ;;  %v3115_v24 = vand.u32 2147483648, %v5153_v12  ;;  %vm3109_vm5 = vweird.f32 %v5153_v12 }
 0x396   : > { %v3769_v17 = vpop.eup %3768  ;;  %v3087_v18 = vsel %vm3084_vm11, %v3086_v0, %v3082_v11  ;;  %v1966_v21 = vpop.f32.mrf.mxu3  ;;  %3776 = vrcp.f32 %v5158_v4  ;;  %vm3114_vm7 = vcmp.eq.f32.partialorder %v3113_v32, 8.507059e+37  ;;  %v2890_v19 = vand.u32 2147483648, %v5158_v4  ;;  %v5211_v11 = vld [vmem:[%s5247_s3 + $0x3] ss:$0 sm:$0xff] }
 0x397   : > { %v3771_v30 = vpop.eup %3770  ;;  %3250 = vst [vmem:[%s4688_s29 + $0x1c0] sm:$0xff] %v3087_v18  ;;  %v3090_v34 = vmul.f32 %v3769_v17, %v5140_v53  ;;  %v1967_v8 = vadd.f32 %v4975_v22, %v1966_v21  ;;  %vm3095_vm15 = vweird.f32 %v3769_v17  ;;  %v3116_v53 = vor.u32 1.1754944e-38, %v3115_v24 }
 0x398   : > { %v2865_v57 = vmul.f32 %v3771_v30, %v5142_v23  ;;  %vm2870_vm1 = vweird.f32 %v3771_v30  ;;  %vm3096_vm2 = vmor %vm3094_vm12, %vm3095_vm15  ;;  %v2888_v59 = vand.u32 2147483647, %v5158_v4  ;;  %vm2884_vm9 = vweird.f32 %v5158_v4 }
 0x399   : > { %v3091_v35 = vsub.f32 1.0, %v3090_v34  ;;  %v3415_v39 = vmul.f32 -1.442695, %v1967_v8  ;;  %vm2871_vm3 = vmor %vm2869_vm13, %vm2870_vm1  ;;  %v2891_v10 = vor.u32 1.1754944e-38, %v2890_v19 }
 0x39a   : > { %v1918_v13 = vpop.f32.mrf.mxu2  ;;  %v2866_v44 = vsub.f32 1.0, %v2865_v57  ;;  %v3773_v33 = vpop.eup %3772  ;;  %vm2889_vm11 = vcmp.eq.f32.partialorder %v2888_v59, 8.507059e+37 }
 0x39b   : > { %v1919_v52 = vadd.f32 %v4975_v22, %v1918_v13  ;;  %v3092_v56 = vmul.f32 %v3769_v17, %v3091_v35  ;;  %v3105_v54 = vmul.f32 %v3773_v33, %v5153_v12  ;;  %v3775_v25 = vpop.eup %3774  ;;  %3778 = vpow2.f32 %v3415_v39 }
 0x39c   : > { %v2867_v27 = vmul.f32 %v3771_v30, %v2866_v44  ;;  %v5183_v40 = vadd.f32 1.0, %v3775_v25  ;;  %v3777_v43 = vpop.eup %3776  ;;  %vm3110_vm4 = vweird.f32 %v3773_v33 }
 0x39d   : > { %v3093_v14 = vadd.f32 %v3769_v17, %v3092_v56  ;;  %v3399_v1 = vmul.f32 -1.442695, %v1919_v52  ;;  %v3106_v55 = vsub.f32 1.0, %v3105_v54  ;;  %v2880_v38 = vmul.f32 %v3777_v43, %v5158_v4  ;;  %vm3111_vm6 = vmor %vm3109_vm5, %vm3110_vm4 }
 0x39e   : > { %v2868_v36 = vadd.f32 %v3771_v30, %v2867_v27  ;;  %v1969_v41 = vpop.f32.mrf.mxu3  ;;  %vm2885_vm8 = vweird.f32 %v3777_v43  ;;  %v3128_v20 = vand.u32 2147483647, %v5183_v40  ;;  %v3130_v58 = vand.u32 2147483648, %v5183_v40 }
 0x39f   : > { %v3097_v42 = vsel %vm3096_vm2, %v3769_v17, %v3093_v14  ;;  %3780 = vpow2.f32 %v3399_v1  ;;  %v1970_v61 = vadd.f32 %v4975_v22, %v1969_v41  ;;  %v3107_v15 = vmul.f32 %v3773_v33, %v3106_v55  ;;  %vm2886_vm10 = vmor %vm2884_vm9, %vm2885_vm8 }
 0x3a0   : > { %v3102_v46 = vsel %vm5169_vm14, %v3101_v6, %v3097_v42  ;;  %v2872_v29 = vsel %vm2871_vm3, %v3771_v30, %v2868_v36  ;;  %3782 = vrcp.f32 %v5183_v40  ;;  %v2881_v50 = vsub.f32 1.0, %v2880_v38 }
 0x3a1   : > { %3251 = vst [vmem:[%s4688_s29 + $0x1c8] sm:$0xff] %v3102_v46  ;;  %v2877_v31 = vsel %vm5174_vm0, %v2876_v63, %v2872_v29  ;;  %v3108_v49 = vadd.f32 %v3773_v33, %v3107_v15  ;;  %v3779_v22 = vpop.eup %3778  ;;  %v3416_v60 = vmul.f32 -1.442695, %v1970_v61  ;;  %vm3124_vm13 = vweird.f32 %v5183_v40 }
 0x3a2   : > { %3236 = vst [vmem:[%s4688_s29 + $0x150] sm:$0xff] %v2877_v31  ;;  %v2882_v23 = vmul.f32 %v3777_v43, %v2881_v50  ;;  %v2230_v2 = vadd.f32 1.0, %v3779_v22  ;;  %vm3129_vm15 = vcmp.eq.f32.partialorder %v3128_v20, 8.507059e+37  ;;  %v3131_v35 = vor.u32 1.1754944e-38, %v3130_v58 }
 0x3a3   : > { %v3112_v37 = vsel %vm3111_vm6, %v3773_v33, %v3108_v49  ;;  %3784 = vpow2.f32 %v3416_v60 }
 0x3a4   : > { %v3117_v62 = vsel %vm3114_vm7, %v3116_v53, %v3112_v37  ;;  %v2883_v45 = vadd.f32 %v3777_v43, %v2882_v23  ;;  %3786 = vrcp.f32 %v2230_v2  ;;  %v3143_v13 = vand.u32 2147483647, %v2230_v2 }
 0x3a5   : > { %v3781_v51 = vpop.eup %3780  ;;  %3252 = vst [vmem:[%s4688_s29 + $0x1d0] sm:$0xff] %v3117_v62  ;;  %v3145_v52 = vand.u32 2147483648, %v2230_v2  ;;  %vm3139_vm1 = vweird.f32 %v2230_v2 }
 0x3a6   : > { %v5203_v3 = vadd.f32 1.0, %v3781_v51  ;;  %v3783_v5 = vpop.eup %3782  ;;  %v2887_v26 = vsel %vm2886_vm10, %v3777_v43, %v2883_v45  ;;  %vm3144_vm3 = vcmp.eq.f32.partialorder %v3143_v13, 8.507059e+37 }
 0x3a7   : > { %v3120_v12 = vmul.f32 %v3783_v5, %v5183_v40  ;;  %v2892_v7 = vsel %vm2889_vm11, %v2891_v10, %v2887_v26  ;;  %vm3125_vm12 = vweird.f32 %v3783_v5  ;;  %v3146_v55 = vor.u32 1.1754944e-38, %v3145_v52 }
 0x3a8   : > { %3788 = vrcp.f32 %v5203_v3  ;;  %3237 = vst [vmem:[%s4688_s29 + $0x158] sm:$0xff] %v2892_v7  ;;  %vm3126_vm14 = vmor %vm3124_vm13, %vm3125_vm12  ;;  %v2903_v6 = vand.u32 2147483647, %v5203_v3  ;;  %v2905_v54 = vand.u32 2147483648, %v5203_v3  ;;  %vm2899_vm5 = vweird.f32 %v5203_v3 }
 0x3a9   : > { %v3121_v0 = vsub.f32 1.0, %v3120_v12  ;;  %v3785_v18 = vpop.eup %3784 }
 0x3aa   : > { %v1921_v16 = vpop.f32.mrf.mxu2  ;;  %v5216_v21 = vadd.f32 1.0, %v3785_v18  ;;  %v3787_v30 = vpop.eup %3786  ;;  %vm2904_vm7 = vcmp.eq.f32.partialorder %v2903_v6, 8.507059e+37  ;;  %v2906_v61 = vor.u32 1.1754944e-38, %v2905_v54 }
 0x3ab   : > { %v1922_v17 = vadd.f32 %v5211_v11, %v1921_v16  ;;  %v3122_v4 = vmul.f32 %v3783_v5, %v3121_v0  ;;  %v3135_v57 = vmul.f32 %v3787_v30, %v2230_v2  ;;  %vm3140_vm0 = vweird.f32 %v3787_v30 }
 0x3ac   : > { %3790 = vrcp.f32 %v5216_v21  ;;  %vm3141_vm4 = vmor %vm3139_vm1, %vm3140_vm0  ;;  %v3160_v50 = vand.u32 2147483648, %v5216_v21  ;;  %v3158_v19 = vand.u32 2147483647, %v5216_v21  ;;  %vm3154_vm9 = vweird.f32 %v5216_v21 }
 0x3ad   : > { %v3400_v34 = vmul.f32 -1.442695, %v1922_v17  ;;  %v3123_v8 = vadd.f32 %v3783_v5, %v3122_v4  ;;  %v3136_v39 = vsub.f32 1.0, %v3135_v57 }
 0x3ae   : > { %v3789_v48 = vpop.eup %3788  ;;  %v1972_v28 = vpop.f32.mrf.mxu3  ;;  %v3161_v62 = vor.u32 1.1754944e-38, %v3160_v50  ;;  %vm3159_vm11 = vcmp.eq.f32.partialorder %v3158_v19, 8.507059e+37 }
 0x3af   : > { %v2895_v47 = vmul.f32 %v3789_v48, %v5203_v3  ;;  %v3127_v44 = vsel %vm3126_vm14, %v3783_v5, %v3123_v8  ;;  %3792 = vpow2.f32 %v3400_v34  ;;  %v1973_v9 = vadd.f32 %v5211_v11, %v1972_v28 }
 0x3b0   : > { %v3132_v33 = vsel %vm3129_vm15, %v3131_v35, %v3127_v44  ;;  %v3137_v63 = vmul.f32 %v3787_v30, %v3136_v39  ;;  %vm2900_vm2 = vweird.f32 %v3789_v48 }
 0x3b1   : > { %v2896_v56 = vsub.f32 1.0, %v2895_v47  ;;  %3253 = vst [vmem:[%s4688_s29 + $0x1d8] sm:$0xff] %v3132_v33  ;;  %v3417_v32 = vmul.f32 -1.442695, %v1973_v9  ;;  %vm2901_vm6 = vmor %vm2899_vm5, %vm2900_vm2 }
 0x3b2   : > { %v3791_v1 = vpop.eup %3790  ;;  %v3138_v36 = vadd.f32 %v3787_v30, %v3137_v63 }
 0x3b3   : > { %v1924_v27 = vpop.f32.mrf.mxu2  ;;  %v2897_v14 = vmul.f32 %v3789_v48, %v2896_v56  ;;  %v3150_v41 = vmul.f32 %v3791_v1, %v5216_v21  ;;  %3794 = vpow2.f32 %v3417_v32  ;;  %vm3155_vm8 = vweird.f32 %v3791_v1 }
 0x3b4   : > { %v1925_v25 = vadd.f32 %v5211_v11, %v1924_v27  ;;  %v3142_v42 = vsel %vm3141_vm4, %v3787_v30, %v3138_v36  ;;  %vm3156_vm10 = vmor %vm3154_vm9, %vm3155_vm8 }
 0x3b5   : > { %v2898_v40 = vadd.f32 %v3789_v48, %v2897_v14  ;;  %v3793_v43 = vpop.eup %3792  ;;  %v3147_v29 = vsel %vm3144_vm3, %v3146_v55, %v3142_v42  ;;  %v3151_v38 = vsub.f32 1.0, %v3150_v41 }
 0x3b6   : > { %v3401_v24 = vmul.f32 -1.442695, %v1925_v25  ;;  %v1975_v46 = vpop.f32.mrf.mxu3  ;;  %v2215_v31 = vadd.f32 1.0, %v3793_v43  ;;  %3254 = vst [vmem:[%s4688_s29 + $0x1e0] sm:$0xff] %v3147_v29 }
 0x3b7   : > { %v2902_v15 = vsel %vm2901_vm6, %v3789_v48, %v2898_v40  ;;  %v1976_v22 = vadd.f32 %v5211_v11, %v1975_v46  ;;  %v3152_v53 = vmul.f32 %v3791_v1, %v3151_v38 }
 0x3b8   : > { %3796 = vpow2.f32 %v3401_v24  ;;  %v2907_v49 = vsel %vm2904_vm7, %v2906_v61, %v2902_v15  ;;  %v2918_v17 = vand.u32 2147483647, %v2215_v31  ;;  %v2920_v18 = vand.u32 2147483648, %v2215_v31 }
 0x3b9   : > { %3238 = vst [vmem:[%s4688_s29 + $0x160] sm:$0xff] %v2907_v49  ;;  %3798 = vrcp.f32 %v2215_v31  ;;  %v3418_v60 = vmul.f32 -1.442695, %v1976_v22  ;;  %v3795_v37 = vpop.eup %3794  ;;  %v3153_v23 = vadd.f32 %v3791_v1, %v3152_v53  ;;  %vm2914_vm13 = vweird.f32 %v2215_v31 }
 0x3ba   : > { %v2232_v2 = vadd.f32 1.0, %v3795_v37  ;;  %vm2919_vm15 = vcmp.eq.f32.partialorder %v2918_v17, 8.507059e+37  ;;  %v2921_v48 = vor.u32 1.1754944e-38, %v2920_v18 }
 0x3bb   : > { %v1927_v59 = vpop.f32.mrf.mxu2  ;;  %3800 = vpow2.f32 %v3418_v60  ;;  %v3157_v45 = vsel %vm3156_vm10, %v3791_v1, %v3153_v23 }
 0x3bc   : > { %v1928_v5 = vadd.f32 %v5211_v11, %v1927_v59  ;;  %v3162_v10 = vsel %vm3159_vm11, %v3161_v62, %v3157_v45  ;;  %3802 = vrcp.f32 %v2232_v2  ;;  %v3173_v28 = vand.u32 2147483647, %v2232_v2 }
 0x3bd   : > { %3255 = vst [vmem:[%s4688_s29 + $0x1e8] sm:$0xff] %v3162_v10  ;;  %v3175_v35 = vand.u32 2147483648, %v2232_v2  ;;  %vm3169_vm2 = vweird.f32 %v2232_v2 }
 0x3be   : > { %v3797_v51 = vpop.eup %3796  ;;  %v3402_v7 = vmul.f32 -1.442695, %v1928_v5  ;;  %vm3174_vm5 = vcmp.eq.f32.partialorder %v3173_v28, 8.507059e+37 }
 0x3bf   : > { %v2216_v3 = vadd.f32 1.0, %v3797_v51  ;;  %v3799_v26 = vpop.eup %3798  ;;  %v3176_v63 = vor.u32 1.1754944e-38, %v3175_v35 }
 0x3c0   : > { %v2910_v12 = vmul.f32 %v3799_v26, %v2215_v31  ;;  %vm2915_vm12 = vweird.f32 %v3799_v26 }
 0x3c1   : > { %3804 = vrcp.f32 %v2216_v3  ;;  %v3801_v16 = vpop.eup %3800  ;;  %vm2916_vm14 = vmor %vm2914_vm13, %vm2915_vm12  ;;  %v2935_v52 = vand.u32 2147483648, %v2216_v3  ;;  %v2933_v56 = vand.u32 2147483647, %v2216_v3  ;;  %vm2929_vm3 = vweird.f32 %v2216_v3 }
 0x3c2   : > { %v2911_v0 = vsub.f32 1.0, %v2910_v12  ;;  %v2233_v20 = vadd.f32 1.0, %v3801_v16  ;;  %3806 = vpow2.f32 %v3402_v7  ;;  %v3803_v58 = vpop.eup %3802 }
 0x3c3   : > { %v3165_v30 = vmul.f32 %v3803_v58, %v2232_v2  ;;  %vm3170_vm0 = vweird.f32 %v3803_v58  ;;  %v2936_v32 = vor.u32 1.1754944e-38, %v2935_v52  ;;  %vm2934_vm7 = vcmp.eq.f32.partialorder %v2933_v56, 8.507059e+37 }
 0x3c4   : > { %v2912_v4 = vmul.f32 %v3799_v26, %v2911_v0  ;;  %3808 = vrcp.f32 %v2233_v20  ;;  %vm3171_vm4 = vmor %vm3169_vm2, %vm3170_vm0  ;;  %v3190_v40 = vand.u32 2147483648, %v2233_v20  ;;  %v3188_v43 = vand.u32 2147483647, %v2233_v20 }
 0x3c5   : > { %v3166_v8 = vsub.f32 1.0, %v3165_v30  ;;  %vm3184_vm9 = vweird.f32 %v2233_v20 }
 0x3c6   : > { %v2913_v11 = vadd.f32 %v3799_v26, %v2912_v4  ;;  %v3191_v46 = vor.u32 1.1754944e-38, %v3190_v40  ;;  %vm3189_vm11 = vcmp.eq.f32.partialorder %v3188_v43, 8.507059e+37 }
 0x3c7   : > { %v3805_v21 = vpop.eup %3804  ;;  %v3167_v39 = vmul.f32 %v3803_v58, %v3166_v8 }
 0x3c8   : > { %v2925_v34 = vmul.f32 %v3805_v21, %v2216_v3  ;;  %v2917_v57 = vsel %vm2916_vm14, %v3799_v26, %v2913_v11  ;;  %v3807_v47 = vpop.eup %3806  ;;  %vm2930_vm1 = vweird.f32 %v3805_v21 }
 0x3c9   : > { %v2922_v44 = vsel %vm2919_vm15, %v2921_v48, %v2917_v57  ;;  %v2217_v6 = vadd.f32 1.0, %v3807_v47  ;;  %v3168_v27 = vadd.f32 %v3803_v58, %v3167_v39  ;;  %vm2931_vm6 = vmor %vm2929_vm3, %vm2930_vm1 }
 0x3ca   : > { %v2926_v13 = vsub.f32 1.0, %v2925_v34  ;;  %3239 = vst [vmem:[%s4688_s29 + $0x168] sm:$0xff] %v2922_v44  ;;  %v3809_v9 = vpop.eup %3808 }
 0x3cb   : > { %v3180_v25 = vmul.f32 %v3809_v9, %v2233_v20  ;;  %3810 = vrcp.f32 %v2217_v6  ;;  %v3172_v14 = vsel %vm3171_vm4, %v3803_v58, %v3168_v27  ;;  %vm3185_vm8 = vweird.f32 %v3809_v9 }
 0x3cc   : > { %v2927_v33 = vmul.f32 %v3805_v21, %v2926_v13  ;;  %v3177_v1 = vsel %vm3174_vm5, %v3176_v63, %v3172_v14  ;;  %vm3186_vm10 = vmor %vm3184_vm9, %vm3185_vm8  ;;  %v2950_v49 = vand.u32 2147483648, %v2217_v6  ;;  %v2948_v22 = vand.u32 2147483647, %v2217_v6 }
 0x3cd   : > { %v3181_v55 = vsub.f32 1.0, %v3180_v25  ;;  %3256 = vst [vmem:[%s4688_s29 + $0x1f0] sm:$0xff] %v3177_v1  ;;  %vm2944_vm13 = vweird.f32 %v2217_v6 }
 0x3ce   : > { %v2928_v54 = vadd.f32 %v3805_v21, %v2927_v33  ;;  %v2951_v19 = vor.u32 1.1754944e-38, %v2950_v49  ;;  %vm2949_vm15 = vcmp.eq.f32.partialorder %v2948_v22, 8.507059e+37 }
 0x3cf   : > { %v3182_v41 = vmul.f32 %v3809_v9, %v3181_v55 }
 0x3d0   : > { %v2932_v36 = vsel %vm2931_vm6, %v3805_v21, %v2928_v54 }
 0x3d1   : > { %v2937_v24 = vsel %vm2934_vm7, %v2936_v32, %v2932_v36  ;;  %v3811_v42 = vpop.eup %3810  ;;  %v3183_v61 = vadd.f32 %v3809_v9, %v3182_v41 }
 0x3d2   : > { %3240 = vst [vmem:[%s4688_s29 + $0x170] sm:$0xff] %v2937_v24  ;;  %v2940_v29 = vmul.f32 %v3811_v42, %v2217_v6  ;;  %vm2945_vm12 = vweird.f32 %v3811_v42 }
 0x3d3   : > { %v3187_v15 = vsel %vm3186_vm10, %v3809_v9, %v3183_v61  ;;  %vm2946_vm14 = vmor %vm2944_vm13, %vm2945_vm12 }
 0x3d4   : > { %v3192_v38 = vsel %vm3189_vm11, %v3191_v46, %v3187_v15  ;;  %v2941_v31 = vsub.f32 1.0, %v2940_v29 }
 0x3d5   : > { %3257 = vst [vmem:[%s4688_s29 + $0x1f8] sm:$0xff] %v3192_v38 }
 0x3d6   : > { %v2942_v50 = vmul.f32 %v3811_v42, %v2941_v31 }
 0x3d8   : > { %v2943_v53 = vadd.f32 %v3811_v42, %v2942_v50 }
 0x3da   : > { %v2947_v60 = vsel %vm2946_vm14, %v3811_v42, %v2943_v53 }
 0x3db   : > { %v2952_v37 = vsel %vm2949_vm15, %v2951_v19, %v2947_v60 }
 0x3dc   : > { %3241 = vst [vmem:[%s4688_s29 + $0x178] sm:$0xff] %v2952_v37 }
 0x3dd PF: > { %s14_s15 = sadd.s32 1, %s3828_s15  }
 0x3de   : > { %p11_p4 = scmp.ge.s32.totalorder %s14_s15, 6  }
 0x3e0   :  { %13 = sbr.rel (!%p11_p4) target bundleno = 1 (0x1), region = 68 }

</bundles_post_ra>
